<compile_context>
chip_gen: v6e
topology: v6e:2x2x1
jax: 0.10.0
libtpu: 0.0.40
codegen_flags: <defaults>
</compile_context>

<pallas_src>
import jax
import jax.numpy as jnp
import numpy as np
from jax.experimental import pallas as pl
from jax.experimental.pallas import tpu as pltpu


# ----------------------------------------------------------------------------
# Fused kernel: one grid step == one batch element.
# Refs (per step):
#   w/x/y/z_ref : (1, C, S)  channels-first, S = H*W on lanes
#   w1_ref      : (4, Cr, C) stacked fc1 weights (lane-dense)
#   w2_ref      : (4, C, Cr) stacked fc2 weights
# Outputs:
#   w_out/y_out/z_out : (1, C, S)
#   x_out             : (1, C, 1)   (pooled result only)
# ----------------------------------------------------------------------------
def senet_fused_kernel(w_ref, x_ref, y_ref, z_ref, w1_ref, w2_ref,
                       w_out_ref, x_out_ref, y_out_ref, z_out_ref):
    w = w_ref[0]                                   # (C, S)
    x = x_ref[0]                                   # (C, S)
    y = y_ref[0]                                   # (C, S)
    z = z_ref[0]                                   # (C, S)

    def fc_gate(col_or_tile, li):
        # fc1 -> relu -> fc2 -> sigmoid, operating on (C, N) columns.
        h = jnp.maximum(
            jnp.dot(w1_ref[li], col_or_tile, preferred_element_type=jnp.float32), 0.0)
        return jax.nn.sigmoid(
            jnp.dot(w2_ref[li], h, preferred_element_type=jnp.float32))

    # ---- layer1: gate from avgpool(w), applied to w over full spatial ----
    g1 = fc_gate(jnp.mean(w, axis=1, keepdims=True), 0)       # (C, 1)
    w_out_ref[0] = w * g1 + g1

    # ---- layer2 (+ the module's layer3.avg_pool on x): gate is spatially
    #      constant, so avgpool(xx*g2+g2) == avgpool(xx)*g2 + g2 exactly.
    #      Only the pooled column is ever used -> no full-res write. ----
    xp = jnp.mean(x, axis=1, keepdims=True)                    # (C, 1), reused
    g2 = fc_gate(xp, 1)                                        # (C, 1)
    x_out_ref[0] = xp * g2 + g2

    # ---- layer3: per-pixel SE on y (the module never pools y) ----
    g3 = fc_gate(y, 2)                                         # (C, S)
    y_out_ref[0] = y * g3 + g3

    # ---- layer4: gate from avgpool(z), applied to the ORIGINAL x ----
    g4 = fc_gate(jnp.mean(z, axis=1, keepdims=True), 3)        # (C, 1)
    z_out_ref[0] = x * g4 + g4


def senet_unshared_forward(w, x, y, z, w1_all, w2_all):
    """w1_all: (4, Cr, C) fc1 weights; w2_all: (4, C, Cr) fc2 weights."""
    B, C, H, W_ = w.shape
    S = H * W_
    Cr = w1_all.shape[1]

    # Pure reshape (no transpose / data movement): NCHW -> (B, C, S).
    w3, x3, y3, z3 = (t.reshape(B, C, S) for t in (w, x, y, z))

    io_spec = pl.BlockSpec((1, C, S), lambda b: (b, 0, 0))
    w1_spec = pl.BlockSpec((4, Cr, C), lambda b: (0, 0, 0))
    w2_spec = pl.BlockSpec((4, C, Cr), lambda b: (0, 0, 0))

    # NOTE: at S = 64 a per-batch fused block is ~0.5 MiB, which fits every
    # TPU generation trivially.  For much larger spatial sizes an inner
    # S-tiling grid axis would be added to stay inside v7x's 64 MiB VMEM.
    w_out, x_out, y_out, z_out = pl.pallas_call(
        senet_fused_kernel,
        out_shape=(jax.ShapeDtypeStruct((B, C, S), w.dtype),
                   jax.ShapeDtypeStruct((B, C, 1), w.dtype),
                   jax.ShapeDtypeStruct((B, C, S), w.dtype),
                   jax.ShapeDtypeStruct((B, C, S), w.dtype)),
        grid=(B,),
        in_specs=[io_spec, io_spec, io_spec, io_spec, w1_spec, w2_spec],
        out_specs=(io_spec,
                   pl.BlockSpec((1, C, 1), lambda b: (b, 0, 0)),
                   io_spec,
                   io_spec),
        compiler_params=pltpu.CompilerParams(dimension_semantics=("parallel",)),
    )(w3, x3, y3, z3, w1_all, w2_all)

    return (w_out.reshape(B, C, H, W_),
            x_out.reshape(B, C, 1, 1),
            y_out.reshape(B, C, H, W_),
            z_out.reshape(B, C, H, W_))


# --------------------------- pure-JAX reference ------------------------------
def reference_forward(w, x, y, z, w1_all, w2_all):
    def pooled_gate(t, li):
        p = jnp.mean(t, axis=(2, 3))                                     # (B, C)
        h = jnp.maximum(jnp.einsum('rc,bc->br', w1_all[li], p), 0.0)     # (B, Cr)
        g = jax.nn.sigmoid(jnp.einsum('cr,br->bc', w2_all[li], h))       # (B, C)
        return g[:, :, None, None]

    ww = w
    g1 = pooled_gate(w, 0)
    w = ww * g1 + g1
    xx = x
    g2 = pooled_gate(x, 1)
    x = xx * g2 + g2
    yy = y
    x = jnp.mean(x, axis=(2, 3), keepdims=True)          # layer3.avg_pool on x
    h3 = jnp.maximum(jnp.einsum('rc,bchw->brhw', w1_all[2], y), 0.0)
    g3 = jax.nn.sigmoid(jnp.einsum('cr,brhw->bchw', w2_all[2], h3))
    y = yy * g3 + g3
    g4 = pooled_gate(z, 3)
    z = xx * g4 + g4
    return w, x, y, z


if __name__ == "__main__":
    B, C, H, W = 2, 256, 8, 8          # inplanes=256 (module default), small spatial
    reduction = 16
    Cr = C // reduction

    key = jax.random.PRNGKey(0)
    keys = jax.random.split(key, 12)
    w_in = jax.random.normal(keys[0], (B, C, H, W), jnp.float32)
    x_in = jax.random.normal(keys[1], (B, C, H, W), jnp.float32)
    y_in = jax.random.normal(keys[2], (B, C, H, W), jnp.float32)
    z_in = jax.random.normal(keys[3], (B, C, H, W), jnp.float32)

    # Unshared weights.  PyTorch fc1.weight is (Cr, C, 1, 1) -> stored (Cr, C)
    # (lane-dense); fc2.weight is (C, Cr, 1, 1) -> stored (C, Cr).
    w1_list, w2_list = [], []
    for li in range(4):
        w1_list.append(0.05 * jax.random.normal(keys[4 + 2 * li], (Cr, C), jnp.float32))
        w2_list.append(0.05 * jax.random.normal(keys[5 + 2 * li], (C, Cr), jnp.float32))
    w1_all = jnp.stack(w1_list, axis=0)   # (4, Cr, C)
    w2_all = jnp.stack(w2_list, axis=0)   # (4, C, Cr)

    fwd = jax.jit(senet_unshared_forward)
    outs = fwd(w_in, x_in, y_in, z_in, w1_all, w2_all)
    outs = jax.block_until_ready(outs)

    refs = reference_forward(w_in, x_in, y_in, z_in, w1_all, w2_all)
    for o, r in zip(outs, refs):
        assert o.shape == r.shape, (o.shape, r.shape)
        np.testing.assert_allclose(np.asarray(o), np.asarray(r), rtol=2e-5, atol=2e-5)

    print("KERNEL_OK")
</pallas_src>

<mosaic_0001>
module attributes {stable_mosaic.version = 11 : i64} {
  func.func @senet_fused_kernel(%arg0: i32, %arg1: memref<1x256x64xf32, #tpu.memory_space<vmem>>, %arg2: memref<1x256x64xf32, #tpu.memory_space<vmem>>, %arg3: memref<1x256x64xf32, #tpu.memory_space<vmem>>, %arg4: memref<1x256x64xf32, #tpu.memory_space<vmem>>, %arg5: memref<4x16x256xf32, #tpu.memory_space<vmem>>, %arg6: memref<4x256x16xf32, #tpu.memory_space<vmem>>, %arg7: memref<1x256x64xf32, #tpu.memory_space<vmem>>, %arg8: memref<1x256x1xf32, #tpu.memory_space<vmem>>, %arg9: memref<1x256x64xf32, #tpu.memory_space<vmem>>, %arg10: memref<1x256x64xf32, #tpu.memory_space<vmem>>) attributes {dimension_semantics = [#tpu.dimension_semantics<parallel>], iteration_bounds = array<i64: 2>, scalar_prefetch = 0 : i64, scratch_operands = 0 : i64, tpu.core_type = #tpu.core_type<tc>, window_params = [{transform_indices = @transform_0, window_bounds = array<i64: 1, 256, 64>}, {transform_indices = @transform_1, window_bounds = array<i64: 1, 256, 64>}, {transform_indices = @transform_2, window_bounds = array<i64: 1, 256, 64>}, {transform_indices = @transform_3, window_bounds = array<i64: 1, 256, 64>}, {pipeline_mode = #tpu.pipeline_mode<synchronous>, transform_indices = @transform_4, window_bounds = array<i64: 4, 16, 256>}, {pipeline_mode = #tpu.pipeline_mode<synchronous>, transform_indices = @transform_5, window_bounds = array<i64: 4, 256, 16>}, {transform_indices = @transform_6, window_bounds = array<i64: 1, 256, 64>}, {transform_indices = @transform_7, window_bounds = array<i64: 1, 256, 1>}, {transform_indices = @transform_8, window_bounds = array<i64: 1, 256, 64>}, {transform_indices = @transform_9, window_bounds = array<i64: 1, 256, 64>}]} {
    %c0 = arith.constant 0 : index
    %c0_0 = arith.constant 0 : index
    %c0_1 = arith.constant 0 : index
    %0 = vector.load %arg1[%c0, %c0_0, %c0_1] : memref<1x256x64xf32, #tpu.memory_space<vmem>>, vector<1x256x64xf32>
    %1 = vector.shape_cast %0 : vector<1x256x64xf32> to vector<256x64xf32>
    %c0_2 = arith.constant 0 : index
    %c0_3 = arith.constant 0 : index
    %c0_4 = arith.constant 0 : index
    %2 = vector.load %arg2[%c0_2, %c0_3, %c0_4] : memref<1x256x64xf32, #tpu.memory_space<vmem>>, vector<1x256x64xf32>
    %3 = vector.shape_cast %2 : vector<1x256x64xf32> to vector<256x64xf32>
    %c0_5 = arith.constant 0 : index
    %c0_6 = arith.constant 0 : index
    %c0_7 = arith.constant 0 : index
    %4 = vector.load %arg3[%c0_5, %c0_6, %c0_7] : memref<1x256x64xf32, #tpu.memory_space<vmem>>, vector<1x256x64xf32>
    %5 = vector.shape_cast %4 : vector<1x256x64xf32> to vector<256x64xf32>
    %c0_8 = arith.constant 0 : index
    %c0_9 = arith.constant 0 : index
    %c0_10 = arith.constant 0 : index
    %6 = vector.load %arg4[%c0_8, %c0_9, %c0_10] : memref<1x256x64xf32, #tpu.memory_space<vmem>>, vector<1x256x64xf32>
    %7 = vector.shape_cast %6 : vector<1x256x64xf32> to vector<256x64xf32>
    %cst = arith.constant dense<0.000000e+00> : vector<256xf32>
    %8 = vector.multi_reduction <add>, %1, %cst [1] : vector<256x64xf32> to vector<256xf32>
    %9 = vector.shape_cast %8 : vector<256xf32> to vector<256x1xf32>
    %cst_11 = arith.constant 6.400000e+01 : f32
    %10 = vector.broadcast %cst_11 : f32 to vector<256x1xf32>
    %11 = arith.divf %9, %10 : vector<256x1xf32>
    %c0_12 = arith.constant 0 : index
    %c0_13 = arith.constant 0 : index
    %c0_14 = arith.constant 0 : index
    %12 = vector.load %arg5[%c0_12, %c0_13, %c0_14] : memref<4x16x256xf32, #tpu.memory_space<vmem>>, vector<1x16x256xf32>
    %13 = vector.shape_cast %12 : vector<1x16x256xf32> to vector<16x256xf32>
    %cst_15 = arith.constant dense<0.000000e+00> : vector<16x1xf32>
    %14 = tpu.matmul %13, %11, %cst_15 {dimension_numbers = #tpu.dot_dimension_numbers<[1], [0], [0], [1], [0, 0, 1, 1], [], []>} : vector<16x256xf32>, vector<256x1xf32>, vector<16x1xf32> -> vector<16x1xf32>
    %cst_16 = arith.constant 0.000000e+00 : f32
    %15 = vector.broadcast %cst_16 : f32 to vector<16x1xf32>
    %16 = arith.maximumf %14, %15 : vector<16x1xf32>
    %c0_17 = arith.constant 0 : index
    %c0_18 = arith.constant 0 : index
    %c0_19 = arith.constant 0 : index
    %17 = vector.load %arg6[%c0_17, %c0_18, %c0_19] : memref<4x256x16xf32, #tpu.memory_space<vmem>>, vector<1x256x16xf32>
    %18 = vector.shape_cast %17 : vector<1x256x16xf32> to vector<256x16xf32>
    %cst_20 = arith.constant dense<0.000000e+00> : vector<256x1xf32>
    %19 = tpu.matmul %18, %16, %cst_20 {dimension_numbers = #tpu.dot_dimension_numbers<[1], [0], [0], [1], [0, 0, 1, 1], [], []>} : vector<256x16xf32>, vector<16x1xf32>, vector<256x1xf32> -> vector<256x1xf32>
    %20 = arith.negf %19 : vector<256x1xf32>
    %21 = math.exp %20 : vector<256x1xf32>
    %cst_21 = arith.constant 1.000000e+00 : f32
    %22 = vector.broadcast %cst_21 : f32 to vector<256x1xf32>
    %23 = arith.addf %22, %21 : vector<256x1xf32>
    %24 = arith.divf %22, %23 : vector<256x1xf32>
    %25 = vector.broadcast %24 : vector<256x1xf32> to vector<256x64xf32>
    %26 = arith.mulf %1, %25 : vector<256x64xf32>
    %27 = vector.broadcast %24 : vector<256x1xf32> to vector<256x64xf32>
    %28 = arith.addf %26, %27 : vector<256x64xf32>
    %c0_22 = arith.constant 0 : index
    %c0_23 = arith.constant 0 : index
    %c0_24 = arith.constant 0 : index
    %29 = vector.load %arg7[%c0_22, %c0_23, %c0_24] : memref<1x256x64xf32, #tpu.memory_space<vmem>>, vector<1x256x64xf32>
    %30 = vector.shape_cast %29 : vector<1x256x64xf32> to vector<256x64xf32>
    %31 = vector.shape_cast %28 : vector<256x64xf32> to vector<1x256x64xf32>
    tpu.vector_store %arg7[%c0_22, %c0_23, %c0_24], %31 {strides = array<i32>} : memref<1x256x64xf32, #tpu.memory_space<vmem>>, vector<1x256x64xf32>,
    %cst_25 = arith.constant dense<0.000000e+00> : vector<256xf32>
    %32 = vector.multi_reduction <add>, %3, %cst_25 [1] : vector<256x64xf32> to vector<256xf32>
    %33 = vector.shape_cast %32 : vector<256xf32> to vector<256x1xf32>
    %cst_26 = arith.constant 6.400000e+01 : f32
    %34 = vector.broadcast %cst_26 : f32 to vector<256x1xf32>
    %35 = arith.divf %33, %34 : vector<256x1xf32>
    %c1 = arith.constant 1 : index
    %c0_27 = arith.constant 0 : index
    %c0_28 = arith.constant 0 : index
    %36 = vector.load %arg5[%c1, %c0_27, %c0_28] : memref<4x16x256xf32, #tpu.memory_space<vmem>>, vector<1x16x256xf32>
    %37 = vector.shape_cast %36 : vector<1x16x256xf32> to vector<16x256xf32>
    %cst_29 = arith.constant dense<0.000000e+00> : vector<16x1xf32>
    %38 = tpu.matmul %37, %35, %cst_29 {dimension_numbers = #tpu.dot_dimension_numbers<[1], [0], [0], [1], [0, 0, 1, 1], [], []>} : vector<16x256xf32>, vector<256x1xf32>, vector<16x1xf32> -> vector<16x1xf32>
    %cst_30 = arith.constant 0.000000e+00 : f32
    %39 = vector.broadcast %cst_30 : f32 to vector<16x1xf32>
    %40 = arith.maximumf %38, %39 : vector<16x1xf32>
    %c1_31 = arith.constant 1 : index
    %c0_32 = arith.constant 0 : index
    %c0_33 = arith.constant 0 : index
    %41 = vector.load %arg6[%c1_31, %c0_32, %c0_33] : memref<4x256x16xf32, #tpu.memory_space<vmem>>, vector<1x256x16xf32>
    %42 = vector.shape_cast %41 : vector<1x256x16xf32> to vector<256x16xf32>
    %cst_34 = arith.constant dense<0.000000e+00> : vector<256x1xf32>
    %43 = tpu.matmul %42, %40, %cst_34 {dimension_numbers = #tpu.dot_dimension_numbers<[1], [0], [0], [1], [0, 0, 1, 1], [], []>} : vector<256x16xf32>, vector<16x1xf32>, vector<256x1xf32> -> vector<256x1xf32>
    %44 = arith.negf %43 : vector<256x1xf32>
    %45 = math.exp %44 : vector<256x1xf32>
    %cst_35 = arith.constant 1.000000e+00 : f32
    %46 = vector.broadcast %cst_35 : f32 to vector<256x1xf32>
    %47 = arith.addf %46, %45 : vector<256x1xf32>
    %48 = arith.divf %46, %47 : vector<256x1xf32>
    %49 = arith.mulf %35, %48 : vector<256x1xf32>
    %50 = arith.addf %49, %48 : vector<256x1xf32>
    %c0_36 = arith.constant 0 : index
    %c0_37 = arith.constant 0 : index
    %c0_38 = arith.constant 0 : index
    %51 = vector.load %arg8[%c0_36, %c0_37, %c0_38] : memref<1x256x1xf32, #tpu.memory_space<vmem>>, vector<1x256x1xf32>
    %52 = vector.shape_cast %51 : vector<1x256x1xf32> to vector<256x1xf32>
    %53 = vector.shape_cast %50 : vector<256x1xf32> to vector<1x256x1xf32>
    tpu.vector_store %arg8[%c0_36, %c0_37, %c0_38], %53 {strides = array<i32>} : memref<1x256x1xf32, #tpu.memory_space<vmem>>, vector<1x256x1xf32>,
    %c2 = arith.constant 2 : index
    %c0_39 = arith.constant 0 : index
    %c0_40 = arith.constant 0 : index
    %54 = vector.load %arg5[%c2, %c0_39, %c0_40] : memref<4x16x256xf32, #tpu.memory_space<vmem>>, vector<1x16x256xf32>
    %55 = vector.shape_cast %54 : vector<1x16x256xf32> to vector<16x256xf32>
    %cst_41 = arith.constant dense<0.000000e+00> : vector<16x64xf32>
    %56 = tpu.matmul %55, %5, %cst_41 {dimension_numbers = #tpu.dot_dimension_numbers<[1], [0], [0], [1], [0, 0, 1, 1], [], []>} : vector<16x256xf32>, vector<256x64xf32>, vector<16x64xf32> -> vector<16x64xf32>
    %cst_42 = arith.constant 0.000000e+00 : f32
    %57 = vector.broadcast %cst_42 : f32 to vector<16x64xf32>
    %58 = arith.maximumf %56, %57 : vector<16x64xf32>
    %c2_43 = arith.constant 2 : index
    %c0_44 = arith.constant 0 : index
    %c0_45 = arith.constant 0 : index
    %59 = vector.load %arg6[%c2_43, %c0_44, %c0_45] : memref<4x256x16xf32, #tpu.memory_space<vmem>>, vector<1x256x16xf32>
    %60 = vector.shape_cast %59 : vector<1x256x16xf32> to vector<256x16xf32>
    %cst_46 = arith.constant dense<0.000000e+00> : vector<256x64xf32>
    %61 = tpu.matmul %60, %58, %cst_46 {dimension_numbers = #tpu.dot_dimension_numbers<[1], [0], [0], [1], [0, 0, 1, 1], [], []>} : vector<256x16xf32>, vector<16x64xf32>, vector<256x64xf32> -> vector<256x64xf32>
    %62 = arith.negf %61 : vector<256x64xf32>
    %63 = math.exp %62 : vector<256x64xf32>
    %cst_47 = arith.constant 1.000000e+00 : f32
    %64 = vector.broadcast %cst_47 : f32 to vector<256x64xf32>
    %65 = arith.addf %64, %63 : vector<256x64xf32>
    %66 = arith.divf %64, %65 : vector<256x64xf32>
    %67 = arith.mulf %5, %66 : vector<256x64xf32>
    %68 = arith.addf %67, %66 : vector<256x64xf32>
    %c0_48 = arith.constant 0 : index
    %c0_49 = arith.constant 0 : index
    %c0_50 = arith.constant 0 : index
    %69 = vector.load %arg9[%c0_48, %c0_49, %c0_50] : memref<1x256x64xf32, #tpu.memory_space<vmem>>, vector<1x256x64xf32>
    %70 = vector.shape_cast %69 : vector<1x256x64xf32> to vector<256x64xf32>
    %71 = vector.shape_cast %68 : vector<256x64xf32> to vector<1x256x64xf32>
    tpu.vector_store %arg9[%c0_48, %c0_49, %c0_50], %71 {strides = array<i32>} : memref<1x256x64xf32, #tpu.memory_space<vmem>>, vector<1x256x64xf32>,
    %cst_51 = arith.constant dense<0.000000e+00> : vector<256xf32>
    %72 = vector.multi_reduction <add>, %7, %cst_51 [1] : vector<256x64xf32> to vector<256xf32>
    %73 = vector.shape_cast %72 : vector<256xf32> to vector<256x1xf32>
    %cst_52 = arith.constant 6.400000e+01 : f32
    %74 = vector.broadcast %cst_52 : f32 to vector<256x1xf32>
    %75 = arith.divf %73, %74 : vector<256x1xf32>
    %c3 = arith.constant 3 : index
    %c0_53 = arith.constant 0 : index
    %c0_54 = arith.constant 0 : index
    %76 = vector.load %arg5[%c3, %c0_53, %c0_54] : memref<4x16x256xf32, #tpu.memory_space<vmem>>, vector<1x16x256xf32>
    %77 = vector.shape_cast %76 : vector<1x16x256xf32> to vector<16x256xf32>
    %cst_55 = arith.constant dense<0.000000e+00> : vector<16x1xf32>
    %78 = tpu.matmul %77, %75, %cst_55 {dimension_numbers = #tpu.dot_dimension_numbers<[1], [0], [0], [1], [0, 0, 1, 1], [], []>} : vector<16x256xf32>, vector<256x1xf32>, vector<16x1xf32> -> vector<16x1xf32>
    %cst_56 = arith.constant 0.000000e+00 : f32
    %79 = vector.broadcast %cst_56 : f32 to vector<16x1xf32>
    %80 = arith.maximumf %78, %79 : vector<16x1xf32>
    %c3_57 = arith.constant 3 : index
    %c0_58 = arith.constant 0 : index
    %c0_59 = arith.constant 0 : index
    %81 = vector.load %arg6[%c3_57, %c0_58, %c0_59] : memref<4x256x16xf32, #tpu.memory_space<vmem>>, vector<1x256x16xf32>
    %82 = vector.shape_cast %81 : vector<1x256x16xf32> to vector<256x16xf32>
    %cst_60 = arith.constant dense<0.000000e+00> : vector<256x1xf32>
    %83 = tpu.matmul %82, %80, %cst_60 {dimension_numbers = #tpu.dot_dimension_numbers<[1], [0], [0], [1], [0, 0, 1, 1], [], []>} : vector<256x16xf32>, vector<16x1xf32>, vector<256x1xf32> -> vector<256x1xf32>
    %84 = arith.negf %83 : vector<256x1xf32>
    %85 = math.exp %84 : vector<256x1xf32>
    %cst_61 = arith.constant 1.000000e+00 : f32
    %86 = vector.broadcast %cst_61 : f32 to vector<256x1xf32>
    %87 = arith.addf %86, %85 : vector<256x1xf32>
    %88 = arith.divf %86, %87 : vector<256x1xf32>
    %89 = vector.broadcast %88 : vector<256x1xf32> to vector<256x64xf32>
    %90 = arith.mulf %3, %89 : vector<256x64xf32>
    %91 = vector.broadcast %88 : vector<256x1xf32> to vector<256x64xf32>
    %92 = arith.addf %90, %91 : vector<256x64xf32>
    %c0_62 = arith.constant 0 : index
    %c0_63 = arith.constant 0 : index
    %c0_64 = arith.constant 0 : index
    %93 = vector.load %arg10[%c0_62, %c0_63, %c0_64] : memref<1x256x64xf32, #tpu.memory_space<vmem>>, vector<1x256x64xf32>
    %94 = vector.shape_cast %93 : vector<1x256x64xf32> to vector<256x64xf32>
    %95 = vector.shape_cast %92 : vector<256x64xf32> to vector<1x256x64xf32>
    tpu.vector_store %arg10[%c0_62, %c0_63, %c0_64], %95 {strides = array<i32>} : memref<1x256x64xf32, #tpu.memory_space<vmem>>, vector<1x256x64xf32>,
    return
  }
  func.func @transform_0(%arg0: i32) -> (i32, i32, i32) {
    %c0_i32 = arith.constant 0 : i32
    %c0_i32_0 = arith.constant 0 : i32
    %c0_i32_1 = arith.constant 0 : i32
    return %arg0, %c0_i32, %c0_i32_0 : i32, i32, i32
  }
  func.func @transform_1(%arg0: i32) -> (i32, i32, i32) {
    %c0_i32 = arith.constant 0 : i32
    %c0_i32_0 = arith.constant 0 : i32
    %c0_i32_1 = arith.constant 0 : i32
    return %arg0, %c0_i32, %c0_i32_0 : i32, i32, i32
  }
  func.func @transform_2(%arg0: i32) -> (i32, i32, i32) {
    %c0_i32 = arith.constant 0 : i32
    %c0_i32_0 = arith.constant 0 : i32
    %c0_i32_1 = arith.constant 0 : i32
    return %arg0, %c0_i32, %c0_i32_0 : i32, i32, i32
  }
  func.func @transform_3(%arg0: i32) -> (i32, i32, i32) {
    %c0_i32 = arith.constant 0 : i32
    %c0_i32_0 = arith.constant 0 : i32
    %c0_i32_1 = arith.constant 0 : i32
    return %arg0, %c0_i32, %c0_i32_0 : i32, i32, i32
  }
  func.func @transform_4(%arg0: i32) -> (i32, i32, i32) {
    %c0_i32 = arith.constant 0 : i32
    %c0_i32_0 = arith.constant 0 : i32
    %c0_i32_1 = arith.constant 0 : i32
    %c0_i32_2 = arith.constant 0 : i32
    return %c0_i32, %c0_i32_0, %c0_i32_1 : i32, i32, i32
  }
  func.func @transform_5(%arg0: i32) -> (i32, i32, i32) {
    %c0_i32 = arith.constant 0 : i32
    %c0_i32_0 = arith.constant 0 : i32
    %c0_i32_1 = arith.constant 0 : i32
    %c0_i32_2 = arith.constant 0 : i32
    return %c0_i32, %c0_i32_0, %c0_i32_1 : i32, i32, i32
  }
  func.func @transform_6(%arg0: i32) -> (i32, i32, i32) {
    %c0_i32 = arith.constant 0 : i32
    %c0_i32_0 = arith.constant 0 : i32
    %c0_i32_1 = arith.constant 0 : i32
    return %arg0, %c0_i32, %c0_i32_0 : i32, i32, i32
  }
  func.func @transform_7(%arg0: i32) -> (i32, i32, i32) {
    %c0_i32 = arith.constant 0 : i32
    %c0_i32_0 = arith.constant 0 : i32
    %c0_i32_1 = arith.constant 0 : i32
    return %arg0, %c0_i32, %c0_i32_0 : i32, i32, i32
  }
  func.func @transform_8(%arg0: i32) -> (i32, i32, i32) {
    %c0_i32 = arith.constant 0 : i32
    %c0_i32_0 = arith.constant 0 : i32
    %c0_i32_1 = arith.constant 0 : i32
    return %arg0, %c0_i32, %c0_i32_0 : i32, i32, i32
  }
  func.func @transform_9(%arg0: i32) -> (i32, i32, i32) {
    %c0_i32 = arith.constant 0 : i32
    %c0_i32_0 = arith.constant 0 : i32
    %c0_i32_1 = arith.constant 0 : i32
    return %arg0, %c0_i32, %c0_i32_0 : i32, i32, i32
  }
}

</mosaic_0001>

<bundles_post_ra>
// kernel: senet_unshared_forward.1
= control target key start
LH: loop header
LB: loop body
LE: loop exit
PB: predicated region body
PF: predicated region fallthrough
CT: control target
= control target key end

     0   :  { %s5923_s30 = smov 0   ;;  %s7431_s0 = inlined_call_operand.vmem [shape: f32[2,256,64], index: 0, kind: input, shape index: {}]   ;;  %s7432_s1 = inlined_call_operand.vmem [shape: f32[2,256,64], index: 1, kind: input, shape index: {}]   ;;  %s7433_s2 = inlined_call_operand.vmem [shape: f32[2,256,64], index: 2, kind: input, shape index: {}]   ;;  %s7434_s3 = inlined_call_operand.vmem [shape: f32[2,256,64], index: 3, kind: input, shape index: {}]   ;;  %s7435_s4 = inlined_call_operand.vmem [shape: f32[4,16,256], index: 4, kind: input, shape index: {}]   ;;  %s7436_s5 = inlined_call_operand.vmem [shape: f32[4,256,16], index: 5, kind: input, shape index: {}]   ;;  %s7437_s6 = inlined_call_operand.vmem [shape: f32[2,256,64], index: 6, kind: output, shape index: {0}]   ;;  %s7438_s7 = inlined_call_operand.vmem [shape: f32[2,256,1], index: 7, kind: output, shape index: {1}]   ;;  %s7439_s8 = inlined_call_operand.vmem [shape: f32[2,256,64], index: 8, kind: output, shape index: {2}]   ;;  %s7440_s9 = inlined_call_operand.vmem [shape: f32[2,256,64], index: 9, kind: output, shape index: {3}]  }
   0x1 LB: > { %s4350_s10 = sadd.s32 4294967295, %s5870_s30   ;;  %p4354_p0 = scmp.ge.s32.totalorder %s5870_s30, 1  ;;  %s5870_s30 = sphi %s5923_s30, %s20_s30  }
   0x2   : > { %p324_p1 = scmp.lt.s32.totalorder %s5870_s30, 3 }
   0x4   : > { %p325_p2 = pnand %p4354_p0, %p324_p1 }
   0x6   : > { %328 = sbr.rel (%p325_p2) target bundleno = 1149 (0x47d), region = 44 }
   0xb   : > { %p390_p3 = scmp.lt.s32.totalorder %s4350_s10, 1  ;;  %vm558_vm0 = vcmask 523264   ;;  %vm801_vm1 = vcmask 130048   ;;  %vm2391_vm2 = vcmask 7168  }
   0xd   : > { %s7445_s10 = smov (!%p390_p3, %s4350_s10), 1 }
   0xe   : > { %s5931_s11 = sshll.u32 %s7445_s10, 8 }
   0xf   : > { %s5937_s14 = scalar_lea.vmem %s7431_s0, %s5931_s11  ;;  %s6005_s17 = scalar_lea.vmem %s7432_s1, %s5931_s11 }
  0x10   : > { %v461_v0 = vld [vmem:[%s5937_s14 + $0xf8] sm:$0xff]  ;;  %v460_v1 = vld [vmem:[%s5937_s14 + $0xf0] sm:$0xff]  ;;  %v459_v8 = vld [vmem:[%s5937_s14 + $0xe8] sm:$0xff]  ;;  %s6080_s22 = scalar_lea.vmem %s7434_s3, %s5931_s11  ;;  %s6452_s26 = scalar_lea.vmem %s7433_s2, %s5931_s11 }
  0x11   : > { %v445_v2 = vld [vmem:[%s5937_s14 + $0x78] sm:$0xff]  ;;  %v652_v3 = vsel %vm558_vm0, %v461_v0, 0.0  ;;  %v649_v4 = vsel %vm558_vm0, %v460_v1, 0.0  ;;  %v444_v5 = vld [vmem:[%s5937_s14 + $0x70] sm:$0xff]  ;;  %v443_v9 = vld [vmem:[%s5937_s14 + $0x68] sm:$0xff]  ;;  %v646_v10 = vsel %vm558_vm0, %v459_v8, 0.0  ;;  %s6928_s21 = scalar_lea.vmem %s7437_s6, %s5931_s11  ;;  %s7216_s15 = scalar_lea.vmem %s7439_s8, %s5931_s11 }
  0x12   : > { %653 = vadd.xlane.f32.xlu0 %v652_v3  ;;  %650 = vadd.xlane.f32.xlu1 %v649_v4  ;;  %v604_v6 = vsel %vm558_vm0, %v445_v2, 0.0  ;;  %v601_v7 = vsel %vm558_vm0, %v444_v5, 0.0  ;;  %v598_v11 = vsel %vm558_vm0, %v443_v9, 0.0  ;;  %v458_v12 = vld [vmem:[%s5937_s14 + $0xe0] sm:$0xff]  ;;  %v457_v16 = vld [vmem:[%s5937_s14 + $0xd8] sm:$0xff]  ;;  %v456_v20 = vld [vmem:[%s5937_s14 + $0xd0] sm:$0xff]  ;;  %s7321_s19 = scalar_lea.vmem %s7440_s9, %s5931_s11 }
  0x13   : > { %v442_v13 = vld [vmem:[%s5937_s14 + $0x60] sm:$0xff]  ;;  %v643_v14 = vsel %vm558_vm0, %v458_v12, 0.0  ;;  %v441_v17 = vld [vmem:[%s5937_s14 + $0x58] sm:$0xff]  ;;  %v640_v18 = vsel %vm558_vm0, %v457_v16, 0.0  ;;  %v440_v21 = vld [vmem:[%s5937_s14 + $0x50] sm:$0xff]  ;;  %v637_v22 = vsel %vm558_vm0, %v456_v20, 0.0 }
  0x14   : > { %v595_v15 = vsel %vm558_vm0, %v442_v13, 0.0  ;;  %v592_v19 = vsel %vm558_vm0, %v441_v17, 0.0  ;;  %v589_v23 = vsel %vm558_vm0, %v440_v21, 0.0  ;;  %v455_v24 = vld [vmem:[%s5937_s14 + $0xc8] sm:$0xff]  ;;  %v454_v28 = vld [vmem:[%s5937_s14 + $0xc0] sm:$0xff]  ;;  %v453_v32 = vld [vmem:[%s5937_s14 + $0xb8] sm:$0xff] }
  0x15   : > { %v439_v25 = vld [vmem:[%s5937_s14 + $0x48] sm:$0xff]  ;;  %v634_v26 = vsel %vm558_vm0, %v455_v24, 0.0  ;;  %v438_v29 = vld [vmem:[%s5937_s14 + $0x40] sm:$0xff]  ;;  %v631_v30 = vsel %vm558_vm0, %v454_v28, 0.0  ;;  %v437_v33 = vld [vmem:[%s5937_s14 + $0x38] sm:$0xff]  ;;  %v628_v34 = vsel %vm558_vm0, %v453_v32, 0.0 }
  0x16   : > { %605 = vadd.xlane.f32.xlu0 %v604_v6  ;;  %602 = vadd.xlane.f32.xlu1 %v601_v7  ;;  %v586_v27 = vsel %vm558_vm0, %v439_v25, 0.0  ;;  %v583_v31 = vsel %vm558_vm0, %v438_v29, 0.0  ;;  %v580_v35 = vsel %vm558_vm0, %v437_v33, 0.0  ;;  %v452_v36 = vld [vmem:[%s5937_s14 + $0xb0] sm:$0xff]  ;;  %v451_v40 = vld [vmem:[%s5937_s14 + $0xa8] sm:$0xff]  ;;  %v450_v44 = vld [vmem:[%s5937_s14 + $0xa0] sm:$0xff] }
  0x17   : > { %v436_v37 = vld [vmem:[%s5937_s14 + $0x30] sm:$0xff]  ;;  %v625_v38 = vsel %vm558_vm0, %v452_v36, 0.0  ;;  %v435_v41 = vld [vmem:[%s5937_s14 + $0x28] sm:$0xff]  ;;  %v622_v42 = vsel %vm558_vm0, %v451_v40, 0.0  ;;  %v434_v45 = vld [vmem:[%s5937_s14 + $0x20] sm:$0xff]  ;;  %v619_v46 = vsel %vm558_vm0, %v450_v44, 0.0 }
  0x18   : > { %v577_v39 = vsel %vm558_vm0, %v436_v37, 0.0  ;;  %v574_v43 = vsel %vm558_vm0, %v435_v41, 0.0  ;;  %v571_v47 = vsel %vm558_vm0, %v434_v45, 0.0  ;;  %v449_v48 = vld [vmem:[%s5937_s14 + $0x98] sm:$0xff]  ;;  %v448_v52 = vld [vmem:[%s5937_s14 + $0x90] sm:$0xff]  ;;  %v447_v56 = vld [vmem:[%s5937_s14 + $0x88] sm:$0xff] }
  0x19   : > { %v433_v49 = vld [vmem:[%s5937_s14 + $0x18] sm:$0xff]  ;;  %v616_v50 = vsel %vm558_vm0, %v449_v48, 0.0  ;;  %v432_v53 = vld [vmem:[%s5937_s14 + $0x10] sm:$0xff]  ;;  %v613_v54 = vsel %vm558_vm0, %v448_v52, 0.0  ;;  %v431_v57 = vld [vmem:[%s5937_s14 + $0x8] sm:$0xff]  ;;  %v610_v58 = vsel %vm558_vm0, %v447_v56, 0.0 }
  0x1a   : > { %647 = vadd.xlane.f32.xlu0 %v646_v10  ;;  %599 = vadd.xlane.f32.xlu1 %v598_v11  ;;  %v568_v51 = vsel %vm558_vm0, %v433_v49, 0.0  ;;  %v565_v55 = vsel %vm558_vm0, %v432_v53, 0.0  ;;  %v562_v59 = vsel %vm558_vm0, %v431_v57, 0.0  ;;  %v446_v60 = vld [vmem:[%s5937_s14 + $0x80] sm:$0xff]  ;;  %v493_v0 = vld [vmem:[%s6005_s17 + $0xf8] sm:$0xff]  ;;  %v492_v4 = vld [vmem:[%s6005_s17 + $0xf0] sm:$0xff] }
  0x1b   : > { %v430_v61 = vld [vmem:[%s5937_s14] sm:$0xff]  ;;  %v607_v62 = vsel %vm558_vm0, %v446_v60, 0.0  ;;  %v477_v1 = vld [vmem:[%s6005_s17 + $0x78] sm:$0xff]  ;;  %v1664_v2 = vsel %vm558_vm0, %v493_v0, 0.0  ;;  %v476_v5 = vld [vmem:[%s6005_s17 + $0x70] sm:$0xff]  ;;  %v1661_v6 = vsel %vm558_vm0, %v492_v4, 0.0 }
  0x1c   : > { %v559_v63 = vsel %vm558_vm0, %v430_v61, 0.0  ;;  %v1616_v3 = vsel %vm558_vm0, %v477_v1, 0.0  ;;  %v1613_v7 = vsel %vm558_vm0, %v476_v5, 0.0  ;;  %v491_v8 = vld [vmem:[%s6005_s17 + $0xe8] sm:$0xff]  ;;  %v490_v12 = vld [vmem:[%s6005_s17 + $0xe0] sm:$0xff]  ;;  %v489_v17 = vld [vmem:[%s6005_s17 + $0xd8] sm:$0xff] }
  0x1d   : > { %v475_v9 = vld [vmem:[%s6005_s17 + $0x68] sm:$0xff]  ;;  %v1658_v10 = vsel %vm558_vm0, %v491_v8, 0.0  ;;  %v474_v13 = vld [vmem:[%s6005_s17 + $0x60] sm:$0xff]  ;;  %v488_v21 = vld [vmem:[%s6005_s17 + $0xd0] sm:$0xff] }
  0x1e   : > { %644 = vadd.xlane.f32.xlu0 %v643_v14  ;;  %596 = vadd.xlane.f32.xlu1 %v595_v15  ;;  %v1610_v11 = vsel %vm558_vm0, %v475_v9, 0.0  ;;  %v689_v14 = vld [vmem:[%s7435_s4 + $0x8] sm:$0xff]  ;;  %v1655_v15 = vsel %vm558_vm0, %v490_v12, 0.0  ;;  %v1607_v16 = vsel %vm558_vm0, %v474_v13, 0.0  ;;  %v486_v29 = vld [vmem:[%s6005_s17 + $0xc0] sm:$0xff]  ;;  %v485_v33 = vld [vmem:[%s6005_s17 + $0xb8] sm:$0xff] }
  0x1f   : > { %756 = vmatprep.mubr.f32.mxu0 %v689_v14  ;;  %v487_v25 = vld [vmem:[%s6005_s17 + $0xc8] sm:$0xff]  ;;  %v484_v37 = vld [vmem:[%s6005_s17 + $0xb0] sm:$0xff]  ;;  %v482_v45 = vld [vmem:[%s6005_s17 + $0xa0] sm:$0xff] }
  0x20   : > { %v483_v41 = vld [vmem:[%s6005_s17 + $0xa8] sm:$0xff]  ;;  %v481_v49 = vld [vmem:[%s6005_s17 + $0x98] sm:$0xff]  ;;  %v480_v53 = vld [vmem:[%s6005_s17 + $0x90] sm:$0xff] }
  0x21   : > { %v479_v57 = vld [vmem:[%s6005_s17 + $0x88] sm:$0xff]  ;;  %v478_v61 = vld [vmem:[%s6005_s17 + $0x80] sm:$0xff]  ;;  %v557_v9 = vld [vmem:[%s6080_s22 + $0xf8] sm:$0xff] }
  0x22   : > { %641 = vadd.xlane.f32.xlu0 %v640_v18  ;;  %593 = vadd.xlane.f32.xlu1 %v592_v19  ;;  %v473_v18 = vld [vmem:[%s6005_s17 + $0x58] sm:$0xff]  ;;  %v1652_v19 = vsel %vm558_vm0, %v489_v17, 0.0  ;;  %v3241_v12 = vsel %vm558_vm0, %v557_v9, 0.0  ;;  %v540_v14 = vld [vmem:[%s6080_s22 + $0x70] sm:$0xff] }
  0x23   : > { %v1604_v20 = vsel %vm558_vm0, %v473_v18, 0.0 }
  0x26   : > { %638 = vadd.xlane.f32.xlu0 %v637_v22  ;;  %590 = vadd.xlane.f32.xlu1 %v589_v23  ;;  %v472_v22 = vld [vmem:[%s6005_s17 + $0x50] sm:$0xff]  ;;  %v1649_v23 = vsel %vm558_vm0, %v488_v21, 0.0  ;;  %v555_v21 = vld [vmem:[%s6080_s22 + $0xe8] sm:$0xff] }
  0x27   : > { %v1601_v24 = vsel %vm558_vm0, %v472_v22, 0.0  ;;  %v539_v22 = vld [vmem:[%s6080_s22 + $0x68] sm:$0xff] }
  0x2a   : > { %635 = vadd.xlane.f32.xlu0 %v634_v26  ;;  %587 = vadd.xlane.f32.xlu1 %v586_v27  ;;  %v471_v26 = vld [vmem:[%s6005_s17 + $0x48] sm:$0xff]  ;;  %v1646_v27 = vsel %vm558_vm0, %v487_v25, 0.0 }
  0x2b   : > { %v1598_v28 = vsel %vm558_vm0, %v471_v26, 0.0 }
  0x2e   : > { %632 = vadd.xlane.f32.xlu0 %v631_v30  ;;  %584 = vadd.xlane.f32.xlu1 %v583_v31  ;;  %v470_v30 = vld [vmem:[%s6005_s17 + $0x40] sm:$0xff]  ;;  %v1643_v31 = vsel %vm558_vm0, %v486_v29, 0.0 }
  0x2f   : > { %v1595_v32 = vsel %vm558_vm0, %v470_v30, 0.0  ;;  %v554_v29 = vld [vmem:[%s6080_s22 + $0xe0] sm:$0xff] }
  0x30   : > { %v538_v30 = vld [vmem:[%s6080_s22 + $0x60] sm:$0xff] }
  0x32   : > { %629 = vadd.xlane.f32.xlu0 %v628_v34  ;;  %581 = vadd.xlane.f32.xlu1 %v580_v35  ;;  %v469_v34 = vld [vmem:[%s6005_s17 + $0x38] sm:$0xff]  ;;  %v1640_v35 = vsel %vm558_vm0, %v485_v33, 0.0 }
  0x33   : > { %v1592_v36 = vsel %vm558_vm0, %v469_v34, 0.0 }
  0x36   : > { %626 = vadd.xlane.f32.xlu0 %v625_v38  ;;  %578 = vadd.xlane.f32.xlu1 %v577_v39  ;;  %v468_v38 = vld [vmem:[%s6005_s17 + $0x30] sm:$0xff]  ;;  %v1637_v39 = vsel %vm558_vm0, %v484_v37, 0.0  ;;  %v553_v37 = vld [vmem:[%s6080_s22 + $0xd8] sm:$0xff] }
  0x37   : > { %v1589_v40 = vsel %vm558_vm0, %v468_v38, 0.0  ;;  %v537_v38 = vld [vmem:[%s6080_s22 + $0x58] sm:$0xff] }
  0x3a   : > { %623 = vadd.xlane.f32.xlu0 %v622_v42  ;;  %575 = vadd.xlane.f32.xlu1 %v574_v43  ;;  %v467_v42 = vld [vmem:[%s6005_s17 + $0x28] sm:$0xff]  ;;  %v1634_v43 = vsel %vm558_vm0, %v483_v41, 0.0 }
  0x3b   : > { %v1586_v44 = vsel %vm558_vm0, %v467_v42, 0.0 }
  0x3e   : > { %620 = vadd.xlane.f32.xlu0 %v619_v46  ;;  %572 = vadd.xlane.f32.xlu1 %v571_v47  ;;  %v466_v46 = vld [vmem:[%s6005_s17 + $0x20] sm:$0xff]  ;;  %v1631_v47 = vsel %vm558_vm0, %v482_v45, 0.0  ;;  %v552_v45 = vld [vmem:[%s6080_s22 + $0xd0] sm:$0xff] }
  0x3f   : > { %v1583_v48 = vsel %vm558_vm0, %v466_v46, 0.0  ;;  %v536_v46 = vld [vmem:[%s6080_s22 + $0x50] sm:$0xff] }
  0x42   : > { %617 = vadd.xlane.f32.xlu0 %v616_v50  ;;  %569 = vadd.xlane.f32.xlu1 %v568_v51  ;;  %v465_v50 = vld [vmem:[%s6005_s17 + $0x18] sm:$0xff]  ;;  %v1628_v51 = vsel %vm558_vm0, %v481_v49, 0.0 }
  0x43   : > { %v1580_v52 = vsel %vm558_vm0, %v465_v50, 0.0 }
  0x46   : > { %614 = vadd.xlane.f32.xlu0 %v613_v54  ;;  %566 = vadd.xlane.f32.xlu1 %v565_v55  ;;  %v464_v54 = vld [vmem:[%s6005_s17 + $0x10] sm:$0xff]  ;;  %v1625_v55 = vsel %vm558_vm0, %v480_v53, 0.0  ;;  %v551_v53 = vld [vmem:[%s6080_s22 + $0xc8] sm:$0xff] }
  0x47   : > { %v1577_v56 = vsel %vm558_vm0, %v464_v54, 0.0  ;;  %v535_v54 = vld [vmem:[%s6080_s22 + $0x48] sm:$0xff] }
  0x4a   : > { %611 = vadd.xlane.f32.xlu0 %v610_v58  ;;  %563 = vadd.xlane.f32.xlu1 %v562_v59  ;;  %v463_v58 = vld [vmem:[%s6005_s17 + $0x8] sm:$0xff]  ;;  %v1622_v59 = vsel %vm558_vm0, %v479_v57, 0.0 }
  0x4b   : > { %v1574_v60 = vsel %vm558_vm0, %v463_v58, 0.0 }
  0x4e   : > { %608 = vadd.xlane.f32.xlu0 %v607_v62  ;;  %560 = vadd.xlane.f32.xlu1 %v559_v63  ;;  %v462_v62 = vld [vmem:[%s6005_s17] sm:$0xff]  ;;  %v1619_v63 = vsel %vm558_vm0, %v478_v61, 0.0 }
  0x4f   : > { %v1571_v0 = vsel %vm558_vm0, %v462_v62, 0.0  ;;  %v550_v61 = vld [vmem:[%s6080_s22 + $0xc0] sm:$0xff] }
  0x50   : > { %v534_v62 = vld [vmem:[%s6080_s22 + $0x40] sm:$0xff] }
  0x52   : > { %1665 = vadd.xlane.f32.xlu0 %v1664_v2  ;;  %1617 = vadd.xlane.f32.xlu1 %v1616_v3 }
  0x56   : > { %1662 = vadd.xlane.f32.xlu0 %v1661_v6  ;;  %1614 = vadd.xlane.f32.xlu1 %v1613_v7 }
  0x5a   : > { %1659 = vadd.xlane.f32.xlu0 %v1658_v10  ;;  %1611 = vadd.xlane.f32.xlu1 %v1610_v11  ;;  %v541_v10 = vld [vmem:[%s6080_s22 + $0x78] sm:$0xff]  ;;  %v556_v11 = vld [vmem:[%s6080_s22 + $0xf0] sm:$0xff] }
  0x5b   : > { %v3193_v13 = vsel %vm558_vm0, %v541_v10, 0.0 }
  0x5e   : > { %1656 = vadd.xlane.f32.xlu0 %v1655_v15  ;;  %1608 = vadd.xlane.f32.xlu1 %v1607_v16 }
  0x62   : > { %1653 = vadd.xlane.f32.xlu0 %v1652_v19  ;;  %1605 = vadd.xlane.f32.xlu1 %v1604_v20  ;;  %v3238_v19 = vsel %vm558_vm0, %v556_v11, 0.0  ;;  %v3190_v20 = vsel %vm558_vm0, %v540_v14, 0.0  ;;  %v532_v14 = vld [vmem:[%s6080_s22 + $0x30] sm:$0xff] }
  0x66   : > { %1650 = vadd.xlane.f32.xlu0 %v1649_v23  ;;  %1602 = vadd.xlane.f32.xlu1 %v1601_v24 }
  0x6a   : > { %1647 = vadd.xlane.f32.xlu0 %v1646_v27  ;;  %1599 = vadd.xlane.f32.xlu1 %v1598_v28  ;;  %v3235_v27 = vsel %vm558_vm0, %v555_v21, 0.0  ;;  %v3187_v28 = vsel %vm558_vm0, %v539_v22, 0.0  ;;  %v547_v21 = vld [vmem:[%s6080_s22 + $0xa8] sm:$0xff] }
  0x6b   : > { %v531_v22 = vld [vmem:[%s6080_s22 + $0x28] sm:$0xff] }
  0x6e   : > { %1644 = vadd.xlane.f32.xlu0 %v1643_v31  ;;  %1596 = vadd.xlane.f32.xlu1 %v1595_v32 }
  0x72   : > { %1641 = vadd.xlane.f32.xlu0 %v1640_v35  ;;  %1593 = vadd.xlane.f32.xlu1 %v1592_v36  ;;  %v3232_v35 = vsel %vm558_vm0, %v554_v29, 0.0  ;;  %v3184_v36 = vsel %vm558_vm0, %v538_v30, 0.0  ;;  %v546_v29 = vld [vmem:[%s6080_s22 + $0xa0] sm:$0xff] }
  0x73   : > { %v530_v30 = vld [vmem:[%s6080_s22 + $0x20] sm:$0xff] }
  0x76   : > { %1638 = vadd.xlane.f32.xlu0 %v1637_v39  ;;  %1590 = vadd.xlane.f32.xlu1 %v1589_v40 }
  0x7a   : > { %1635 = vadd.xlane.f32.xlu0 %v1634_v43  ;;  %1587 = vadd.xlane.f32.xlu1 %v1586_v44  ;;  %v3229_v43 = vsel %vm558_vm0, %v553_v37, 0.0  ;;  %v3181_v44 = vsel %vm558_vm0, %v537_v38, 0.0  ;;  %v545_v37 = vld [vmem:[%s6080_s22 + $0x98] sm:$0xff] }
  0x7b   : > { %v529_v38 = vld [vmem:[%s6080_s22 + $0x18] sm:$0xff] }
  0x7e   : > { %1632 = vadd.xlane.f32.xlu0 %v1631_v47  ;;  %1584 = vadd.xlane.f32.xlu1 %v1583_v48 }
  0x82   : > { %1629 = vadd.xlane.f32.xlu0 %v1628_v51  ;;  %1581 = vadd.xlane.f32.xlu1 %v1580_v52  ;;  %v3226_v51 = vsel %vm558_vm0, %v552_v45, 0.0  ;;  %v3178_v52 = vsel %vm558_vm0, %v536_v46, 0.0  ;;  %v544_v45 = vld [vmem:[%s6080_s22 + $0x90] sm:$0xff] }
  0x83   : > { %v528_v46 = vld [vmem:[%s6080_s22 + $0x10] sm:$0xff] }
  0x86   : > { %1626 = vadd.xlane.f32.xlu0 %v1625_v55  ;;  %1578 = vadd.xlane.f32.xlu1 %v1577_v56 }
  0x8a   : > { %1623 = vadd.xlane.f32.xlu0 %v1622_v59  ;;  %1575 = vadd.xlane.f32.xlu1 %v1574_v60  ;;  %v3223_v59 = vsel %vm558_vm0, %v551_v53, 0.0  ;;  %v3175_v60 = vsel %vm558_vm0, %v535_v54, 0.0  ;;  %v543_v53 = vld [vmem:[%s6080_s22 + $0x88] sm:$0xff] }
  0x8b   : > { %v527_v54 = vld [vmem:[%s6080_s22 + $0x8] sm:$0xff] }
  0x8e   : > { %1620 = vadd.xlane.f32.xlu0 %v1619_v63  ;;  %1572 = vadd.xlane.f32.xlu1 %v1571_v0 }
  0x92   : > { %3242 = vadd.xlane.f32.xlu0 %v3241_v12  ;;  %3194 = vadd.xlane.f32.xlu1 %v3193_v13  ;;  %v548_v13 = vld [vmem:[%s6080_s22 + $0xb0] sm:$0xff] }
  0x96   : > { %3239 = vadd.xlane.f32.xlu0 %v3238_v19  ;;  %3191 = vadd.xlane.f32.xlu1 %v3190_v20  ;;  %v3214_v19 = vsel %vm558_vm0, %v548_v13, 0.0  ;;  %v3166_v20 = vsel %vm558_vm0, %v532_v14, 0.0 }
  0x9a   : > { %3236 = vadd.xlane.f32.xlu0 %v3235_v27  ;;  %3188 = vadd.xlane.f32.xlu1 %v3187_v28  ;;  %v3211_v27 = vsel %vm558_vm0, %v547_v21, 0.0  ;;  %v3163_v28 = vsel %vm558_vm0, %v531_v22, 0.0 }
  0x9b   : > { %v654_v1 = vpop.xlane.xlu0 %653  ;;  %v651_v2 = vpop.xlane.xlu1 %650 }
  0x9c   : > { %v687_v3 = vmul.f32 0.015625, %v654_v1  ;;  %v686_v8 = vmul.f32 0.015625, %v651_v2 }
  0x9e   : > { %4745 = vmatprep.subr.mxu0 %v687_v3  ;;  %3233 = vadd.xlane.f32.xlu0 %v3232_v35  ;;  %v3220_v3 = vsel %vm558_vm0, %v550_v61, 0.0  ;;  %v3208_v35 = vsel %vm558_vm0, %v546_v29, 0.0  ;;  %v3151_v61 = vsel %vm558_vm0, %v527_v54, 0.0 }
  0x9f   : > { %v606_v4 = vpop.xlane.xlu0 %605  ;;  %v603_v5 = vpop.xlane.xlu1 %602  ;;  %3185 = vadd.xlane.f32.xlu1 %v3184_v36  ;;  %v3160_v36 = vsel %vm558_vm0, %v530_v30, 0.0 }
  0xa0   : > { %v670_v6 = vmul.f32 0.015625, %v603_v5  ;;  %v671_v7 = vmul.f32 0.015625, %v606_v4  ;;  %v3172_v4 = vsel %vm558_vm0, %v534_v62, 0.0  ;;  %v549_v5 = vld [vmem:[%s6080_s22 + $0xb8] sm:$0xff]  ;;  %v542_v62 = vld [vmem:[%s6080_s22 + $0x80] sm:$0xff] }
  0xa1   : > { %v3217_v11 = vsel %vm558_vm0, %v549_v5, 0.0  ;;  %v3196_v5 = vsel %vm558_vm0, %v542_v62, 0.0 }
  0xa2   : > { %4746 = vmatpush3.msra.mxu0 %v671_v7  ;;  %3230 = vadd.xlane.f32.xlu0 %v3229_v43  ;;  %v3205_v43 = vsel %vm558_vm0, %v545_v37, 0.0 }
  0xa3   : > { %4747 = vmatprep.subr.mxu0 %v686_v8  ;;  %v648_v15 = vpop.xlane.xlu0 %647  ;;  %v600_v16 = vpop.xlane.xlu1 %599  ;;  %3182 = vadd.xlane.f32.xlu1 %v3181_v44  ;;  %v3157_v44 = vsel %vm558_vm0, %v529_v38, 0.0 }
  0xa4   : > { %v685_v17 = vmul.f32 0.015625, %v648_v15  ;;  %4748 = vmatpush3.msra.mxu0 %v670_v6  ;;  %v669_v18 = vmul.f32 0.015625, %v600_v16  ;;  %v533_v6 = vld [vmem:[%s6080_s22 + $0x38] sm:$0xff] }
  0xa5   : > { %v3169_v12 = vsel %vm558_vm0, %v533_v6, 0.0  ;;  %v690_v6 = vld [vmem:[%s7435_s4 + $0x10] sm:$0xff] }
  0xa6   : > { %4749 = vmatprep.subr.mxu0 %v685_v17  ;;  %3227 = vadd.xlane.f32.xlu0 %v3226_v51  ;;  %v3202_v51 = vsel %vm558_vm0, %v544_v45, 0.0 }
  0xa7   : > { %v645_v23 = vpop.xlane.xlu0 %644  ;;  %4750 = vmatpush3.msra.mxu0 %v669_v18  ;;  %v597_v24 = vpop.xlane.xlu1 %596  ;;  %3179 = vadd.xlane.f32.xlu1 %v3178_v52  ;;  %v3154_v52 = vsel %vm558_vm0, %v528_v46, 0.0 }
  0xa8   : > { %v684_v25 = vmul.f32 0.015625, %v645_v23  ;;  %v668_v26 = vmul.f32 0.015625, %v597_v24 }
  0xaa   : > { %4751 = vmatprep.subr.mxu0 %v684_v25  ;;  %3224 = vadd.xlane.f32.xlu0 %v3223_v59  ;;  %v3199_v59 = vsel %vm558_vm0, %v543_v53, 0.0 }
  0xab   : > { %v642_v31 = vpop.xlane.xlu0 %641  ;;  %4752 = vmatpush3.msra.mxu0 %v668_v26  ;;  %v594_v32 = vpop.xlane.xlu1 %593  ;;  %3176 = vadd.xlane.f32.xlu1 %v3175_v60  ;;  %v688_v60 = vld [vmem:[%s7435_s4] sm:$0xff] }
  0xac   : > { %v683_v33 = vmul.f32 0.015625, %v642_v31  ;;  %v667_v34 = vmul.f32 0.015625, %v594_v32 }
  0xae   : > { %4753 = vmatprep.subr.mxu0 %v683_v33  ;;  %3221 = vadd.xlane.f32.xlu0 %v3220_v3 }
  0xaf   : > { %v639_v39 = vpop.xlane.xlu0 %638  ;;  %4754 = vmatpush3.msra.mxu0 %v667_v34  ;;  %v591_v40 = vpop.xlane.xlu1 %590  ;;  %3173 = vadd.xlane.f32.xlu1 %v3172_v4 }
  0xb0   : > { %v682_v41 = vmul.f32 0.015625, %v639_v39  ;;  %v666_v42 = vmul.f32 0.015625, %v591_v40 }
  0xb2   : > { %4755 = vmatprep.subr.mxu0 %v682_v41  ;;  %3218 = vadd.xlane.f32.xlu0 %v3217_v11 }
  0xb3   : > { %v636_v47 = vpop.xlane.xlu0 %635  ;;  %4756 = vmatpush3.msra.mxu0 %v666_v42  ;;  %v588_v48 = vpop.xlane.xlu1 %587  ;;  %3170 = vadd.xlane.f32.xlu1 %v3169_v12 }
  0xb4   : > { %v681_v49 = vmul.f32 0.015625, %v636_v47  ;;  %v665_v50 = vmul.f32 0.015625, %v588_v48 }
  0xb6   : > { %4757 = vmatprep.subr.mxu0 %v681_v49  ;;  %3215 = vadd.xlane.f32.xlu0 %v3214_v19 }
  0xb7   : > { %v633_v55 = vpop.xlane.xlu0 %632  ;;  %4758 = vmatpush3.msra.mxu0 %v665_v50  ;;  %v585_v56 = vpop.xlane.xlu1 %584  ;;  %3167 = vadd.xlane.f32.xlu1 %v3166_v20 }
  0xb8   : > { %v680_v57 = vmul.f32 0.015625, %v633_v55  ;;  %v664_v58 = vmul.f32 0.015625, %v585_v56 }
  0xba   : > { %4759 = vmatprep.subr.mxu0 %v680_v57  ;;  %3212 = vadd.xlane.f32.xlu0 %v3211_v27 }
  0xbb   : > { %v630_v63 = vpop.xlane.xlu0 %629  ;;  %4760 = vmatpush3.msra.mxu0 %v664_v58  ;;  %v582_v0 = vpop.xlane.xlu1 %581  ;;  %3164 = vadd.xlane.f32.xlu1 %v3163_v28 }
  0xbc   : > { %v679_v1 = vmul.f32 0.015625, %v630_v63  ;;  %v663_v2 = vmul.f32 0.015625, %v582_v0  ;;  %v691_v63 = vld [vmem:[%s7435_s4 + $0x18] sm:$0xff]  ;;  %v526_v0 = vld [vmem:[%s6080_s22] sm:$0xff]  ;;  %s6685_s22 = scalar_lea.vmem %s7438_s7, %s5931_s11 }
  0xbe   : > { %4761 = vmatprep.subr.mxu0 %v679_v1  ;;  %3209 = vadd.xlane.f32.xlu0 %v3208_v35 }
  0xbf   : > { %v627_v7 = vpop.xlane.xlu0 %626  ;;  %4762 = vmatpush3.msra.mxu0 %v663_v2  ;;  %v579_v8 = vpop.xlane.xlu1 %578  ;;  %3161 = vadd.xlane.f32.xlu1 %v3160_v36 }
  0xc0   : > { %v678_v9 = vmul.f32 0.015625, %v627_v7  ;;  %v662_v10 = vmul.f32 0.015625, %v579_v8  ;;  %v3148_v7 = vsel %vm558_vm0, %v526_v0, 0.0  ;;  %v4436_v8 = vld [vmem:[%s7435_s4 + $0x28] sm:$0xff] }
  0xc2   : > { %4763 = vmatprep.subr.mxu0 %v678_v9  ;;  %3206 = vadd.xlane.f32.xlu0 %v3205_v43 }
  0xc3   : > { %v624_v15 = vpop.xlane.xlu0 %623  ;;  %4764 = vmatpush3.msra.mxu0 %v662_v10  ;;  %v576_v16 = vpop.xlane.xlu1 %575  ;;  %3158 = vadd.xlane.f32.xlu1 %v3157_v44 }
  0xc4   : > { %v677_v17 = vmul.f32 0.015625, %v624_v15  ;;  %v661_v18 = vmul.f32 0.015625, %v576_v16 }
  0xc6   : > { %4765 = vmatprep.subr.mxu0 %v677_v17  ;;  %3203 = vadd.xlane.f32.xlu0 %v3202_v51 }
  0xc7   : > { %v621_v23 = vpop.xlane.xlu0 %620  ;;  %4766 = vmatpush3.msra.mxu0 %v661_v18  ;;  %v573_v24 = vpop.xlane.xlu1 %572  ;;  %3155 = vadd.xlane.f32.xlu1 %v3154_v52 }
  0xc8   : > { %v676_v25 = vmul.f32 0.015625, %v621_v23  ;;  %v660_v26 = vmul.f32 0.015625, %v573_v24 }
  0xca   : > { %4767 = vmatprep.subr.mxu0 %v676_v25  ;;  %3200 = vadd.xlane.f32.xlu0 %v3199_v59 }
  0xcb   : > { %v618_v31 = vpop.xlane.xlu0 %617  ;;  %4768 = vmatpush3.msra.mxu0 %v660_v26  ;;  %v570_v32 = vpop.xlane.xlu1 %569  ;;  %3152 = vadd.xlane.f32.xlu1 %v3151_v61 }
  0xcc   : > { %v675_v33 = vmul.f32 0.015625, %v618_v31  ;;  %v659_v34 = vmul.f32 0.015625, %v570_v32 }
  0xce   : > { %4769 = vmatprep.subr.mxu0 %v675_v33  ;;  %3197 = vadd.xlane.f32.xlu0 %v3196_v5 }
  0xcf   : > { %v615_v39 = vpop.xlane.xlu0 %614  ;;  %4770 = vmatpush3.msra.mxu0 %v659_v34  ;;  %v567_v40 = vpop.xlane.xlu1 %566  ;;  %3149 = vadd.xlane.f32.xlu1 %v3148_v7  ;;  %v4435_v7 = vld [vmem:[%s7435_s4 + $0x20] sm:$0xff] }
  0xd0   : > { %v674_v41 = vmul.f32 0.015625, %v615_v39  ;;  %v658_v42 = vmul.f32 0.015625, %v567_v40 }
  0xd2   : > { %4771 = vmatprep.subr.mxu0 %v674_v41 }
  0xd3   : > { %v612_v47 = vpop.xlane.xlu0 %611  ;;  %4772 = vmatpush3.msra.mxu0 %v658_v42  ;;  %v564_v48 = vpop.xlane.xlu1 %563 }
  0xd4   : > { %v673_v49 = vmul.f32 0.015625, %v612_v47  ;;  %v657_v50 = vmul.f32 0.015625, %v564_v48 }
  0xd6   : > { %4773 = vmatprep.subr.mxu0 %v673_v49 }
  0xd7   : > { %v609_v55 = vpop.xlane.xlu0 %608  ;;  %4774 = vmatpush3.msra.mxu0 %v657_v50  ;;  %v561_v56 = vpop.xlane.xlu1 %560 }
  0xd8   : > { %v672_v57 = vmul.f32 0.015625, %v609_v55  ;;  %v656_v58 = vmul.f32 0.015625, %v561_v56 }
  0xda   : > { %4775 = vmatprep.subr.mxu0 %v672_v57 }
  0xdb   : > { %v1666_v1 = vpop.xlane.xlu0 %1665  ;;  %4776 = vmatpush3.msra.mxu0 %v656_v58  ;;  %v1618_v2 = vpop.xlane.xlu1 %1617 }
  0xdc   : > { %v6150_v3 = vmul.f32 0.015625, %v1666_v1  ;;  %757 = vmatmul.mubr.f32.vlgmr.msra.gmra.mxu0 %v688_v60  ;;  %v6152_v4 = vmul.f32 0.015625, %v1618_v2 }
  0xdd   : > { %761 = vmatprep.mubr.f32.mxu0 %v691_v63 }
  0xde   : > { %4817 = vmatprep.subr.mxu0 %v6150_v3 }
  0xdf   : > { %v1663_v9 = vpop.xlane.xlu0 %1662  ;;  %4818 = vmatpush3.msra.mxu0 %v6152_v4  ;;  %v1615_v10 = vpop.xlane.xlu1 %1614 }
  0xe0   : > { %v6164_v11 = vmul.f32 0.015625, %v1663_v9  ;;  %762 = vmatmul.mubr.f32.gmra.mxu0 %v690_v6  ;;  %v6166_v12 = vmul.f32 0.015625, %v1615_v10  ;;  %v4437_v9 = vld [vmem:[%s7435_s4 + $0x30] sm:$0xff]  ;;  %v769_v10 = vld [vmem:[%s7436_s5] sm:$0xff] }
  0xe1   : > { %1768 = vmatprep.mubr.f32.mxu0 %v4436_v8  ;;  %v4438_v8 = vld [vmem:[%s7435_s4 + $0x38] sm:$0xff]  ;;  %5037 = vmatprep.mubr.msk.f32.mxu1 %vm801_vm1, %v769_v10 }
  0xe2   : > { %7442 = vst [vmem:[#allocation2_spill] sm:$0xff] %v6164_v11  ;;  %4819 = vmatprep.subr.mxu0 %v6164_v11 }
  0xe3   : > { %v1660_v13 = vpop.xlane.xlu0 %1659  ;;  %4820 = vmatpush3.msra.mxu0 %v6166_v12  ;;  %v1612_v14 = vpop.xlane.xlu1 %1611 }
  0xe4   : > { %v6170_v15 = vmul.f32 0.015625, %v1660_v13  ;;  %v6172_v16 = vmul.f32 0.015625, %v1612_v14  ;;  %v4439_v13 = vld [vmem:[%s7436_s5 + $0x100] sm:$0xff] }
  0xe6   : > { %4821 = vmatprep.subr.mxu0 %v6170_v15 }
  0xe7   : > { %v1657_v17 = vpop.xlane.xlu0 %1656  ;;  %4822 = vmatpush3.msra.mxu0 %v6172_v16  ;;  %v1609_v18 = vpop.xlane.xlu1 %1608 }
  0xe8   : > { %v6176_v19 = vmul.f32 0.015625, %v1657_v17  ;;  %v6178_v20 = vmul.f32 0.015625, %v1609_v18 }
  0xea   : > { %4823 = vmatprep.subr.mxu0 %v6176_v19 }
  0xeb   : > { %v1654_v21 = vpop.xlane.xlu0 %1653  ;;  %4824 = vmatpush3.msra.mxu0 %v6178_v20  ;;  %v1606_v22 = vpop.xlane.xlu1 %1605 }
  0xec   : > { %v6182_v23 = vmul.f32 0.015625, %v1654_v21  ;;  %v6184_v24 = vmul.f32 0.015625, %v1606_v22 }
  0xee   : > { %4825 = vmatprep.subr.mxu0 %v6182_v23 }
  0xef   : > { %v1651_v25 = vpop.xlane.xlu0 %1650  ;;  %4826 = vmatpush3.msra.mxu0 %v6184_v24  ;;  %v1603_v26 = vpop.xlane.xlu1 %1602 }
  0xf0   : > { %v6188_v27 = vmul.f32 0.015625, %v1651_v25  ;;  %v6190_v28 = vmul.f32 0.015625, %v1603_v26 }
  0xf2   : > { %4827 = vmatprep.subr.mxu0 %v6188_v27 }
  0xf3   : > { %v1648_v29 = vpop.xlane.xlu0 %1647  ;;  %4828 = vmatpush3.msra.mxu0 %v6190_v28  ;;  %v1600_v30 = vpop.xlane.xlu1 %1599 }
  0xf4   : > { %v6194_v31 = vmul.f32 0.015625, %v1648_v29  ;;  %v6196_v32 = vmul.f32 0.015625, %v1600_v30  ;;  %v770_v30 = vld [vmem:[%s7436_s5 + $0x8] sm:$0xff] }
  0xf6   : > { %4829 = vmatprep.subr.mxu0 %v6194_v31 }
  0xf7   : > { %v1645_v33 = vpop.xlane.xlu0 %1644  ;;  %4830 = vmatpush3.msra.mxu0 %v6196_v32  ;;  %v1597_v34 = vpop.xlane.xlu1 %1596 }
  0xf8   : > { %v6200_v35 = vmul.f32 0.015625, %v1645_v33  ;;  %v6202_v36 = vmul.f32 0.015625, %v1597_v34  ;;  %v771_v33 = vld [vmem:[%s7436_s5 + $0x10] sm:$0xff] }
  0xfa   : > { %4831 = vmatprep.subr.mxu0 %v6200_v35 }
  0xfb   : > { %v1642_v37 = vpop.xlane.xlu0 %1641  ;;  %4832 = vmatpush3.msra.mxu0 %v6202_v36  ;;  %v1594_v38 = vpop.xlane.xlu1 %1593 }
  0xfc   : > { %v6206_v39 = vmul.f32 0.015625, %v1642_v37  ;;  %v6208_v40 = vmul.f32 0.015625, %v1594_v38  ;;  %v772_v38 = vld [vmem:[%s7436_s5 + $0x18] sm:$0xff] }
  0xfe   : > { %4833 = vmatprep.subr.mxu0 %v6206_v39 }
  0xff   : > { %v1639_v41 = vpop.xlane.xlu0 %1638  ;;  %4834 = vmatpush3.msra.mxu0 %v6208_v40  ;;  %v1591_v42 = vpop.xlane.xlu1 %1590 }
 0x100   : > { %v6212_v43 = vmul.f32 0.015625, %v1639_v41  ;;  %v6214_v44 = vmul.f32 0.015625, %v1591_v42  ;;  %v773_v41 = vld [vmem:[%s7436_s5 + $0x20] sm:$0xff]  ;;  %v774_v42 = vld [vmem:[%s7436_s5 + $0x28] sm:$0xff] }
 0x102   : > { %4835 = vmatprep.subr.mxu0 %v6212_v43 }
 0x103   : > { %v1636_v45 = vpop.xlane.xlu0 %1635  ;;  %4836 = vmatpush3.msra.mxu0 %v6214_v44  ;;  %v1588_v46 = vpop.xlane.xlu1 %1587 }
 0x104   : > { %v6218_v47 = vmul.f32 0.015625, %v1636_v45  ;;  %v6220_v48 = vmul.f32 0.015625, %v1588_v46  ;;  %v775_v46 = vld [vmem:[%s7436_s5 + $0x30] sm:$0xff] }
 0x106   : > { %4837 = vmatprep.subr.mxu0 %v6218_v47 }
 0x107   : > { %v1633_v49 = vpop.xlane.xlu0 %1632  ;;  %4838 = vmatpush3.msra.mxu0 %v6220_v48  ;;  %v1585_v50 = vpop.xlane.xlu1 %1584 }
 0x108   : > { %v6224_v51 = vmul.f32 0.015625, %v1633_v49  ;;  %v6226_v52 = vmul.f32 0.015625, %v1585_v50  ;;  %v776_v50 = vld [vmem:[%s7436_s5 + $0x38] sm:$0xff] }
 0x10a   : > { %4839 = vmatprep.subr.mxu0 %v6224_v51 }
 0x10b   : > { %v1630_v53 = vpop.xlane.xlu0 %1629  ;;  %4840 = vmatpush3.msra.mxu0 %v6226_v52  ;;  %v1582_v54 = vpop.xlane.xlu1 %1581 }
 0x10c   : > { %v6230_v55 = vmul.f32 0.015625, %v1630_v53  ;;  %v6232_v56 = vmul.f32 0.015625, %v1582_v54  ;;  %v777_v53 = vld [vmem:[%s7436_s5 + $0x40] sm:$0xff] }
 0x10e   : > { %4841 = vmatprep.subr.mxu0 %v6230_v55 }
 0x10f   : > { %v1627_v57 = vpop.xlane.xlu0 %1626  ;;  %4842 = vmatpush3.msra.mxu0 %v6232_v56  ;;  %v1579_v58 = vpop.xlane.xlu1 %1578 }
 0x110   : > { %v6236_v59 = vmul.f32 0.015625, %v1627_v57  ;;  %v6238_v60 = vmul.f32 0.015625, %v1579_v58  ;;  %v778_v58 = vld [vmem:[%s7436_s5 + $0x48] sm:$0xff] }
 0x112   : > { %4843 = vmatprep.subr.mxu0 %v6236_v59 }
 0x113   : > { %v1624_v61 = vpop.xlane.xlu0 %1623  ;;  %4844 = vmatpush3.msra.mxu0 %v6238_v60  ;;  %v1576_v62 = vpop.xlane.xlu1 %1575 }
 0x114   : > { %v6242_v63 = vmul.f32 0.015625, %v1624_v61  ;;  %v6244_v0 = vmul.f32 0.015625, %v1576_v62  ;;  %v779_v61 = vld [vmem:[%s7436_s5 + $0x50] sm:$0xff]  ;;  %v780_v62 = vld [vmem:[%s7436_s5 + $0x58] sm:$0xff] }
 0x116   : > { %4845 = vmatprep.subr.mxu0 %v6242_v63 }
 0x117   : > { %v1621_v1 = vpop.xlane.xlu0 %1620  ;;  %4846 = vmatpush3.msra.mxu0 %v6244_v0  ;;  %v1573_v2 = vpop.xlane.xlu1 %1572 }
 0x118   : > { %v6248_v5 = vmul.f32 0.015625, %v1621_v1  ;;  %v6250_v6 = vmul.f32 0.015625, %v1573_v2  ;;  %v781_v2 = vld [vmem:[%s7436_s5 + $0x60] sm:$0xff] }
 0x11a   : > { %4847 = vmatprep.subr.mxu0 %v6248_v5 }
 0x11b   : > { %4848 = vmatpush3.msra.mxu0 %v6250_v6  ;;  %v6277_v34 = vpop.xlane.xlu0 %3242  ;;  %v6280_v37 = vpop.xlane.xlu1 %3194 }
 0x11c   : > { %1769 = vmatmul.mubr.f32.vlgmr.msra.gmra.mxu0 %v4435_v7 }
 0x11d   : > { %1773 = vmatprep.mubr.f32.mxu0 %v4438_v8  ;;  %v782_v8 = vld [vmem:[%s7436_s5 + $0x68] sm:$0xff] }
 0x11f   : > { %v6294_v45 = vpop.xlane.xlu0 %3239  ;;  %v6299_v49 = vpop.xlane.xlu1 %3191 }
 0x120   : > { %1774 = vmatmul.mubr.f32.gmra.mxu0 %v4437_v9  ;;  %v783_v9 = vld [vmem:[%s7436_s5 + $0x70] sm:$0xff] }
 0x121   : > { %5089 = vmatprep.mubr.msk.f32.mxu0 %vm801_vm1, %v4439_v13 }
 0x123   : > { %v6309_v54 = vpop.xlane.xlu0 %3236  ;;  %v6312_v57 = vpop.xlane.xlu1 %3188 }
 0x127   : > { %v6326_v1 = vpop.xlane.xlu0 %3233 }
 0x128   : > { %v6331_v7 = vpop.xlane.xlu1 %3185 }
 0x12b   : > { %v6341_v10 = vpop.xlane.xlu0 %3230 }
 0x12c   : > { %v6344_v13 = vpop.xlane.xlu1 %3182 }
 0x19c   : > { %v4777_v14 = vpop.f32.mrf.mxu0 }
 0x19e   : > { %v4778_v17 = vpop.f32.mrf.mxu0 }
 0x19f   : > { %v4779_v22 = vadd.f32 %v4778_v17, %v4777_v14  ;;  %v784_v14 = vld [vmem:[%s7436_s5 + $0x78] sm:$0xff]  ;;  %v785_v17 = vld [vmem:[%s7436_s5 + $0x80] sm:$0xff] }
 0x1a0   : > { %v4780_v18 = vpop.f32.mrf.mxu0 }
 0x1a1   : > { %v767_v29 = vmax.f32 %v4779_v22, 0.0  ;;  %v787_v22 = vld [vmem:[%s7436_s5 + $0x90] sm:$0xff] }
 0x1a2   : > { %v4781_v21 = vpop.f32.mrf.mxu0 }
 0x1a3   : > { %v4782_v25 = vadd.f32 %v4781_v21, %v4780_v18  ;;  %v786_v18 = vld [vmem:[%s7436_s5 + $0x88] sm:$0xff]  ;;  %v6358_v21 = vpop.xlane.xlu0 %3227 }
 0x1a5   : > { %v768_v26 = vmax.f32 %v4782_v25, 0.0  ;;  %v6363_v25 = vpop.xlane.xlu1 %3179 }
 0x1a7   : > { %5033 = vmatprep.subr.mxu1 %v768_v26 }
 0x1a8   : > { %5034 = vmatpush3.msra.mxu1 %v768_v26  ;;  %v788_v26 = vld [vmem:[%s7436_s5 + $0x98] sm:$0xff] }
 0x1a9   : > { %5035 = vmatprep.subr.mxu1 %v767_v29 }
 0x1aa   : > { %5036 = vmatpush3.msra.mxu1 %v767_v29  ;;  %v789_v29 = vld [vmem:[%s7436_s5 + $0xa0] sm:$0xff] }
 0x1ab   : > { %5038 = vmatmul.mubr.msk.f32.vlgmr.msra.gmra.mxu1 %vm801_vm1, %v770_v30  ;;  %v6373_v30 = vpop.xlane.xlu0 %3224 }
 0x1ac   : > { %5040 = vmatprep.mubr.msk.f32.mxu1 %vm801_vm1, %v771_v33  ;;  %v6376_v33 = vpop.xlane.xlu1 %3176 }
 0x1af   : > { %5041 = vmatmul.mubr.msk.f32.gmra.mxu1 %vm801_vm1, %v772_v38  ;;  %v790_v38 = vld [vmem:[%s7436_s5 + $0xa8] sm:$0xff] }
 0x1b0   : > { %5043 = vmatprep.mubr.msk.f32.mxu1 %vm801_vm1, %v773_v41  ;;  %v791_v41 = vld [vmem:[%s7436_s5 + $0xb0] sm:$0xff] }
 0x1b3   : > { %5044 = vmatmul.mubr.msk.f32.gmra.mxu1 %vm801_vm1, %v774_v42  ;;  %v792_v42 = vld [vmem:[%s7436_s5 + $0xb8] sm:$0xff] }
 0x1b4   : > { %5046 = vmatprep.mubr.msk.f32.mxu1 %vm801_vm1, %v775_v46  ;;  %v6390_v46 = vpop.xlane.xlu0 %3221 }
 0x1b7   : > { %5047 = vmatmul.mubr.msk.f32.gmra.mxu1 %vm801_vm1, %v776_v50  ;;  %v793_v50 = vld [vmem:[%s7436_s5 + $0xc0] sm:$0xff] }
 0x1b8   : > { %5049 = vmatprep.mubr.msk.f32.mxu1 %vm801_vm1, %v777_v53  ;;  %v6395_v53 = vpop.xlane.xlu1 %3173 }
 0x1bb   : > { %5050 = vmatmul.mubr.msk.f32.gmra.mxu1 %vm801_vm1, %v778_v58  ;;  %v794_v58 = vld [vmem:[%s7436_s5 + $0xc8] sm:$0xff] }
 0x1bc   : > { %5052 = vmatprep.mubr.msk.f32.mxu1 %vm801_vm1, %v779_v61  ;;  %v795_v61 = vld [vmem:[%s7436_s5 + $0xd0] sm:$0xff] }
 0x1bf   : > { %5053 = vmatmul.mubr.msk.f32.gmra.mxu1 %vm801_vm1, %v780_v62  ;;  %v6405_v62 = vpop.xlane.xlu0 %3218 }
 0x1c0   : > { %5055 = vmatprep.mubr.msk.f32.mxu1 %vm801_vm1, %v781_v2  ;;  %v6408_v2 = vpop.xlane.xlu1 %3170 }
 0x1c3   : > { %5056 = vmatmul.mubr.msk.f32.gmra.mxu1 %vm801_vm1, %v782_v8 }
 0x1c4   : > { %5058 = vmatprep.mubr.msk.f32.mxu1 %vm801_vm1, %v783_v9  ;;  %v796_v9 = vld [vmem:[%s7436_s5 + $0xd8] sm:$0xff] }
 0x1c7   : > { %5059 = vmatmul.mubr.msk.f32.gmra.mxu1 %vm801_vm1, %v784_v14  ;;  %v797_v14 = vld [vmem:[%s7436_s5 + $0xe0] sm:$0xff] }
 0x1c8   : > { %5061 = vmatprep.mubr.msk.f32.mxu1 %vm801_vm1, %v785_v17 }
 0x1cb   : > { %5062 = vmatmul.mubr.msk.f32.gmra.mxu1 %vm801_vm1, %v786_v18 }
 0x1cc   : > { %5064 = vmatprep.mubr.msk.f32.mxu1 %vm801_vm1, %v787_v22  ;;  %v798_v22 = vld [vmem:[%s7436_s5 + $0xe8] sm:$0xff] }
 0x1cf   : > { %5065 = vmatmul.mubr.msk.f32.gmra.mxu1 %vm801_vm1, %v788_v26  ;;  %v6422_v26 = vpop.xlane.xlu0 %3215 }
 0x1d0   : > { %5067 = vmatprep.mubr.msk.f32.mxu1 %vm801_vm1, %v789_v29  ;;  %v799_v29 = vld [vmem:[%s7436_s5 + $0xf0] sm:$0xff] }
 0x1d3   : > { %5068 = vmatmul.mubr.msk.f32.gmra.mxu1 %vm801_vm1, %v790_v38  ;;  %v6427_v38 = vpop.xlane.xlu1 %3167 }
 0x1d4   : > { %5070 = vmatprep.mubr.msk.f32.mxu1 %vm801_vm1, %v791_v41 }
 0x1d7   : > { %5071 = vmatmul.mubr.msk.f32.gmra.mxu1 %vm801_vm1, %v792_v42  ;;  %v6437_v11 = vpop.xlane.xlu1 %3164 }
 0x1d8   : > { %5073 = vmatprep.mubr.msk.f32.mxu1 %vm801_vm1, %v793_v50 }
 0x1db   : > { %5074 = vmatmul.mubr.msk.f32.gmra.mxu1 %vm801_vm1, %v794_v58  ;;  %v800_v58 = vld [vmem:[%s7436_s5 + $0xf8] sm:$0xff] }
 0x1dc   : > { %v4849_v8 = vpop.f32.mrf.mxu0  ;;  %5076 = vmatprep.mubr.msk.f32.mxu1 %vm801_vm1, %v795_v61 }
 0x1de   : > { %v4850_v17 = vpop.f32.mrf.mxu0 }
 0x1df   : > { %5077 = vmatmul.mubr.msk.f32.gmra.mxu1 %vm801_vm1, %v796_v9  ;;  %v4851_v42 = vadd.f32 %v4850_v17, %v4849_v8  ;;  %v6434_v9 = vpop.xlane.xlu0 %3212  ;;  %v4455_v8 = vld [vmem:[%s7436_s5 + $0x180] sm:$0xff]  ;;  %v4440_v17 = vld [vmem:[%s7436_s5 + $0x108] sm:$0xff] }
 0x1e0   : > { %v4852_v18 = vpop.f32.mrf.mxu0  ;;  %5079 = vmatprep.mubr.msk.f32.mxu1 %vm801_vm1, %v797_v14 }
 0x1e1   : > { %v1779_v14 = vmax.f32 %v4851_v42, 0.0  ;;  %v3259_v42 = vmul.f32 0.015625, %v6280_v37  ;;  %v3258_v37 = vmul.f32 0.015625, %v6299_v49  ;;  %v4459_v49 = vld [vmem:[%s7436_s5 + $0x1a0] sm:$0xff] }
 0x1e2   : > { %v4853_v41 = vpop.f32.mrf.mxu0 }
 0x1e3   : > { %v4854_v50 = vadd.f32 %v4853_v41, %v4852_v18  ;;  %5080 = vmatmul.mubr.msk.f32.gmra.mxu1 %vm801_vm1, %v798_v22  ;;  %v4456_v18 = vld [vmem:[%s7436_s5 + $0x188] sm:$0xff]  ;;  %v4441_v22 = vld [vmem:[%s7436_s5 + $0x110] sm:$0xff] }
 0x1e4   : > { %5082 = vmatprep.mubr.msk.f32.mxu1 %vm801_vm1, %v799_v29  ;;  %v3275_v29 = vmul.f32 0.015625, %v6277_v34  ;;  %v4457_v41 = vld [vmem:[%s7436_s5 + $0x190] sm:$0xff]  ;;  %v4442_v34 = vld [vmem:[%s7436_s5 + $0x118] sm:$0xff] }
 0x1e5   : > { %v1780_v61 = vmax.f32 %v4854_v50, 0.0  ;;  %v6465_v50 = vpop.xlane.xlu0 %3209 }
 0x1e7   : > { %5083 = vmatmul.mubr.msk.f32.gmra.mxu1 %vm801_vm1, %v800_v58  ;;  %5085 = vmatprep.subr.mxu0 %v1780_v61  ;;  %v525_v58 = vld [vmem:[%s6452_s26 + $0xf8] sm:$0xff] }
 0x1e8   : > { %5241 = vmatprep.subr.mxu1 %v1780_v61  ;;  %5086 = vmatpush3.msra.mxu0 %v1780_v61 }
 0x1e9   : > { %5243 = vmatpush3.msra.mxu1 %v1780_v61  ;;  %5087 = vmatprep.subr.mxu0 %v1779_v14  ;;  %v3274_v61 = vmul.f32 0.015625, %v6294_v45  ;;  %v3273_v45 = vmul.f32 0.015625, %v6309_v54  ;;  %v4444_v54 = vld [vmem:[%s7436_s5 + $0x128] sm:$0xff] }
 0x1ea   : > { %5242 = vmatprep.subr.mxu1 %v1779_v14  ;;  %5088 = vmatpush3.msra.mxu0 %v1779_v14 }
 0x1eb   : > { %5244 = vmatpush3.msra.mxu1 %v1779_v14  ;;  %5113 = vmatprep.mubr.msk.f32.mxu1 %vm801_vm1, %v4455_v8  ;;  %v6473_v14 = vpop.xlane.xlu1 %3161  ;;  %v4458_v8 = vld [vmem:[%s7436_s5 + $0x198] sm:$0xff] }
 0x1ec   : > { %5090 = vmatmul.mubr.msk.f32.vlgmr.msra.gmra.mxu0 %vm801_vm1, %v4440_v17  ;;  %5114 = vmatmul.mubr.msk.f32.vlgmr.msra.gmra.mxu1 %vm801_vm1, %v4456_v18  ;;  %v4443_v17 = vld [vmem:[%s7436_s5 + $0x120] sm:$0xff]  ;;  %v3257_v18 = vmul.f32 0.015625, %v6312_v57  ;;  %v4460_v57 = vld [vmem:[%s7436_s5 + $0x1a8] sm:$0xff] }
 0x1ed   : > { %4961 = vmatprep.subr.mxu1 %v3275_v29  ;;  %5092 = vmatprep.mubr.msk.f32.mxu0 %vm801_vm1, %v4441_v22  ;;  %v3272_v22 = vmul.f32 0.015625, %v6326_v1  ;;  %v3256_v29 = vmul.f32 0.015625, %v6331_v7  ;;  %v3271_v1 = vmul.f32 0.015625, %v6341_v10  ;;  %v3255_v7 = vmul.f32 0.015625, %v6344_v13  ;;  %v4462_v13 = vld [vmem:[%s7436_s5 + $0x1b8] sm:$0xff] }
 0x1ee   : > { %4962 = vmatpush3.msra.mxu1 %v3259_v42  ;;  %5116 = vmatprep.mubr.msk.f32.mxu1 %vm801_vm1, %v4457_v41  ;;  %v6499_v41 = vpop.xlane.xlu0 %3206  ;;  %v4445_v42 = vld [vmem:[%s7436_s5 + $0x130] sm:$0xff]  ;;  %v3270_v10 = vmul.f32 0.015625, %v6358_v21  ;;  %v4447_v21 = vld [vmem:[%s7436_s5 + $0x140] sm:$0xff] }
 0x1ef   : > { %4963 = vmatprep.subr.mxu1 %v3274_v61  ;;  %4889 = vmatprep.subr.mxu0 %v525_v58  ;;  %v6506_v58 = vpop.xlane.xlu1 %3158  ;;  %v4461_v61 = vld [vmem:[%s7436_s5 + $0x1b0] sm:$0xff] }
 0x1f0   : > { %4964 = vmatpush3.msra.mxu1 %v3258_v37  ;;  %5093 = vmatmul.mubr.msk.f32.gmra.mxu0 %vm801_vm1, %v4442_v34  ;;  %v4446_v34 = vld [vmem:[%s7436_s5 + $0x138] sm:$0xff]  ;;  %v3254_v37 = vmul.f32 0.015625, %v6363_v25  ;;  %v4463_v25 = vld [vmem:[%s7436_s5 + $0x1c0] sm:$0xff] }
 0x1f1   : > { %5117 = vmatmul.mubr.msk.f32.gmra.mxu1 %vm801_vm1, %v4458_v8  ;;  %4965 = vmatprep.subr.mxu1 %v3273_v45  ;;  %v3269_v8 = vmul.f32 0.015625, %v6373_v30  ;;  %v3253_v45 = vmul.f32 0.015625, %v6376_v33  ;;  %v4448_v30 = vld [vmem:[%s7436_s5 + $0x148] sm:$0xff]  ;;  %v3252_v33 = vmul.f32 0.015625, %v6395_v53  ;;  %v4465_v53 = vld [vmem:[%s7436_s5 + $0x1d0] sm:$0xff] }
 0x1f2   : > { %4966 = vmatpush3.msra.mxu1 %v3257_v18  ;;  %5095 = vmatprep.mubr.msk.f32.mxu0 %vm801_vm1, %v4443_v17  ;;  %v3204_v17 = vpop.xlane.xlu0 %3203  ;;  %v3268_v18 = vmul.f32 0.015625, %v6390_v46  ;;  %v4449_v46 = vld [vmem:[%s7436_s5 + $0x150] sm:$0xff] }
 0x1f3   : > { %4967 = vmatprep.subr.mxu1 %v3272_v22  ;;  %5119 = vmatprep.mubr.msk.f32.mxu1 %vm801_vm1, %v4459_v49  ;;  %v3156_v49 = vpop.xlane.xlu1 %3155  ;;  %v4464_v22 = vld [vmem:[%s7436_s5 + $0x1c8] sm:$0xff] }
 0x1f4   : > { %4968 = vmatpush3.msra.mxu1 %v3256_v29  ;;  %5096 = vmatmul.mubr.msk.f32.gmra.mxu0 %vm801_vm1, %v4444_v54  ;;  %v3267_v54 = vmul.f32 0.015625, %v6405_v62  ;;  %v3251_v29 = vmul.f32 0.015625, %v6408_v2  ;;  %v4450_v62 = vld [vmem:[%s7436_s5 + $0x158] sm:$0xff] }
 0x1f5   : > { %5120 = vmatmul.mubr.msk.f32.gmra.mxu1 %vm801_vm1, %v4460_v57  ;;  %4969 = vmatprep.subr.mxu1 %v3271_v1  ;;  %v3266_v57 = vmul.f32 0.015625, %v6422_v26  ;;  %v3250_v1 = vmul.f32 0.015625, %v6427_v38  ;;  %v4466_v2 = vld [vmem:[%s7436_s5 + $0x1d8] sm:$0xff]  ;;  %v4451_v26 = vld [vmem:[%s7436_s5 + $0x160] sm:$0xff]  ;;  %v3249_v38 = vmul.f32 0.015625, %v6437_v11  ;;  %v4468_v11 = vld [vmem:[%s7436_s5 + $0x1e8] sm:$0xff] }
 0x1f6   : > { %4970 = vmatpush3.msra.mxu1 %v3255_v7  ;;  %5098 = vmatprep.mubr.msk.f32.mxu0 %vm801_vm1, %v4445_v42  ;;  %v3201_v42 = vpop.xlane.xlu0 %3200  ;;  %v3265_v7 = vmul.f32 0.015625, %v6434_v9  ;;  %v4452_v9 = vld [vmem:[%s7436_s5 + $0x168] sm:$0xff] }
 0x1f7   : > { %4971 = vmatprep.subr.mxu1 %v3270_v10  ;;  %5122 = vmatprep.mubr.msk.f32.mxu1 %vm801_vm1, %v4461_v61  ;;  %v3153_v61 = vpop.xlane.xlu1 %3152  ;;  %v4467_v10 = vld [vmem:[%s7436_s5 + $0x1e0] sm:$0xff] }
 0x1f8   : > { %4972 = vmatpush3.msra.mxu1 %v3254_v37  ;;  %5099 = vmatmul.mubr.msk.f32.gmra.mxu0 %vm801_vm1, %v4446_v34  ;;  %v3264_v34 = vmul.f32 0.015625, %v6465_v50  ;;  %v3248_v37 = vmul.f32 0.015625, %v6473_v14  ;;  %v4453_v50 = vld [vmem:[%s7436_s5 + $0x170] sm:$0xff] }
 0x1f9   : > { %5123 = vmatmul.mubr.msk.f32.gmra.mxu1 %vm801_vm1, %v4462_v13  ;;  %4973 = vmatprep.subr.mxu1 %v3269_v8  ;;  %v3263_v13 = vmul.f32 0.015625, %v6499_v41  ;;  %v3247_v8 = vmul.f32 0.015625, %v6506_v58  ;;  %v4454_v41 = vld [vmem:[%s7436_s5 + $0x178] sm:$0xff] }
 0x1fa   : > { %4974 = vmatpush3.msra.mxu1 %v3253_v45  ;;  %5101 = vmatprep.mubr.msk.f32.mxu0 %vm801_vm1, %v4447_v21  ;;  %v3198_v14 = vpop.xlane.xlu0 %3197  ;;  %v4469_v21 = vld [vmem:[%s7436_s5 + $0x1f0] sm:$0xff]  ;;  %v3262_v45 = vmul.f32 0.015625, %v3204_v17  ;;  %v4470_v58 = vld [vmem:[%s7436_s5 + $0x1f8] sm:$0xff] }
 0x1fb   : > { %4975 = vmatprep.subr.mxu1 %v3268_v18  ;;  %5125 = vmatprep.mubr.msk.f32.mxu1 %vm801_vm1, %v4463_v25  ;;  %v3150_v25 = vpop.xlane.xlu1 %3149  ;;  %v3246_v18 = vmul.f32 0.015625, %v3156_v49  ;;  %v3260_v17 = vmul.f32 0.015625, %v3198_v14  ;;  %v3245_v49 = vmul.f32 0.015625, %v3153_v61  ;;  %v521_v61 = vld [vmem:[%s6452_s26 + $0xd8] sm:$0xff] }
 0x1fc   : > { %4976 = vmatpush3.msra.mxu1 %v3252_v33  ;;  %5102 = vmatmul.mubr.msk.f32.gmra.mxu0 %vm801_vm1, %v4448_v30  ;;  %v3261_v30 = vmul.f32 0.015625, %v3201_v42  ;;  %v4636_v33 = vld [vmem:[%s7435_s4 + $0x68] sm:$0xff]  ;;  %v522_v42 = vld [vmem:[%s6452_s26 + $0xe0] sm:$0xff]  ;;  %v501_v14 = vld [vmem:[%s6452_s26 + $0x38] sm:$0xff] }
 0x1fd   : > { %5126 = vmatmul.mubr.msk.f32.gmra.mxu1 %vm801_vm1, %v4464_v22  ;;  %4977 = vmatprep.subr.mxu1 %v3267_v54  ;;  %v3244_v22 = vmul.f32 0.015625, %v3150_v25  ;;  %v509_v54 = vld [vmem:[%s6452_s26 + $0x78] sm:$0xff]  ;;  %v499_v25 = vld [vmem:[%s6452_s26 + $0x28] sm:$0xff] }
 0x1fe   : > { %4978 = vmatpush3.msra.mxu1 %v3251_v29  ;;  %5104 = vmatprep.mubr.msk.f32.mxu0 %vm801_vm1, %v4449_v46  ;;  %v524_v46 = vld [vmem:[%s6452_s26 + $0xf0] sm:$0xff]  ;;  %v4635_v29 = vld [vmem:[%s7435_s4 + $0x60] sm:$0xff] }
 0x1ff   : > { %4979 = vmatprep.subr.mxu1 %v3266_v57  ;;  %5128 = vmatprep.mubr.msk.f32.mxu1 %vm801_vm1, %v4465_v53  ;;  %v508_v53 = vld [vmem:[%s6452_s26 + $0x70] sm:$0xff]  ;;  %v4638_v57 = vld [vmem:[%s7435_s4 + $0x78] sm:$0xff] }
 0x200   : > { %4980 = vmatpush3.msra.mxu1 %v3250_v1  ;;  %5105 = vmatmul.mubr.msk.f32.gmra.mxu0 %vm801_vm1, %v4450_v62  ;;  %v523_v62 = vld [vmem:[%s6452_s26 + $0xe8] sm:$0xff] }
 0x201   : > { %5129 = vmatmul.mubr.msk.f32.gmra.mxu1 %vm801_vm1, %v4466_v2  ;;  %4981 = vmatprep.subr.mxu1 %v3265_v7  ;;  %v507_v1 = vld [vmem:[%s6452_s26 + $0x68] sm:$0xff]  ;;  %v4637_v7 = vld [vmem:[%s7435_s4 + $0x70] sm:$0xff] }
 0x202   : > { %4982 = vmatpush3.msra.mxu1 %v3249_v38  ;;  %5107 = vmatprep.mubr.msk.f32.mxu0 %vm801_vm1, %v4451_v26  ;;  %v4536_v2 = vld [vmem:[%s7435_s4 + $0x48] sm:$0xff]  ;;  %v506_v26 = vld [vmem:[%s6452_s26 + $0x60] sm:$0xff]  ;;  %v505_v38 = vld [vmem:[%s6452_s26 + $0x58] sm:$0xff] }
 0x203   : > { %4983 = vmatprep.subr.mxu1 %v3264_v34  ;;  %5131 = vmatprep.mubr.msk.f32.mxu1 %vm801_vm1, %v4467_v10  ;;  %v520_v10 = vld [vmem:[%s6452_s26 + $0xd0] sm:$0xff] }
 0x204   : > { %4984 = vmatpush3.msra.mxu1 %v3248_v37  ;;  %5108 = vmatmul.mubr.msk.f32.gmra.mxu0 %vm801_vm1, %v4452_v9  ;;  %v504_v34 = vld [vmem:[%s6452_s26 + $0x50] sm:$0xff]  ;;  %v519_v9 = vld [vmem:[%s6452_s26 + $0xc8] sm:$0xff] }
 0x205   : > { %5132 = vmatmul.mubr.msk.f32.gmra.mxu1 %vm801_vm1, %v4468_v11  ;;  %4985 = vmatprep.subr.mxu1 %v3263_v13  ;;  %v503_v37 = vld [vmem:[%s6452_s26 + $0x48] sm:$0xff]  ;;  %v518_v11 = vld [vmem:[%s6452_s26 + $0xc0] sm:$0xff] }
 0x206   : > { %4986 = vmatpush3.msra.mxu1 %v3247_v8  ;;  %5110 = vmatprep.mubr.msk.f32.mxu0 %vm801_vm1, %v4453_v50  ;;  %v502_v13 = vld [vmem:[%s6452_s26 + $0x40] sm:$0xff]  ;;  %v5872_v50 = vmov 0   ;;  %v517_v8 = vld [vmem:[%s6452_s26 + $0xb8] sm:$0xff] }
 0x207   : > { %4987 = vmatprep.subr.mxu1 %v3262_v45  ;;  %5134 = vmatprep.mubr.msk.f32.mxu1 %vm801_vm1, %v4469_v21  ;;  %v516_v21 = vld [vmem:[%s6452_s26 + $0xb0] sm:$0xff] }
 0x208   : > { %4988 = vmatpush3.msra.mxu1 %v3246_v18  ;;  %5111 = vmatmul.mubr.msk.f32.gmra.mxu0 %vm801_vm1, %v4454_v41  ;;  %v500_v45 = vld [vmem:[%s6452_s26 + $0x30] sm:$0xff]  ;;  %v515_v41 = vld [vmem:[%s6452_s26 + $0xa8] sm:$0xff]  ;;  %v514_v18 = vld [vmem:[%s6452_s26 + $0xa0] sm:$0xff] }
 0x209   : > { %5135 = vmatmul.mubr.msk.f32.gmra.mxu1 %vm801_vm1, %v4470_v58  ;;  %4989 = vmatprep.subr.mxu1 %v3261_v30  ;;  %v498_v58 = vld [vmem:[%s6452_s26 + $0x20] sm:$0xff]  ;;  %v513_v30 = vld [vmem:[%s6452_s26 + $0x98] sm:$0xff] }
 0x20a   : > { %4990 = vmatpush3.msra.mxu1 %v3245_v49  ;;  %3345 = vmatprep.mubr.f32.mxu1 %v4636_v33  ;;  %v512_v33 = vld [vmem:[%s6452_s26 + $0x90] sm:$0xff] }
 0x20b   : > { %4991 = vmatprep.subr.mxu1 %v3260_v17  ;;  %4890 = vmatpush3.msra.mxu0 %v509_v54  ;;  %v497_v17 = vld [vmem:[%s6452_s26 + $0x18] sm:$0xff]  ;;  %v496_v49 = vld [vmem:[%s6452_s26 + $0x10] sm:$0xff]  ;;  %v495_v54 = vld [vmem:[%s6452_s26 + $0x8] sm:$0xff] }
 0x20c   : > { %4992 = vmatpush3.msra.mxu1 %v3244_v22  ;;  %4891 = vmatprep.subr.mxu0 %v524_v46  ;;  %v511_v22 = vld [vmem:[%s6452_s26 + $0x88] sm:$0xff]  ;;  %v510_v46 = vld [vmem:[%s6452_s26 + $0x80] sm:$0xff] }
 0x20d   : > { %3346 = vmatmul.mubr.f32.vlgmr.msra.gmra.mxu1 %v4635_v29  ;;  %4892 = vmatpush3.msra.mxu0 %v508_v53  ;;  %v494_v29 = vld [vmem:[%s6452_s26] sm:$0xff] }
 0x20e   : > { %3350 = vmatprep.mubr.f32.mxu1 %v4638_v57  ;;  %4893 = vmatprep.subr.mxu0 %v523_v62  ;;  %v4535_v53 = vld [vmem:[%s7435_s4 + $0x40] sm:$0xff]  ;;  %v4538_v57 = vld [vmem:[%s7435_s4 + $0x58] sm:$0xff]  ;;  %v4537_v62 = vld [vmem:[%s7435_s4 + $0x50] sm:$0xff] }
 0x20f   : > { %4894 = vmatpush3.msra.mxu0 %v507_v1  ;;  %2493 = vmatprep.mubr.f32.mxu0 %v4536_v2 }
 0x210   : > { %4895 = vmatprep.subr.mxu0 %v522_v42  ;;  %5254 = vset.pattern.permute.xlu1 %v5872_v50 }
 0x211   : > { %3351 = vmatmul.mubr.f32.gmra.mxu1 %v4637_v7  ;;  %4896 = vmatpush3.msra.mxu0 %v506_v26 }
 0x212   : > { %4897 = vmatprep.subr.mxu0 %v521_v61  ;;  %5255 = vset.pattern.permute.xlu0 %v5872_v50 }
 0x213   : > { %4898 = vmatpush3.msra.mxu0 %v505_v38 }
 0x214   : > { %4899 = vmatprep.subr.mxu0 %v520_v10 }
 0x215   : > { %4900 = vmatpush3.msra.mxu0 %v504_v34 }
 0x216   : > { %4901 = vmatprep.subr.mxu0 %v519_v9 }
 0x217   : > { %4902 = vmatpush3.msra.mxu0 %v503_v37 }
 0x218   : > { %4903 = vmatprep.subr.mxu0 %v518_v11 }
 0x219   : > { %4904 = vmatpush3.msra.mxu0 %v502_v13 }
 0x21a   : > { %4905 = vmatprep.subr.mxu0 %v517_v8 }
 0x21b   : > { %4906 = vmatpush3.msra.mxu0 %v501_v14  ;;  %v4639_v14 = vld [vmem:[%s7436_s5 + $0x300] sm:$0xff] }
 0x21c   : > { %4907 = vmatprep.subr.mxu0 %v516_v21  ;;  %5193 = vmatprep.mubr.msk.f32.mxu1 %vm801_vm1, %v4639_v14 }
 0x21d   : > { %4908 = vmatpush3.msra.mxu0 %v500_v45 }
 0x21e   : > { %4909 = vmatprep.subr.mxu0 %v515_v41 }
 0x21f   : > { %4910 = vmatpush3.msra.mxu0 %v499_v25 }
 0x220   : > { %4911 = vmatprep.subr.mxu0 %v514_v18 }
 0x221   : > { %4912 = vmatpush3.msra.mxu0 %v498_v58 }
 0x222   : > { %4913 = vmatprep.subr.mxu0 %v513_v30 }
 0x223   : > { %4914 = vmatpush3.msra.mxu0 %v497_v17 }
 0x224   : > { %4915 = vmatprep.subr.mxu0 %v512_v33 }
 0x225   : > { %4916 = vmatpush3.msra.mxu0 %v496_v49 }
 0x226   : > { %4917 = vmatprep.subr.mxu0 %v511_v22 }
 0x227   : > { %4918 = vmatpush3.msra.mxu0 %v495_v54 }
 0x228   : > { %4919 = vmatprep.subr.mxu0 %v510_v46 }
 0x229   : > { %4920 = vmatpush3.msra.mxu0 %v494_v29 }
 0x22a   : > { %2494 = vmatmul.mubr.f32.vlgmr.msra.gmra.mxu0 %v4535_v53 }
 0x22b   : > { %2498 = vmatprep.mubr.f32.mxu0 %v4538_v57 }
 0x22e   : > { %2499 = vmatmul.mubr.f32.gmra.mxu0 %v4537_v62 }
 0x26b   : > { %v5039_v1 = vpop.f32.mrf.mxu1 }
 0x26c   : > { %v4404_v2 = vmul.f32 -1.442695, %v5039_v1 }
 0x26d   : > { %v964_v42 = vpop.f32.mrf.mxu1 }
 0x26e   : > { %5256 = vpow2.f32 %v4404_v2  ;;  %v4403_v7 = vmul.f32 -1.442695, %v964_v42 }
 0x26f   : > { %v5042_v26 = vpop.f32.mrf.mxu1 }
 0x270   : > { %5258 = vpow2.f32 %v4403_v7  ;;  %v4406_v61 = vmul.f32 -1.442695, %v5042_v26 }
 0x271   : > { %v974_v38 = vpop.f32.mrf.mxu1 }
 0x272   : > { %5260 = vpow2.f32 %v4406_v61  ;;  %v4405_v10 = vmul.f32 -1.442695, %v974_v38 }
 0x273   : > { %v5045_v34 = vpop.f32.mrf.mxu1 }
 0x274   : > { %5262 = vpow2.f32 %v4405_v10  ;;  %v4408_v9 = vmul.f32 -1.442695, %v5045_v34 }
 0x275   : > { %v984_v37 = vpop.f32.mrf.mxu1 }
 0x276   : > { %5264 = vpow2.f32 %v4408_v9  ;;  %v4407_v11 = vmul.f32 -1.442695, %v984_v37 }
 0x277   : > { %v5048_v13 = vpop.f32.mrf.mxu1 }
 0x278   : > { %5266 = vpow2.f32 %v4407_v11  ;;  %v4410_v50 = vmul.f32 -1.442695, %v5048_v13 }
 0x279   : > { %v994_v8 = vpop.f32.mrf.mxu1 }
 0x27a   : > { %5268 = vpow2.f32 %v4410_v50  ;;  %v4409_v21 = vmul.f32 -1.442695, %v994_v8 }
 0x27b   : > { %v5257_v45 = vpop.eup %5256  ;;  %v5051_v41 = vpop.f32.mrf.mxu1 }
 0x27c   : > { %v1220_v25 = vadd.f32 1.0, %v5257_v45  ;;  %v4412_v18 = vmul.f32 -1.442695, %v5051_v41  ;;  %5270 = vpow2.f32 %v4409_v21 }
 0x27d   : > { %v5259_v58 = vpop.eup %5258  ;;  %v1004_v30 = vpop.f32.mrf.mxu1 }
 0x27e   : > { %5272 = vrcp.f32 %v1220_v25  ;;  %v1219_v17 = vadd.f32 1.0, %v5259_v58  ;;  %v4411_v33 = vmul.f32 -1.442695, %v1004_v30 }
 0x27f   : > { %v5261_v49 = vpop.eup %5260  ;;  %5274 = vpow2.f32 %v4412_v18  ;;  %v5054_v22 = vpop.f32.mrf.mxu1 }
 0x280   : > { %5276 = vrcp.f32 %v1219_v17  ;;  %v1222_v54 = vadd.f32 1.0, %v5261_v49  ;;  %v4414_v46 = vmul.f32 -1.442695, %v5054_v22 }
 0x281   : > { %v5263_v29 = vpop.eup %5262  ;;  %5278 = vpow2.f32 %v4411_v33  ;;  %v1014_v53 = vpop.f32.mrf.mxu1 }
 0x282   : > { %5280 = vrcp.f32 %v1222_v54  ;;  %v1221_v57 = vadd.f32 1.0, %v5263_v29  ;;  %v4413_v62 = vmul.f32 -1.442695, %v1014_v53 }
 0x283   : > { %v5265_v1 = vpop.eup %5264  ;;  %5282 = vpow2.f32 %v4414_v46  ;;  %v5057_v2 = vpop.f32.mrf.mxu1 }
 0x284   : > { %v1224_v42 = vadd.f32 1.0, %v5265_v1  ;;  %v4416_v7 = vmul.f32 -1.442695, %v5057_v2  ;;  %5284 = vpow2.f32 %v4413_v62 }
 0x285   : > { %v5267_v26 = vpop.eup %5266  ;;  %v1024_v61 = vpop.f32.mrf.mxu1  ;;  %5286 = vrcp.f32 %v1221_v57 }
 0x286   : > { %v1223_v38 = vadd.f32 1.0, %v5267_v26  ;;  %v4415_v10 = vmul.f32 -1.442695, %v1024_v61  ;;  %5288 = vpow2.f32 %v4416_v7 }
 0x287   : > { %v5269_v34 = vpop.eup %5268  ;;  %v5060_v9 = vpop.f32.mrf.mxu1  ;;  %5290 = vrcp.f32 %v1224_v42 }
 0x288   : > { %v1226_v37 = vadd.f32 1.0, %v5269_v34  ;;  %v4418_v11 = vmul.f32 -1.442695, %v5060_v9  ;;  %5292 = vpow2.f32 %v4415_v10 }
 0x289   : > { %v1034_v13 = vpop.f32.mrf.mxu1  ;;  %v5271_v50 = vpop.eup %5270  ;;  %5294 = vrcp.f32 %v1223_v38 }
 0x28a   : > { %v4417_v8 = vmul.f32 -1.442695, %v1034_v13  ;;  %5296 = vpow2.f32 %v4418_v11  ;;  %v1225_v18 = vadd.f32 1.0, %v5271_v50 }
 0x28b   : > { %v5273_v14 = vpop.eup %5272  ;;  %v5063_v21 = vpop.f32.mrf.mxu1  ;;  %5298 = vrcp.f32 %v1226_v37 }
 0x28c   : > { %v5275_v45 = vpop.eup %5274  ;;  %v4420_v41 = vmul.f32 -1.442695, %v5063_v21  ;;  %1322 = vperm.xlu1 %5254, %v5273_v14   ;;  %5300 = vpow2.f32 %v4417_v8 }
 0x28d   : > { %v5277_v25 = vpop.eup %5276  ;;  %v1228_v58 = vadd.f32 1.0, %v5275_v45  ;;  %v1044_v30 = vpop.f32.mrf.mxu1 }
 0x28e   : > { %v5279_v17 = vpop.eup %5278  ;;  %5302 = vpow2.f32 %v4420_v41  ;;  %v4419_v33 = vmul.f32 -1.442695, %v1044_v30  ;;  %1317 = vperm.xlu0 %5255, %v5277_v25  }
 0x28f   : > { %v5281_v49 = vpop.eup %5280  ;;  %5304 = vrcp.f32 %v1228_v58  ;;  %v5066_v22 = vpop.f32.mrf.mxu1  ;;  %v1227_v29 = vadd.f32 1.0, %v5279_v17 }
 0x290   : > { %v5283_v54 = vpop.eup %5282  ;;  %5306 = vpow2.f32 %v4419_v33  ;;  %v4422_v46 = vmul.f32 -1.442695, %v5066_v22  ;;  %1332 = vperm.xlu1 %5254, %v5281_v49  }
 0x291   : > { %5308 = vrcp.f32 %v1225_v18  ;;  %v1230_v53 = vadd.f32 1.0, %v5283_v54  ;;  %v1054_v57 = vpop.f32.mrf.mxu1  ;;  %v5285_v62 = vpop.eup %5284 }
 0x292   : > { %5310 = vpow2.f32 %v4422_v46  ;;  %v4421_v1 = vmul.f32 -1.442695, %v1054_v57  ;;  %v5287_v2 = vpop.eup %5286  ;;  %v1229_v38 = vadd.f32 1.0, %v5285_v62 }
 0x293   : > { %5312 = vrcp.f32 %v1230_v53  ;;  %v5069_v42 = vpop.f32.mrf.mxu1  ;;  %v5289_v7 = vpop.eup %5288 }
 0x294   : > { %5314 = vpow2.f32 %v4421_v1  ;;  %v4424_v26 = vmul.f32 -1.442695, %v5069_v42  ;;  %1327 = vperm.xlu1 %5254, %v5287_v2   ;;  %v5291_v61 = vpop.eup %5290  ;;  %v1232_v10 = vadd.f32 1.0, %v5289_v7 }
 0x295   : > { %5316 = vrcp.f32 %v1227_v29  ;;  %v1064_v34 = vpop.f32.mrf.mxu1  ;;  %v5293_v9 = vpop.eup %5292 }
 0x296   : > { %5318 = vpow2.f32 %v4424_v26  ;;  %v4423_v37 = vmul.f32 -1.442695, %v1064_v34  ;;  %v5295_v11 = vpop.eup %5294  ;;  %v1231_v21 = vadd.f32 1.0, %v5293_v9 }
 0x297   : > { %5320 = vrcp.f32 %v1232_v10  ;;  %v5072_v13 = vpop.f32.mrf.mxu1  ;;  %v5297_v50 = vpop.eup %5296 }
 0x298   : > { %5322 = vpow2.f32 %v4423_v37  ;;  %v4426_v8 = vmul.f32 -1.442695, %v5072_v13  ;;  %1342 = vperm.xlu1 %5254, %v5291_v61   ;;  %v5299_v14 = vpop.eup %5298  ;;  %v1234_v45 = vadd.f32 1.0, %v5297_v50 }
 0x299   : > { %5324 = vrcp.f32 %v1229_v38  ;;  %v1074_v41 = vpop.f32.mrf.mxu1  ;;  %v5301_v25 = vpop.eup %5300 }
 0x29a   : > { %5326 = vpow2.f32 %v4426_v8  ;;  %v4425_v18 = vmul.f32 -1.442695, %v1074_v41  ;;  %v1233_v33 = vadd.f32 1.0, %v5301_v25 }
 0x29b   : > { %v5303_v58 = vpop.eup %5302  ;;  %5328 = vrcp.f32 %v1234_v45  ;;  %v5075_v30 = vpop.f32.mrf.mxu1 }
 0x29c   : > { %v5305_v17 = vpop.eup %5304  ;;  %v1236_v49 = vadd.f32 1.0, %v5303_v58  ;;  %5330 = vpow2.f32 %v4425_v18  ;;  %v4428_v22 = vmul.f32 -1.442695, %v5075_v30  ;;  %1337 = vperm.xlu1 %5254, %v5295_v11  }
 0x29d   : > { %v5307_v54 = vpop.eup %5306  ;;  %5332 = vrcp.f32 %v1231_v21  ;;  %v1084_v46 = vpop.f32.mrf.mxu1  ;;  %1362 = vperm.xlu0 %5255, %v5305_v17  }
 0x29e   : > { %v5309_v29 = vpop.eup %5308  ;;  %5334 = vrcp.f32 %v1236_v49  ;;  %v4427_v53 = vmul.f32 -1.442695, %v1084_v46  ;;  %v1235_v2 = vadd.f32 1.0, %v5307_v54 }
 0x29f   : > { %v5311_v57 = vpop.eup %5310  ;;  %5336 = vpow2.f32 %v4428_v22  ;;  %v5078_v62 = vpop.f32.mrf.mxu1 }
 0x2a0   : > { %v5313_v1 = vpop.eup %5312  ;;  %5338 = vrcp.f32 %v1233_v33  ;;  %v1238_v42 = vadd.f32 1.0, %v5311_v57  ;;  %v4430_v7 = vmul.f32 -1.442695, %v5078_v62  ;;  %1352 = vperm.xlu1 %5254, %v5299_v14  }
 0x2a1   : > { %v5315_v26 = vpop.eup %5314  ;;  %5340 = vpow2.f32 %v4427_v53  ;;  %v1094_v61 = vpop.f32.mrf.mxu1  ;;  %1372 = vperm.xlu0 %5255, %v5313_v1  }
 0x2a2   : > { %v5317_v38 = vpop.eup %5316  ;;  %5342 = vrcp.f32 %v1238_v42  ;;  %v4429_v10 = vmul.f32 -1.442695, %v1094_v61  ;;  %v1237_v11 = vadd.f32 1.0, %v5315_v26 }
 0x2a3   : > { %v5319_v34 = vpop.eup %5318  ;;  %5344 = vpow2.f32 %v4430_v7  ;;  %v5081_v9 = vpop.f32.mrf.mxu1 }
 0x2a4   : > { %v5321_v37 = vpop.eup %5320  ;;  %5346 = vrcp.f32 %v1235_v2  ;;  %v1240_v13 = vadd.f32 1.0, %v5319_v34  ;;  %v4432_v50 = vmul.f32 -1.442695, %v5081_v9  ;;  %1347 = vperm.xlu1 %5254, %v5309_v29  }
 0x2a5   : > { %v5323_v8 = vpop.eup %5322  ;;  %5348 = vpow2.f32 %v4429_v10  ;;  %v1104_v21 = vpop.f32.mrf.mxu1  ;;  %1382 = vperm.xlu0 %5255, %v5321_v37  }
 0x2a6   : > { %v5325_v14 = vpop.eup %5324  ;;  %5350 = vrcp.f32 %v1240_v13  ;;  %v4431_v45 = vmul.f32 -1.442695, %v1104_v21  ;;  %v1239_v58 = vadd.f32 1.0, %v5323_v8 }
 0x2a7   : > { %v5327_v41 = vpop.eup %5326  ;;  %5352 = vpow2.f32 %v4432_v50  ;;  %v5084_v25 = vpop.f32.mrf.mxu1 }
 0x2a8   : > { %v5329_v18 = vpop.eup %5328  ;;  %5354 = vrcp.f32 %v1237_v11  ;;  %v1242_v30 = vadd.f32 1.0, %v5327_v41  ;;  %v4434_v17 = vmul.f32 -1.442695, %v5084_v25  ;;  %1357 = vperm.xlu1 %5254, %v5317_v38  }
 0x2a9   : > { %v5331_v33 = vpop.eup %5330  ;;  %5356 = vpow2.f32 %v4431_v45  ;;  %v1114_v49 = vpop.f32.mrf.mxu1  ;;  %1392 = vperm.xlu0 %5255, %v5329_v18  }
 0x2aa   : > { %v5333_v22 = vpop.eup %5332  ;;  %5358 = vrcp.f32 %v1242_v30  ;;  %v1241_v54 = vadd.f32 1.0, %v5331_v33  ;;  %v4433_v46 = vmul.f32 -1.442695, %v1114_v49 }
 0x2ab   : > { %v5335_v29 = vpop.eup %5334  ;;  %5360 = vpow2.f32 %v4434_v17 }
 0x2ac   : > { %v5337_v53 = vpop.eup %5336  ;;  %5362 = vrcp.f32 %v1239_v58  ;;  %v5091_v57 = vpop.f32.mrf.mxu0  ;;  %1367 = vperm.xlu1 %5254, %v5325_v14  }
 0x2ad   : > { %v5115_v62 = vpop.f32.mrf.mxu1  ;;  %v5339_v1 = vpop.eup %5338  ;;  %v1244_v2 = vadd.f32 1.0, %v5337_v53  ;;  %5364 = vpow2.f32 %v4433_v46  ;;  %v4504_v42 = vmul.f32 -1.442695, %v5091_v57  ;;  %1402 = vperm.xlu0 %5255, %v5335_v29  }
 0x2ae   : > { %v5341_v7 = vpop.eup %5340  ;;  %5366 = vrcp.f32 %v1241_v54  ;;  %v4520_v26 = vmul.f32 -1.442695, %v5115_v62  ;;  %v1976_v61 = vpop.f32.mrf.mxu0 }
 0x2af   : > { %v2056_v38 = vpop.f32.mrf.mxu1  ;;  %v5343_v10 = vpop.eup %5342  ;;  %5368 = vrcp.f32 %v1244_v2  ;;  %v1243_v34 = vadd.f32 1.0, %v5341_v7  ;;  %v4503_v37 = vmul.f32 -1.442695, %v1976_v61 }
 0x2b0   : > { %v5345_v9 = vpop.eup %5344  ;;  %5370 = vpow2.f32 %v4504_v42  ;;  %v5094_v11 = vpop.f32.mrf.mxu0  ;;  %1377 = vperm.xlu1 %5254, %v5333_v22   ;;  %v4519_v14 = vmul.f32 -1.442695, %v2056_v38 }
 0x2b1   : > { %v5347_v13 = vpop.eup %5346  ;;  %5372 = vrcp.f32 %v1243_v34  ;;  %v1246_v50 = vadd.f32 1.0, %v5345_v9  ;;  %v5118_v8 = vpop.f32.mrf.mxu1  ;;  %1412 = vperm.xlu0 %5255, %v5343_v10   ;;  %v4506_v58 = vmul.f32 -1.442695, %v5094_v11 }
 0x2b2   : > { %v5349_v21 = vpop.eup %5348  ;;  %5374 = vpow2.f32 %v4520_v26  ;;  %v1986_v30 = vpop.f32.mrf.mxu0  ;;  %v4522_v54 = vmul.f32 -1.442695, %v5118_v8 }
 0x2b3   : > { %v5351_v45 = vpop.eup %5350  ;;  %5376 = vrcp.f32 %v1246_v50  ;;  %v1245_v41 = vadd.f32 1.0, %v5349_v21  ;;  %v2066_v25 = vpop.f32.mrf.mxu1  ;;  %v4505_v62 = vmul.f32 -1.442695, %v1986_v30 }
 0x2b4   : > { %v5353_v18 = vpop.eup %5352  ;;  %5378 = vpow2.f32 %v4503_v37  ;;  %1387 = vperm.xlu1 %5254, %v5339_v1   ;;  %v5097_v2 = vpop.f32.mrf.mxu0  ;;  %v4521_v61 = vmul.f32 -1.442695, %v2066_v25 }
 0x2b5   : > { %v5355_v17 = vpop.eup %5354  ;;  %5380 = vrcp.f32 %v1245_v41  ;;  %v1248_v33 = vadd.f32 1.0, %v5353_v18  ;;  %v5121_v49 = vpop.f32.mrf.mxu1  ;;  %1422 = vperm.xlu0 %5255, %v5351_v45   ;;  %v4508_v34 = vmul.f32 -1.442695, %v5097_v2 }
 0x2b6   : > { %v5357_v22 = vpop.eup %5356  ;;  %5382 = vpow2.f32 %v4519_v14  ;;  %v1996_v11 = vpop.f32.mrf.mxu0 }
 0x2b7   : > { %v5359_v46 = vpop.eup %5358  ;;  %5384 = vrcp.f32 %v1248_v33  ;;  %v1247_v29 = vadd.f32 1.0, %v5357_v22  ;;  %v2076_v53 = vpop.f32.mrf.mxu1  ;;  %v4507_v41 = vmul.f32 -1.442695, %v1996_v11 }
 0x2b8   : > { %v5361_v57 = vpop.eup %5360  ;;  %5386 = vpow2.f32 %v4506_v58  ;;  %1397 = vperm.xlu1 %5254, %v5347_v13   ;;  %v4524_v13 = vmul.f32 -1.442695, %v5121_v49  ;;  %v5100_v30 = vpop.f32.mrf.mxu0  ;;  %v4523_v33 = vmul.f32 -1.442695, %v2076_v53 }
 0x2b9   : > { %v5363_v42 = vpop.eup %5362  ;;  %5388 = vrcp.f32 %v1247_v29  ;;  %v1250_v1 = vadd.f32 1.0, %v5361_v57  ;;  %v5124_v7 = vpop.f32.mrf.mxu1  ;;  %1432 = vperm.xlu0 %5255, %v5359_v46   ;;  %v4510_v29 = vmul.f32 -1.442695, %v5100_v30 }
 0x2ba   : > { %v5365_v26 = vpop.eup %5364  ;;  %5390 = vpow2.f32 %v4522_v54 }
 0x2bb   : > { %v5367_v38 = vpop.eup %5366  ;;  %5392 = vrcp.f32 %v1250_v1  ;;  %v1249_v10 = vadd.f32 1.0, %v5365_v26  ;;  %v2086_v9 = vpop.f32.mrf.mxu1  ;;  %v4526_v26 = vmul.f32 -1.442695, %v5124_v7 }
 0x2bc   : > { %v5369_v37 = vpop.eup %5368  ;;  %5394 = vpow2.f32 %v4505_v62  ;;  %1407 = vperm.xlu1 %5254, %v5355_v17   ;;  %v2006_v1 = vpop.f32.mrf.mxu0 }
 0x2bd   : > { %v5371_v50 = vpop.eup %5370  ;;  %5396 = vrcp.f32 %v1249_v10  ;;  %v6663_v8 = vpop.f32.mrf.mxu1  ;;  %1442 = vperm.xlu0 %5255, %v5369_v37   ;;  %v4509_v37 = vmul.f32 -1.442695, %v2006_v1 }
 0x2be   : > { %v5373_v21 = vpop.eup %5372  ;;  %v2232_v14 = vadd.f32 1.0, %v5371_v50  ;;  %5398 = vpow2.f32 %v4521_v61  ;;  %v4528_v1 = vmul.f32 -1.442695, %v6663_v8 }
 0x2bf   : > { %v5375_v45 = vpop.eup %5374  ;;  %5400 = vpow2.f32 %v4508_v34  ;;  %v6665_v25 = vpop.f32.mrf.mxu1 }
 0x2c0   : > { %v5377_v18 = vpop.eup %5376  ;;  %5402 = vrcp.f32 %v2232_v14  ;;  %v2248_v58 = vadd.f32 1.0, %v5375_v45  ;;  %1417 = vperm.xlu1 %5254, %v5363_v42   ;;  %v5103_v14 = vpop.f32.mrf.mxu0  ;;  %v4525_v45 = vmul.f32 -1.442695, %v2086_v9 }
 0x2c1   : > { %v5379_v17 = vpop.eup %5378  ;;  %5404 = vpow2.f32 %v4524_v13  ;;  %v6667_v49 = vpop.f32.mrf.mxu1  ;;  %1452 = vperm.xlu0 %5255, %v5377_v18  }
 0x2c2   : > { %v5381_v22 = vpop.eup %5380  ;;  %5406 = vrcp.f32 %v2248_v58  ;;  %v2231_v54 = vadd.f32 1.0, %v5379_v17 }
 0x2c3   : > { %v5383_v46 = vpop.eup %5382  ;;  %5408 = vpow2.f32 %v4507_v41  ;;  %v6669_v57 = vpop.f32.mrf.mxu1 }
 0x2c4   : > { %v5385_v62 = vpop.eup %5384  ;;  %5410 = vrcp.f32 %v2231_v54  ;;  %v2247_v2 = vadd.f32 1.0, %v5383_v46  ;;  %1427 = vperm.xlu1 %5254, %v5367_v38   ;;  %v4512_v54 = vmul.f32 -1.442695, %v5103_v14  ;;  %v2016_v46 = vpop.f32.mrf.mxu0 }
 0x2c5   : > { %v5387_v42 = vpop.eup %5386  ;;  %5412 = vpow2.f32 %v4523_v33  ;;  %v6671_v53 = vpop.f32.mrf.mxu1  ;;  %1462 = vperm.xlu0 %5255, %v5385_v62  }
 0x2c6   : > { %v5389_v61 = vpop.eup %5388  ;;  %5414 = vrcp.f32 %v2247_v2  ;;  %v2234_v10 = vadd.f32 1.0, %v5387_v42 }
 0x2c7   : > { %v5391_v34 = vpop.eup %5390  ;;  %5416 = vpow2.f32 %v4510_v29  ;;  %v6673_v11 = vpop.f32.mrf.mxu1 }
 0x2c8   : > { %v5393_v50 = vpop.eup %5392  ;;  %5418 = vrcp.f32 %v2234_v10  ;;  %v2250_v13 = vadd.f32 1.0, %v5391_v34  ;;  %1437 = vperm.xlu1 %5254, %v5373_v21  }
 0x2c9   : > { %v5395_v38 = vpop.eup %5394  ;;  %5420 = vpow2.f32 %v4526_v26  ;;  %v6675_v7 = vpop.f32.mrf.mxu1  ;;  %1472 = vperm.xlu0 %5255, %v5393_v50  }
 0x2ca   : > { %v5397_v41 = vpop.eup %5396  ;;  %5422 = vrcp.f32 %v2250_v13  ;;  %v2233_v18 = vadd.f32 1.0, %v5395_v38  ;;  %v5106_v50 = vpop.f32.mrf.mxu0 }
 0x2cb   : > { %v5399_v58 = vpop.eup %5398  ;;  %5424 = vpow2.f32 %v4509_v37  ;;  %v6677_v30 = vpop.f32.mrf.mxu1 }
 0x2cc   : > { %v5401_v17 = vpop.eup %5400  ;;  %5426 = vrcp.f32 %v2233_v18  ;;  %v2249_v33 = vadd.f32 1.0, %v5399_v58  ;;  %1447 = vperm.xlu1 %5254, %v5381_v22   ;;  %v4527_v58 = vmul.f32 -1.442695, %v6665_v25 }
 0x2cd   : > { %v5403_v21 = vpop.eup %5402  ;;  %v2236_v29 = vadd.f32 1.0, %v5401_v17  ;;  %5428 = vpow2.f32 %v4525_v45  ;;  %v4993_v9 = vpop.f32.mrf.mxu1 }
 0x2ce   : > { %v5405_v62 = vpop.eup %5404  ;;  %v2328_v2 = vmul.f32 %v5403_v21, %v6244_v0  ;;  %5430 = vrcp.f32 %v2249_v33  ;;  %v4511_v0 = vmul.f32 -1.442695, %v2016_v46  ;;  %v4514_v33 = vmul.f32 -1.442695, %v5106_v50 }
 0x2cf   : > { %v5407_v42 = vpop.eup %5406  ;;  %5432 = vrcp.f32 %v2236_v29  ;;  %v2252_v22 = vadd.f32 1.0, %v5405_v62  ;;  %v4994_v26 = vpop.f32.mrf.mxu1 }
 0x2d0   : > { %v5409_v10 = vpop.eup %5408  ;;  %v2360_v34 = vadd.f32 %v5403_v21, %v2328_v2  ;;  %v2344_v37 = vmul.f32 %v5407_v42, %v6242_v63  ;;  %5434 = vpow2.f32 %v4512_v54  ;;  %1457 = vperm.xlu1 %5254, %v5389_v61   ;;  %v4995_v54 = vadd.f32 %v4994_v26, %v4993_v9  ;;  %v2026_v62 = vpop.f32.mrf.mxu0 }
 0x2d1   : > { %v5411_v8 = vpop.eup %5410  ;;  %5436 = vrcp.f32 %v2252_v22  ;;  %v2235_v13 = vadd.f32 1.0, %v5409_v10  ;;  %v4996_v14 = vpop.f32.mrf.mxu1 }
 0x2d2   : > { %v5413_v38 = vpop.eup %5412  ;;  %2393 = vst.msk [vmem:[%s6685_s22 + $0x8] sm:$0xff] %vm2391_vm2, %v2360_v34  ;;  %v2376_v45 = vadd.f32 %v5407_v42, %v2344_v37  ;;  %v2327_v18 = vmul.f32 %v5411_v8, %v6250_v6  ;;  %5438 = vpow2.f32 %v4528_v1  ;;  %v4539_v6 = vld [vmem:[%s7436_s5 + $0x200] sm:$0xff]  ;;  %v4530_v1 = vmul.f32 -1.442695, %v6667_v49  ;;  %v5109_v50 = vpop.f32.mrf.mxu0 }
 0x2d3   : > { %v5415_v17 = vpop.eup %5414  ;;  %5440 = vrcp.f32 %v2235_v13  ;;  %v2251_v63 = vadd.f32 1.0, %v5413_v38  ;;  %v4997_v61 = vpop.f32.mrf.mxu1  ;;  %5141 = vmatprep.mubr.msk.f32.mxu0 %vm801_vm1, %v4539_v6  ;;  %v4513_v34 = vmul.f32 -1.442695, %v2026_v62  ;;  %v4642_v62 = vld [vmem:[%s7436_s5 + $0x318] sm:$0xff] }
 0x2d4   : > { %v5417_v46 = vpop.eup %5416  ;;  %2409 = vst.msk [vmem:[%s6685_s22 + $0x88] sm:$0xff] %vm2391_vm2, %v2376_v45  ;;  %v2359_v21 = vadd.f32 %v5411_v8, %v2327_v18  ;;  %v2343_v29 = vmul.f32 %v5415_v17, %v6248_v5  ;;  %5442 = vpow2.f32 %v4511_v0  ;;  %v4998_v2 = vadd.f32 %v4997_v61, %v4996_v14  ;;  %1467 = vperm.xlu1 %5254, %v5397_v41   ;;  %v4640_v14 = vld [vmem:[%s7436_s5 + $0x308] sm:$0xff] }
 0x2d5   : > { %v5419_v25 = vpop.eup %5418  ;;  %5444 = vrcp.f32 %v2251_v63  ;;  %v2238_v9 = vadd.f32 1.0, %v5417_v46  ;;  %v3356_v8 = vmax.f32 %v4995_v54, 0.0  ;;  %v2036_v46 = vpop.f32.mrf.mxu0 }
 0x2d6   : > { %v5421_v42 = vpop.eup %5420  ;;  %2392 = vst.msk [vmem:[%s6685_s22] sm:$0xff] %vm2391_vm2, %v2359_v21  ;;  %v2375_v5 = vadd.f32 %v5415_v17, %v2343_v29  ;;  %v2330_v22 = vmul.f32 %v5419_v25, %v6232_v56  ;;  %5446 = vpow2.f32 %v4527_v58  ;;  %v3357_v41 = vmax.f32 %v4998_v2, 0.0  ;;  %v4641_v58 = vld [vmem:[%s7436_s5 + $0x310] sm:$0xff] }
 0x2d7   : > { %v5423_v26 = vpop.eup %5422  ;;  %5448 = vrcp.f32 %v2238_v9  ;;  %v2254_v10 = vadd.f32 1.0, %v5421_v42  ;;  %v4532_v29 = vmul.f32 -1.442695, %v6671_v53 }
 0x2d8   : > { %v5425_v37 = vpop.eup %5424  ;;  %2408 = vst.msk [vmem:[%s6685_s22 + $0x80] sm:$0xff] %vm2391_vm2, %v2375_v5  ;;  %v2362_v0 = vadd.f32 %v5419_v25, %v2330_v22  ;;  %v2346_v49 = vmul.f32 %v5423_v26, %v6230_v55  ;;  %5450 = vpow2.f32 %v4514_v33  ;;  %5189 = vmatprep.subr.mxu1 %v3357_v41  ;;  %v4529_v55 = vmul.f32 -1.442695, %v6669_v57  ;;  %v5112_v22 = vpop.f32.mrf.mxu0 }
 0x2d9   : > { %v5427_v13 = vpop.eup %5426  ;;  %5452 = vrcp.f32 %v2254_v10  ;;  %v2237_v56 = vadd.f32 1.0, %v5425_v37  ;;  %5190 = vmatpush3.msra.mxu1 %v3357_v41  ;;  %v4516_v33 = vmul.f32 -1.442695, %v5109_v50 }
 0x2da   : > { %v5429_v38 = vpop.eup %5428  ;;  %2395 = vst.msk [vmem:[%s6685_s22 + $0x18] sm:$0xff] %vm2391_vm2, %v2362_v0  ;;  %v2378_v45 = vadd.f32 %v5423_v26, %v2346_v49  ;;  %v2329_v18 = vmul.f32 %v5427_v13, %v6238_v60  ;;  %5454 = vpow2.f32 %v4530_v1  ;;  %5191 = vmatprep.subr.mxu1 %v3356_v8  ;;  %v4515_v1 = vmul.f32 -1.442695, %v2036_v46  ;;  %v4645_v49 = vld [vmem:[%s7436_s5 + $0x330] sm:$0xff] }
 0x2db   : > { %v5431_v17 = vpop.eup %5430  ;;  %5456 = vrcp.f32 %v2237_v56  ;;  %v2253_v63 = vadd.f32 1.0, %v5429_v38  ;;  %5192 = vmatpush3.msra.mxu1 %v3356_v8  ;;  %v4518_v8 = vmul.f32 -1.442695, %v5112_v22 }
 0x2dc   : > { %v5433_v54 = vpop.eup %5432  ;;  %2411 = vst.msk [vmem:[%s6685_s22 + $0x98] sm:$0xff] %vm2391_vm2, %v2378_v45  ;;  %v2361_v61 = vadd.f32 %v5427_v13, %v2329_v18  ;;  %v2345_v60 = vmul.f32 %v5431_v17, %v6236_v59  ;;  %5458 = vpow2.f32 %v4513_v34  ;;  %5194 = vmatmul.mubr.msk.f32.vlgmr.msra.gmra.mxu1 %vm801_vm1, %v4640_v14  ;;  %v4644_v34 = vld [vmem:[%s7436_s5 + $0x328] sm:$0xff]  ;;  %v2046_v14 = vpop.f32.mrf.mxu0 }
 0x2dd   : > { %v5435_v57 = vpop.eup %5434  ;;  %v2332_v21 = vmul.f32 %v5433_v54, %v6220_v48  ;;  %5460 = vrcp.f32 %v2253_v63  ;;  %5196 = vmatprep.mubr.msk.f32.mxu1 %vm801_vm1, %v4641_v58  ;;  %v4643_v48 = vld [vmem:[%s7436_s5 + $0x320] sm:$0xff] }
 0x2de   : > { %v5437_v2 = vpop.eup %5436  ;;  %2394 = vst.msk [vmem:[%s6685_s22 + $0x10] sm:$0xff] %vm2391_vm2, %v2361_v61  ;;  %v2377_v59 = vadd.f32 %v5431_v17, %v2345_v60  ;;  %v2240_v6 = vadd.f32 1.0, %v5435_v57  ;;  %5462 = vpow2.f32 %v4529_v55  ;;  %v4534_v55 = vmul.f32 -1.442695, %v6675_v7  ;;  %v4647_v63 = vld [vmem:[%s7436_s5 + $0x340] sm:$0xff] }
 0x2df   : > { %v5439_v25 = vpop.eup %5438  ;;  %v2364_v9 = vadd.f32 %v5433_v54, %v2332_v21  ;;  %v2348_v53 = vmul.f32 %v5437_v2, %v6218_v47  ;;  %5464 = vpow2.f32 %v4516_v33  ;;  %v4531_v47 = vmul.f32 -1.442695, %v6673_v11 }
 0x2e0   : > { %v5441_v42 = vpop.eup %5440  ;;  %2410 = vst.msk [vmem:[%s6685_s22 + $0x90] sm:$0xff] %vm2391_vm2, %v2377_v59  ;;  %5466 = vrcp.f32 %v2240_v6  ;;  %v2256_v5 = vadd.f32 1.0, %v5439_v25  ;;  %5197 = vmatmul.mubr.msk.f32.gmra.mxu1 %vm801_vm1, %v4642_v62  ;;  %v4517_v54 = vmul.f32 -1.442695, %v2046_v14  ;;  %v4649_v59 = vld [vmem:[%s7436_s5 + $0x350] sm:$0xff] }
 0x2e1   : > { %v5443_v41 = vpop.eup %5442  ;;  %2397 = vst.msk [vmem:[%s6685_s22 + $0x28] sm:$0xff] %vm2391_vm2, %v2364_v9  ;;  %v2380_v26 = vadd.f32 %v5437_v2, %v2348_v53  ;;  %v2331_v10 = vmul.f32 %v5441_v42, %v6226_v52  ;;  %5468 = vpow2.f32 %v4532_v29  ;;  %5199 = vmatprep.mubr.msk.f32.mxu1 %vm801_vm1, %v4643_v48  ;;  %v4533_v29 = vmul.f32 -1.442695, %v6677_v30 }
 0x2e2   : > { %v5445_v37 = vpop.eup %5444  ;;  %5470 = vrcp.f32 %v2256_v5  ;;  %v2239_v0 = vadd.f32 1.0, %v5443_v41 }
 0x2e3   : > { %v5447_v50 = vpop.eup %5446  ;;  %2413 = vst.msk [vmem:[%s6685_s22 + $0xa8] sm:$0xff] %vm2391_vm2, %v2380_v26  ;;  %v2363_v52 = vadd.f32 %v5441_v42, %v2331_v10  ;;  %v2347_v11 = vmul.f32 %v5445_v37, %v6224_v51  ;;  %5472 = vpow2.f32 %v4515_v1  ;;  %v4646_v51 = vld [vmem:[%s7436_s5 + $0x338] sm:$0xff]  ;;  %v4651_v26 = vld [vmem:[%s7436_s5 + $0x360] sm:$0xff] }
 0x2e4   : > { %v5449_v13 = vpop.eup %5448  ;;  %5474 = vrcp.f32 %v2239_v0  ;;  %v2255_v56 = vadd.f32 1.0, %v5447_v50  ;;  %5200 = vmatmul.mubr.msk.f32.gmra.mxu1 %vm801_vm1, %v4644_v34 }
 0x2e5   : > { %v5451_v38 = vpop.eup %5450  ;;  %2396 = vst.msk [vmem:[%s6685_s22 + $0x20] sm:$0xff] %vm2391_vm2, %v2363_v52  ;;  %v2379_v45 = vadd.f32 %v5445_v37, %v2347_v11  ;;  %v2334_v18 = vmul.f32 %v5449_v13, %v6208_v40  ;;  %5476 = vpow2.f32 %v4531_v47  ;;  %5202 = vmatprep.mubr.msk.f32.mxu1 %vm801_vm1, %v4645_v49 }
 0x2e6   : > { %v5453_v58 = vpop.eup %5452  ;;  %5478 = vrcp.f32 %v2255_v56  ;;  %v2242_v17 = vadd.f32 1.0, %v5451_v38  ;;  %v4653_v38 = vld [vmem:[%s7436_s5 + $0x370] sm:$0xff] }
 0x2e7   : > { %v5455_v33 = vpop.eup %5454  ;;  %2412 = vst.msk [vmem:[%s6685_s22 + $0xa0] sm:$0xff] %vm2391_vm2, %v2379_v45  ;;  %v2366_v40 = vadd.f32 %v5449_v13, %v2334_v18  ;;  %v2350_v7 = vmul.f32 %v5453_v58, %v6206_v39  ;;  %5480 = vpow2.f32 %v4518_v8  ;;  %v4648_v39 = vld [vmem:[%s7436_s5 + $0x348] sm:$0xff] }
 0x2e8   : > { %v5457_v61 = vpop.eup %5456  ;;  %5482 = vrcp.f32 %v2242_v17  ;;  %v2258_v60 = vadd.f32 1.0, %v5455_v33  ;;  %5203 = vmatmul.mubr.msk.f32.gmra.mxu1 %vm801_vm1, %v4646_v51  ;;  %v4652_v8 = vld [vmem:[%s7436_s5 + $0x368] sm:$0xff] }
 0x2e9   : > { %v5459_v46 = vpop.eup %5458  ;;  %2399 = vst.msk [vmem:[%s6685_s22 + $0x38] sm:$0xff] %vm2391_vm2, %v2366_v40  ;;  %v2382_v57 = vadd.f32 %v5453_v58, %v2350_v7  ;;  %v2333_v21 = vmul.f32 %v5457_v61, %v6214_v44  ;;  %5484 = vpow2.f32 %v4534_v55  ;;  %5205 = vmatprep.mubr.msk.f32.mxu1 %vm801_vm1, %v4647_v63  ;;  %v4654_v40 = vld [vmem:[%s7436_s5 + $0x378] sm:$0xff] }
 0x2ea   : > { %v5461_v62 = vpop.eup %5460  ;;  %5486 = vrcp.f32 %v2258_v60  ;;  %v2241_v2 = vadd.f32 1.0, %v5459_v46  ;;  %v4921_v6 = vpop.f32.mrf.mxu0  ;;  %v4540_v60 = vld [vmem:[%s7436_s5 + $0x208] sm:$0xff] }
 0x2eb   : > { %v5463_v48 = vpop.eup %5462  ;;  %2415 = vst.msk [vmem:[%s6685_s22 + $0xb8] sm:$0xff] %vm2391_vm2, %v2382_v57  ;;  %v2365_v44 = vadd.f32 %v5457_v61, %v2333_v21  ;;  %v2349_v30 = vmul.f32 %v5461_v62, %v6212_v43  ;;  %5488 = vpow2.f32 %v4517_v54  ;;  %v4650_v43 = vld [vmem:[%s7436_s5 + $0x358] sm:$0xff]  ;;  %v4541_v21 = vld [vmem:[%s7436_s5 + $0x210] sm:$0xff] }
 0x2ec   : > { %v5465_v25 = vpop.eup %5464  ;;  %5490 = vrcp.f32 %v2241_v2  ;;  %v2257_v9 = vadd.f32 1.0, %v5463_v48  ;;  %5206 = vmatmul.mubr.msk.f32.gmra.mxu1 %vm801_vm1, %v4648_v39  ;;  %v4922_v53 = vpop.f32.mrf.mxu0 }
 0x2ed   : > { %v5467_v1 = vpop.eup %5466  ;;  %2398 = vst.msk [vmem:[%s6685_s22 + $0x30] sm:$0xff] %vm2391_vm2, %v2365_v44  ;;  %v2381_v42 = vadd.f32 %v5461_v62, %v2349_v30  ;;  %v2244_v5 = vadd.f32 1.0, %v5465_v25  ;;  %5492 = vpow2.f32 %v4533_v29  ;;  %5208 = vmatprep.mubr.msk.f32.mxu1 %vm801_vm1, %v4649_v59  ;;  %v4923_v37 = vadd.f32 %v4922_v53, %v4921_v6  ;;  %v4656_v59 = vld [vmem:[%s7436_s5 + $0x388] sm:$0xff]  ;;  %v4657_v44 = vld [vmem:[%s7436_s5 + $0x390] sm:$0xff]  ;;  %v4542_v30 = vld [vmem:[%s7436_s5 + $0x218] sm:$0xff] }
 0x2ee   : > { %v5469_v22 = vpop.eup %5468  ;;  %v2336_v41 = vmul.f32 %v5467_v1, %v6196_v32  ;;  %5494 = vrcp.f32 %v2257_v9  ;;  %v4924_v10 = vpop.f32.mrf.mxu0  ;;  %v4543_v53 = vld [vmem:[%s7436_s5 + $0x220] sm:$0xff] }
 0x2ef   : > { %v5471_v47 = vpop.eup %5470  ;;  %2414 = vst.msk [vmem:[%s6685_s22 + $0xb0] sm:$0xff] %vm2391_vm2, %v2381_v42  ;;  %5496 = vrcp.f32 %v2244_v5  ;;  %v2260_v34 = vadd.f32 1.0, %v5469_v22  ;;  %v2504_v55 = vmax.f32 %v4923_v37, 0.0 }
 0x2f0   : > { %v5473_v0 = vpop.eup %5472  ;;  %v2368_v49 = vadd.f32 %v5467_v1, %v2336_v41  ;;  %v2352_v50 = vmul.f32 %v5471_v47, %v6194_v31  ;;  %5209 = vmatmul.mubr.msk.f32.gmra.mxu1 %vm801_vm1, %v4650_v43  ;;  %v4925_v32 = vpop.f32.mrf.mxu0  ;;  %v4658_v43 = vld [vmem:[%s7436_s5 + $0x398] sm:$0xff] }
 0x2f1   : > { %v5475_v52 = vpop.eup %5474  ;;  %5498 = vrcp.f32 %v2260_v34  ;;  %v2243_v11 = vadd.f32 1.0, %v5473_v0  ;;  %5211 = vmatprep.mubr.msk.f32.mxu1 %vm801_vm1, %v4651_v26  ;;  %v4926_v13 = vadd.f32 %v4925_v32, %v4924_v10  ;;  %v4546_v32 = vld [vmem:[%s7436_s5 + $0x238] sm:$0xff] }
 0x2f2   : > { %v5477_v56 = vpop.eup %5476  ;;  %2401 = vst.msk [vmem:[%s6685_s22 + $0x48] sm:$0xff] %vm2391_vm2, %v2368_v49  ;;  %v2384_v14 = vadd.f32 %v5471_v47, %v2352_v50  ;;  %v2335_v31 = vmul.f32 %v5475_v52, %v6202_v36  ;;  %v4545_v47 = vld [vmem:[%s7436_s5 + $0x230] sm:$0xff] }
 0x2f3   : > { %v5479_v45 = vpop.eup %5478  ;;  %5500 = vrcp.f32 %v2243_v11  ;;  %v2259_v18 = vadd.f32 1.0, %v5477_v56  ;;  %v2505_v51 = vmax.f32 %v4926_v13, 0.0  ;;  %v4661_v50 = vld [vmem:[%s7436_s5 + $0x3b0] sm:$0xff]  ;;  %v4547_v11 = vld [vmem:[%s7436_s5 + $0x240] sm:$0xff] }
 0x2f4   : > { %v5481_v58 = vpop.eup %5480  ;;  %2417 = vst.msk [vmem:[%s6685_s22 + $0xc8] sm:$0xff] %vm2391_vm2, %v2384_v14  ;;  %v2367_v17 = vadd.f32 %v5475_v52, %v2335_v31  ;;  %v2351_v63 = vmul.f32 %v5479_v45, %v6200_v35  ;;  %5212 = vmatmul.mubr.msk.f32.gmra.mxu1 %vm801_vm1, %v4652_v8  ;;  %v4655_v35 = vld [vmem:[%s7436_s5 + $0x380] sm:$0xff] }
 0x2f5   : > { %v5483_v33 = vpop.eup %5482  ;;  %5502 = vrcp.f32 %v2259_v18  ;;  %v2246_v36 = vadd.f32 1.0, %v5481_v58  ;;  %5214 = vmatprep.mubr.msk.f32.mxu1 %vm801_vm1, %v4653_v38  ;;  %5137 = vmatprep.subr.mxu0 %v2505_v51  ;;  %v4663_v31 = vld [vmem:[%s7436_s5 + $0x3c0] sm:$0xff]  ;;  %v5768_v58 = vld [vmem:[%s5937_s14 + $0x8] sm:$0xff] }
 0x2f6   : > { %v5485_v7 = vpop.eup %5484  ;;  %2400 = vst.msk [vmem:[%s6685_s22 + $0x40] sm:$0xff] %vm2391_vm2, %v2367_v17  ;;  %v2383_v54 = vadd.f32 %v5479_v45, %v2351_v63  ;;  %v2338_v61 = vmul.f32 %v5483_v33, %v6184_v24  ;;  %5138 = vmatpush3.msra.mxu0 %v2505_v51 }
 0x2f7   : > { %v5487_v46 = vpop.eup %5486  ;;  %5504 = vrcp.f32 %v2246_v36  ;;  %v2262_v57 = vadd.f32 1.0, %v5485_v7  ;;  %5139 = vmatprep.subr.mxu0 %v2504_v55 }
 0x2f8   : > { %v5489_v29 = vpop.eup %5488  ;;  %2416 = vst.msk [vmem:[%s6685_s22 + $0xc0] sm:$0xff] %vm2391_vm2, %v2383_v54  ;;  %v2370_v24 = vadd.f32 %v5483_v33, %v2338_v61  ;;  %v2354_v39 = vmul.f32 %v5487_v46, %v6182_v23  ;;  %5215 = vmatmul.mubr.msk.f32.gmra.mxu1 %vm801_vm1, %v4654_v40  ;;  %5140 = vmatpush3.msra.mxu0 %v2504_v55  ;;  %v4549_v55 = vld [vmem:[%s7436_s5 + $0x250] sm:$0xff]  ;;  %v5769_v54 = vld [vmem:[%s5937_s14] sm:$0xff] }
 0x2f9   : > { %v5491_v62 = vpop.eup %5490  ;;  %5506 = vrcp.f32 %v2262_v57  ;;  %v2245_v2 = vadd.f32 1.0, %v5489_v29  ;;  %5217 = vmatprep.mubr.msk.f32.mxu1 %vm801_vm1, %v4655_v35  ;;  %5142 = vmatmul.mubr.msk.f32.vlgmr.msra.gmra.mxu0 %vm801_vm1, %v4540_v60  ;;  %v4550_v35 = vld [vmem:[%s7436_s5 + $0x258] sm:$0xff]  ;;  %v4551_v29 = vld [vmem:[%s7436_s5 + $0x260] sm:$0xff] }
 0x2fa   : > { %v5493_v6 = vpop.eup %5492  ;;  %2403 = vst.msk [vmem:[%s6685_s22 + $0x58] sm:$0xff] %vm2391_vm2, %v2370_v24  ;;  %v2386_v48 = vadd.f32 %v5487_v46, %v2354_v39  ;;  %v2337_v23 = vmul.f32 %v5491_v62, %v6190_v28  ;;  %5144 = vmatprep.mubr.msk.f32.mxu0 %vm801_vm1, %v4541_v21  ;;  %v7443_v46 = vld [vmem:[#allocation2_spill] sm:$0xff]  ;;  %v5770_v24 = vld [vmem:[%s5937_s14 + $0x18] sm:$0xff] }
 0x2fb   : > { %v5495_v25 = vpop.eup %5494  ;;  %5508 = vrcp.f32 %v2245_v2  ;;  %v2261_v9 = vadd.f32 1.0, %v5493_v6  ;;  %v4667_v6 = vld [vmem:[%s7436_s5 + $0x3e0] sm:$0xff] }
 0x2fc   : > { %v5497_v1 = vpop.eup %5496  ;;  %2419 = vst.msk [vmem:[%s6685_s22 + $0xd8] sm:$0xff] %vm2391_vm2, %v2386_v48  ;;  %v2369_v28 = vadd.f32 %v5491_v62, %v2337_v23  ;;  %v2353_v42 = vmul.f32 %v5495_v25, %v6188_v27  ;;  %5218 = vmatmul.mubr.msk.f32.gmra.mxu1 %vm801_vm1, %v4656_v59  ;;  %v4659_v27 = vld [vmem:[%s7436_s5 + $0x3a0] sm:$0xff]  ;;  %v4666_v59 = vld [vmem:[%s7436_s5 + $0x3d8] sm:$0xff]  ;;  %v4552_v23 = vld [vmem:[%s7436_s5 + $0x268] sm:$0xff] }
 0x2fd   : > { %v2340_v5 = vmul.f32 %v5497_v1, %v6172_v16  ;;  %5510 = vrcp.f32 %v2261_v9  ;;  %5220 = vmatprep.mubr.msk.f32.mxu1 %vm801_vm1, %v4657_v44  ;;  %5145 = vmatmul.mubr.msk.f32.gmra.mxu0 %vm801_vm1, %v4542_v30  ;;  %v4544_v16 = vld [vmem:[%s7436_s5 + $0x228] sm:$0xff]  ;;  %v4553_v30 = vld [vmem:[%s7436_s5 + $0x270] sm:$0xff] }
 0x2fe   : > { %v5499_v22 = vpop.eup %5498  ;;  %2402 = vst.msk [vmem:[%s6685_s22 + $0x50] sm:$0xff] %vm2391_vm2, %v2369_v28  ;;  %v2385_v41 = vadd.f32 %v5495_v25, %v2353_v42  ;;  %5147 = vmatprep.mubr.msk.f32.mxu0 %vm801_vm1, %v4543_v53  ;;  %v5771_v25 = vld [vmem:[%s5937_s14 + $0x10] sm:$0xff]  ;;  %v4668_v53 = vld [vmem:[%s7436_s5 + $0x3e8] sm:$0xff]  ;;  %v4554_v42 = vld [vmem:[%s7436_s5 + $0x278] sm:$0xff] }
 0x2ff   : > { %v2372_v26 = vadd.f32 %v5497_v1, %v2340_v5  ;;  %v2356_v10 = vmul.f32 %v5499_v22, %v6170_v15  ;;  %v4660_v15 = vld [vmem:[%s7436_s5 + $0x3a8] sm:$0xff]  ;;  %v4669_v1 = vld [vmem:[%s7436_s5 + $0x3f0] sm:$0xff] }
 0x300   : > { %v5501_v34 = vpop.eup %5500  ;;  %2418 = vst.msk [vmem:[%s6685_s22 + $0xd0] sm:$0xff] %vm2391_vm2, %v2385_v41  ;;  %5221 = vmatmul.mubr.msk.f32.gmra.mxu1 %vm801_vm1, %v4658_v43  ;;  %v4555_v43 = vld [vmem:[%s7436_s5 + $0x280] sm:$0xff] }
 0x301   : > { %2405 = vst.msk [vmem:[%s6685_s22 + $0x68] sm:$0xff] %vm2391_vm2, %v2372_v26  ;;  %v2388_v37 = vadd.f32 %v5499_v22, %v2356_v10  ;;  %v2339_v0 = vmul.f32 %v5501_v34, %v6178_v20  ;;  %5223 = vmatprep.mubr.msk.f32.mxu1 %vm801_vm1, %v4659_v27  ;;  %5148 = vmatmul.mubr.msk.f32.gmra.mxu0 %vm801_vm1, %v4544_v16  ;;  %v5772_v22 = vld [vmem:[%s5937_s14 + $0x28] sm:$0xff]  ;;  %v4670_v27 = vld [vmem:[%s7436_s5 + $0x3f8] sm:$0xff] }
 0x302   : > { %v5503_v49 = vpop.eup %5502  ;;  %5150 = vmatprep.mubr.msk.f32.mxu0 %vm801_vm1, %v4545_v47  ;;  %v4556_v26 = vld [vmem:[%s7436_s5 + $0x288] sm:$0xff]  ;;  %v4557_v47 = vld [vmem:[%s7436_s5 + $0x290] sm:$0xff] }
 0x303   : > { %2421 = vst.msk [vmem:[%s6685_s22 + $0xe8] sm:$0xff] %vm2391_vm2, %v2388_v37  ;;  %v2371_v20 = vadd.f32 %v5501_v34, %v2339_v0  ;;  %v2355_v52 = vmul.f32 %v5503_v49, %v6176_v19  ;;  %v4662_v19 = vld [vmem:[%s7436_s5 + $0x3b8] sm:$0xff]  ;;  %v5773_v34 = vld [vmem:[%s5937_s14 + $0x20] sm:$0xff] }
 0x304   : > { %v5505_v8 = vpop.eup %5504  ;;  %5224 = vmatmul.mubr.msk.f32.gmra.mxu1 %vm801_vm1, %v4660_v15  ;;  %v5774_v15 = vld [vmem:[%s5937_s14 + $0x48] sm:$0xff] }
 0x305   : > { %2404 = vst.msk [vmem:[%s6685_s22 + $0x60] sm:$0xff] %vm2391_vm2, %v2371_v20  ;;  %v2387_v13 = vadd.f32 %v5503_v49, %v2355_v52  ;;  %v2342_v56 = vmul.f32 %v5505_v8, %v6152_v4  ;;  %5226 = vmatprep.mubr.msk.f32.mxu1 %vm801_vm1, %v4661_v50  ;;  %5151 = vmatmul.mubr.msk.f32.gmra.mxu0 %vm801_vm1, %v4546_v32  ;;  %v4548_v4 = vld [vmem:[%s7436_s5 + $0x248] sm:$0xff]  ;;  %v4558_v32 = vld [vmem:[%s7436_s5 + $0x298] sm:$0xff] }
 0x306   : > { %v5507_v14 = vpop.eup %5506  ;;  %5153 = vmatprep.mubr.msk.f32.mxu0 %vm801_vm1, %v4547_v11  ;;  %v4559_v11 = vld [vmem:[%s7436_s5 + $0x2a0] sm:$0xff] }
 0x307   : > { %2420 = vst.msk [vmem:[%s6685_s22 + $0xe0] sm:$0xff] %vm2391_vm2, %v2387_v13  ;;  %v2374_v38 = vadd.f32 %v5505_v8, %v2342_v56  ;;  %v2358_v45 = vmul.f32 %v5507_v14, %v6150_v3  ;;  %v1323_v18 = vpop.permute.xlu1 %1322  ;;  %v4664_v3 = vld [vmem:[%s7436_s5 + $0x3c8] sm:$0xff]  ;;  %v5775_v8 = vld [vmem:[%s5937_s14 + $0x38] sm:$0xff] }
 0x308   : > { %v5509_v51 = vpop.eup %5508  ;;  %5227 = vmatmul.mubr.msk.f32.gmra.mxu1 %vm801_vm1, %v4662_v19  ;;  %v1476_v17 = vmul.f32 %v5768_v58, %v1323_v18  ;;  %v5776_v19 = vld [vmem:[%s5937_s14 + $0x58] sm:$0xff] }
 0x309   : > { %2407 = vst.msk [vmem:[%s6685_s22 + $0x78] sm:$0xff] %vm2391_vm2, %v2374_v38  ;;  %v2390_v63 = vadd.f32 %v5507_v14, %v2358_v45  ;;  %v2341_v33 = vmul.f32 %v5509_v51, %v6166_v12  ;;  %5229 = vmatprep.mubr.msk.f32.mxu1 %vm801_vm1, %v4663_v31  ;;  %v1318_v36 = vpop.permute.xlu0 %1317  ;;  %5154 = vmatmul.mubr.msk.f32.gmra.mxu0 %vm801_vm1, %v4548_v4  ;;  %v4665_v12 = vld [vmem:[%s7436_s5 + $0x3d0] sm:$0xff]  ;;  %v4560_v4 = vld [vmem:[%s7436_s5 + $0x2a8] sm:$0xff] }
 0x30a   : > { %v5511_v40 = vpop.eup %5510  ;;  %v1508_v7 = vadd.f32 %v1476_v17, %v1323_v18  ;;  %v1475_v61 = vmul.f32 %v5769_v54, %v1318_v36  ;;  %5156 = vmatprep.mubr.msk.f32.mxu0 %vm801_vm1, %v4549_v55  ;;  %v4561_v18 = vld [vmem:[%s7436_s5 + $0x2b0] sm:$0xff]  ;;  %v5778_v17 = vld [vmem:[%s5937_s14 + $0x68] sm:$0xff] }
 0x30b   : > { %2423 = vst.msk [vmem:[%s6685_s22 + $0xf8] sm:$0xff] %vm2391_vm2, %v2390_v63  ;;  %v2373_v60 = vadd.f32 %v5509_v51, %v2341_v33  ;;  %v2357_v57 = vmul.f32 %v5511_v40, %v7443_v46  ;;  %v1333_v21 = vpop.permute.xlu1 %1332  ;;  %v5777_v55 = vld [vmem:[%s5937_s14 + $0x30] sm:$0xff] }
 0x30c   : > { %5230 = vmatmul.mubr.msk.f32.gmra.mxu1 %vm801_vm1, %v4664_v3  ;;  %1540 = vst.msk [vmem:[%s6928_s21 + $0x8] sm:$0xff] %vm558_vm0, %v1508_v7  ;;  %v1478_v39 = vmul.f32 %v5770_v24, %v1333_v21  ;;  %v1507_v62 = vadd.f32 %v1475_v61, %v1318_v36  ;;  %v4562_v3 = vld [vmem:[%s7436_s5 + $0x2b8] sm:$0xff]  ;;  %v5779_v7 = vld [vmem:[%s5937_s14 + $0x40] sm:$0xff]  ;;  %v4565_v24 = vld [vmem:[%s7436_s5 + $0x2d0] sm:$0xff] }
 0x30d   : > { %2406 = vst.msk [vmem:[%s6685_s22 + $0x70] sm:$0xff] %vm2391_vm2, %v2373_v60  ;;  %v2389_v2 = vadd.f32 %v5511_v40, %v2357_v57  ;;  %5232 = vmatprep.mubr.msk.f32.mxu1 %vm801_vm1, %v4665_v12  ;;  %5157 = vmatmul.mubr.msk.f32.gmra.mxu0 %vm801_vm1, %v4550_v35  ;;  %v4563_v12 = vld [vmem:[%s7436_s5 + $0x2c0] sm:$0xff]  ;;  %v5780_v35 = vld [vmem:[%s5937_s14 + $0x78] sm:$0xff]  ;;  %v4564_v57 = vld [vmem:[%s7436_s5 + $0x2c8] sm:$0xff] }
 0x30e   : > { %v1510_v48 = vadd.f32 %v1478_v39, %v1333_v21  ;;  %1539 = vst.msk [vmem:[%s6928_s21] sm:$0xff] %vm558_vm0, %v1507_v62  ;;  %5159 = vmatprep.mubr.msk.f32.mxu0 %vm801_vm1, %v4551_v29  ;;  %v5781_v39 = vld [vmem:[%s5937_s14 + $0x50] sm:$0xff] }
 0x30f   : > { %2422 = vst.msk [vmem:[%s6685_s22 + $0xf0] sm:$0xff] %vm2391_vm2, %v2389_v2  ;;  %v1328_v44 = vpop.permute.xlu1 %1327 }
 0x310   : > { %5233 = vmatmul.mubr.msk.f32.gmra.mxu1 %vm801_vm1, %v4666_v59  ;;  %1542 = vst.msk [vmem:[%s6928_s21 + $0x18] sm:$0xff] %vm558_vm0, %v1510_v48  ;;  %v1477_v9 = vmul.f32 %v5771_v25, %v1328_v44  ;;  %v5782_v59 = vld [vmem:[%s5937_s14 + $0x88] sm:$0xff]  ;;  %v4567_v25 = vld [vmem:[%s7436_s5 + $0x2e0] sm:$0xff] }
 0x311   : > { %5235 = vmatprep.mubr.msk.f32.mxu1 %vm801_vm1, %v4667_v6  ;;  %5160 = vmatmul.mubr.msk.f32.gmra.mxu0 %vm801_vm1, %v4552_v23  ;;  %v4566_v23 = vld [vmem:[%s7436_s5 + $0x2d8] sm:$0xff] }
 0x312   : > { %v1509_v28 = vadd.f32 %v1477_v9, %v1328_v44  ;;  %5162 = vmatprep.mubr.msk.f32.mxu0 %vm801_vm1, %v4553_v30  ;;  %v5783_v9 = vld [vmem:[%s5937_s14 + $0x60] sm:$0xff] }
 0x313   : > { %v1343_v5 = vpop.permute.xlu1 %1342 }
 0x314   : > { %5236 = vmatmul.mubr.msk.f32.gmra.mxu1 %vm801_vm1, %v4668_v53  ;;  %1541 = vst.msk [vmem:[%s6928_s21 + $0x10] sm:$0xff] %vm558_vm0, %v1509_v28  ;;  %v1480_v41 = vmul.f32 %v5772_v22, %v1343_v5  ;;  %v5784_v28 = vld [vmem:[%s5937_s14 + $0x98] sm:$0xff] }
 0x315   : > { %5238 = vmatprep.mubr.msk.f32.mxu1 %vm801_vm1, %v4669_v1  ;;  %5163 = vmatmul.mubr.msk.f32.gmra.mxu0 %vm801_vm1, %v4554_v42 }
 0x316   : > { %v1512_v16 = vadd.f32 %v1480_v41, %v1343_v5  ;;  %5165 = vmatprep.mubr.msk.f32.mxu0 %vm801_vm1, %v4555_v43  ;;  %v4568_v43 = vld [vmem:[%s7436_s5 + $0x2e8] sm:$0xff] }
 0x317   : > { %v1338_v10 = vpop.permute.xlu1 %1337 }
 0x318   : > { %5239 = vmatmul.mubr.msk.f32.gmra.mxu1 %vm801_vm1, %v4670_v27  ;;  %1544 = vst.msk [vmem:[%s6928_s21 + $0x28] sm:$0xff] %vm558_vm0, %v1512_v16  ;;  %v1479_v37 = vmul.f32 %v5773_v34, %v1338_v10  ;;  %v1363_v0 = vpop.permute.xlu0 %1362  ;;  %v4569_v27 = vld [vmem:[%s7436_s5 + $0x2f0] sm:$0xff] }
 0x319   : > { %v1484_v49 = vmul.f32 %v5774_v15, %v1363_v0  ;;  %5166 = vmatmul.mubr.msk.f32.gmra.mxu0 %vm801_vm1, %v4556_v26  ;;  %v5785_v16 = vld [vmem:[%s5937_s14 + $0x70] sm:$0xff] }
 0x31a   : > { %v1511_v50 = vadd.f32 %v1479_v37, %v1338_v10  ;;  %5168 = vmatprep.mubr.msk.f32.mxu0 %vm801_vm1, %v4557_v47  ;;  %v5786_v47 = vld [vmem:[%s5937_s14 + $0xa8] sm:$0xff] }
 0x31b   : > { %v1353_v20 = vpop.permute.xlu1 %1352  ;;  %v1516_v52 = vadd.f32 %v1484_v49, %v1363_v0  ;;  %v4570_v0 = vld [vmem:[%s7436_s5 + $0x2f8] sm:$0xff] }
 0x31c   : > { %1543 = vst.msk [vmem:[%s6928_s21 + $0x20] sm:$0xff] %vm558_vm0, %v1511_v50  ;;  %v1482_v13 = vmul.f32 %v5775_v8, %v1353_v20  ;;  %v1373_v56 = vpop.permute.xlu0 %1372  ;;  %v5787_v50 = vld [vmem:[%s5937_s14 + $0x80] sm:$0xff] }
 0x31d   : > { %1548 = vst.msk [vmem:[%s6928_s21 + $0x48] sm:$0xff] %vm558_vm0, %v1516_v52  ;;  %v1486_v14 = vmul.f32 %v5776_v19, %v1373_v56  ;;  %5169 = vmatmul.mubr.msk.f32.gmra.mxu0 %vm801_vm1, %v4558_v32  ;;  %v5788_v52 = vld [vmem:[%s5937_s14 + $0xb8] sm:$0xff]  ;;  %v5789_v19 = vld [vmem:[%s5937_s14 + $0x90] sm:$0xff] }
 0x31e   : > { %v1514_v31 = vadd.f32 %v1482_v13, %v1353_v20  ;;  %5171 = vmatprep.mubr.msk.f32.mxu0 %vm801_vm1, %v4559_v11 }
 0x31f   : > { %v1348_v38 = vpop.permute.xlu1 %1347  ;;  %v1518_v45 = vadd.f32 %v1486_v14, %v1373_v56 }
 0x320   : > { %1546 = vst.msk [vmem:[%s6928_s21 + $0x38] sm:$0xff] %vm558_vm0, %v1514_v31  ;;  %v1481_v51 = vmul.f32 %v5777_v55, %v1348_v38  ;;  %v1383_v58 = vpop.permute.xlu0 %1382 }
 0x321   : > { %1550 = vst.msk [vmem:[%s6928_s21 + $0x58] sm:$0xff] %vm558_vm0, %v1518_v45  ;;  %v1488_v63 = vmul.f32 %v5778_v17, %v1383_v58  ;;  %5172 = vmatmul.mubr.msk.f32.gmra.mxu0 %vm801_vm1, %v4560_v4  ;;  %v5790_v4 = vld [vmem:[%s5937_s14 + $0xc8] sm:$0xff] }
 0x322   : > { %v1513_v33 = vadd.f32 %v1481_v51, %v1348_v38  ;;  %5174 = vmatprep.mubr.msk.f32.mxu0 %vm801_vm1, %v4561_v18  ;;  %v5791_v51 = vld [vmem:[%s5937_s14 + $0xa0] sm:$0xff] }
 0x323   : > { %v1358_v36 = vpop.permute.xlu1 %1357  ;;  %v1520_v40 = vadd.f32 %v1488_v63, %v1383_v58  ;;  %v5792_v63 = vld [vmem:[%s5937_s14 + $0xd8] sm:$0xff] }
 0x324   : > { %1545 = vst.msk [vmem:[%s6928_s21 + $0x30] sm:$0xff] %vm558_vm0, %v1513_v33  ;;  %v1483_v54 = vmul.f32 %v5779_v7, %v1358_v36  ;;  %v1393_v61 = vpop.permute.xlu0 %1392 }
 0x325   : > { %1552 = vst.msk [vmem:[%s6928_s21 + $0x68] sm:$0xff] %vm558_vm0, %v1520_v40  ;;  %v1490_v60 = vmul.f32 %v5780_v35, %v1393_v61  ;;  %5175 = vmatmul.mubr.msk.f32.gmra.mxu0 %vm801_vm1, %v4562_v3 }
 0x326   : > { %v1515_v46 = vadd.f32 %v1483_v54, %v1358_v36  ;;  %5177 = vmatprep.mubr.msk.f32.mxu0 %vm801_vm1, %v4563_v12  ;;  %v5793_v12 = vld [vmem:[%s5937_s14 + $0xb0] sm:$0xff] }
 0x327   : > { %v1368_v21 = vpop.permute.xlu1 %1367  ;;  %v1522_v29 = vadd.f32 %v1490_v60, %v1393_v61  ;;  %v5794_v61 = vld [vmem:[%s5937_s14 + $0xe8] sm:$0xff] }
 0x328   : > { %1547 = vst.msk [vmem:[%s6928_s21 + $0x40] sm:$0xff] %vm558_vm0, %v1515_v46  ;;  %v1485_v62 = vmul.f32 %v5781_v39, %v1368_v21  ;;  %v1403_v2 = vpop.permute.xlu0 %1402  ;;  %v5796_v39 = vld [vmem:[%s5937_s14 + $0xf8] sm:$0xff] }
 0x329   : > { %1554 = vst.msk [vmem:[%s6928_s21 + $0x78] sm:$0xff] %vm558_vm0, %v1522_v29  ;;  %v1492_v6 = vmul.f32 %v5782_v59, %v1403_v2  ;;  %5178 = vmatmul.mubr.msk.f32.gmra.mxu0 %vm801_vm1, %v4564_v57 }
 0x32a   : > { %v1517_v48 = vadd.f32 %v1485_v62, %v1368_v21  ;;  %5180 = vmatprep.mubr.msk.f32.mxu0 %vm801_vm1, %v4565_v24  ;;  %v5795_v21 = vld [vmem:[%s5937_s14 + $0xc0] sm:$0xff] }
 0x32b   : > { %v1378_v44 = vpop.permute.xlu1 %1377  ;;  %v1524_v30 = vadd.f32 %v1492_v6, %v1403_v2 }
 0x32c   : > { %1549 = vst.msk [vmem:[%s6928_s21 + $0x50] sm:$0xff] %vm558_vm0, %v1517_v48  ;;  %v1487_v53 = vmul.f32 %v5783_v9, %v1378_v44  ;;  %v1413_v1 = vpop.permute.xlu0 %1412  ;;  %v5797_v48 = vld [vmem:[%s5937_s14 + $0xd0] sm:$0xff] }
 0x32d   : > { %1556 = vst.msk [vmem:[%s6928_s21 + $0x88] sm:$0xff] %vm558_vm0, %v1524_v30  ;;  %v1494_v42 = vmul.f32 %v5784_v28, %v1413_v1  ;;  %5181 = vmatmul.mubr.msk.f32.gmra.mxu0 %vm801_vm1, %v4566_v23  ;;  %v5799_v28 = vld [vmem:[%s5937_s14 + $0xf0] sm:$0xff] }
 0x32e   : > { %v1519_v5 = vadd.f32 %v1487_v53, %v1378_v44  ;;  %5183 = vmatprep.mubr.msk.f32.mxu0 %vm801_vm1, %v4567_v25  ;;  %v5798_v25 = vld [vmem:[%s5937_s14 + $0xe0] sm:$0xff] }
 0x32f   : > { %v1388_v22 = vpop.permute.xlu1 %1387  ;;  %v1526_v41 = vadd.f32 %v1494_v42, %v1413_v1 }
 0x330   : > { %1551 = vst.msk [vmem:[%s6928_s21 + $0x60] sm:$0xff] %vm558_vm0, %v1519_v5  ;;  %v1489_v26 = vmul.f32 %v5785_v16, %v1388_v22  ;;  %v1423_v10 = vpop.permute.xlu0 %1422 }
 0x331   : > { %1558 = vst.msk [vmem:[%s6928_s21 + $0x98] sm:$0xff] %vm558_vm0, %v1526_v41  ;;  %v1496_v34 = vmul.f32 %v5786_v47, %v1423_v10  ;;  %5184 = vmatmul.mubr.msk.f32.gmra.mxu0 %vm801_vm1, %v4568_v43 }
 0x332   : > { %v1521_v37 = vadd.f32 %v1489_v26, %v1388_v22  ;;  %5186 = vmatprep.mubr.msk.f32.mxu0 %vm801_vm1, %v4569_v27 }
 0x333   : > { %v1398_v15 = vpop.permute.xlu1 %1397  ;;  %v1528_v49 = vadd.f32 %v1496_v34, %v1423_v10 }
 0x334   : > { %1553 = vst.msk [vmem:[%s6928_s21 + $0x70] sm:$0xff] %vm558_vm0, %v1521_v37  ;;  %v1491_v32 = vmul.f32 %v5787_v50, %v1398_v15  ;;  %v1433_v20 = vpop.permute.xlu0 %1432 }
 0x335   : > { %1560 = vst.msk [vmem:[%s6928_s21 + $0xa8] sm:$0xff] %vm558_vm0, %v1528_v49  ;;  %v1498_v11 = vmul.f32 %v5788_v52, %v1433_v20  ;;  %5187 = vmatmul.mubr.msk.f32.gmra.mxu0 %vm801_vm1, %v4570_v0 }
 0x336   : > { %v1523_v8 = vadd.f32 %v1491_v32, %v1398_v15 }
 0x337   : > { %v1408_v13 = vpop.permute.xlu1 %1407  ;;  %v1530_v56 = vadd.f32 %v1498_v11, %v1433_v20 }
 0x338   : > { %1555 = vst.msk [vmem:[%s6928_s21 + $0x80] sm:$0xff] %vm558_vm0, %v1523_v8  ;;  %v1493_v14 = vmul.f32 %v5789_v19, %v1408_v13  ;;  %v1443_v31 = vpop.permute.xlu0 %1442 }
 0x339   : > { %1562 = vst.msk [vmem:[%s6928_s21 + $0xb8] sm:$0xff] %vm558_vm0, %v1530_v56  ;;  %v1500_v38 = vmul.f32 %v5790_v4, %v1443_v31 }
 0x33a   : > { %v1525_v45 = vadd.f32 %v1493_v14, %v1408_v13 }
 0x33b   : > { %v1418_v18 = vpop.permute.xlu1 %1417  ;;  %v1532_v55 = vadd.f32 %v1500_v38, %v1443_v31 }
 0x33c   : > { %1557 = vst.msk [vmem:[%s6928_s21 + $0x90] sm:$0xff] %vm558_vm0, %v1525_v45  ;;  %v1495_v58 = vmul.f32 %v5791_v51, %v1418_v18  ;;  %v1453_v17 = vpop.permute.xlu0 %1452 }
 0x33d   : > { %1564 = vst.msk [vmem:[%s6928_s21 + $0xc8] sm:$0xff] %vm558_vm0, %v1532_v55  ;;  %v1502_v33 = vmul.f32 %v5792_v63, %v1453_v17 }
 0x33e   : > { %v1527_v3 = vadd.f32 %v1495_v58, %v1418_v18 }
 0x33f   : > { %v1428_v36 = vpop.permute.xlu1 %1427  ;;  %v1534_v40 = vadd.f32 %v1502_v33, %v1453_v17 }
 0x340   : > { %1559 = vst.msk [vmem:[%s6928_s21 + $0xa0] sm:$0xff] %vm558_vm0, %v1527_v3  ;;  %v1497_v7 = vmul.f32 %v5793_v12, %v1428_v36  ;;  %v1463_v54 = vpop.permute.xlu0 %1462 }
 0x341   : > { %1566 = vst.msk [vmem:[%s6928_s21 + $0xd8] sm:$0xff] %vm558_vm0, %v1534_v40  ;;  %v1504_v35 = vmul.f32 %v5794_v61, %v1463_v54 }
 0x342   : > { %v1529_v60 = vadd.f32 %v1497_v7, %v1428_v36 }
 0x343   : > { %v1438_v46 = vpop.permute.xlu1 %1437  ;;  %v1536_v57 = vadd.f32 %v1504_v35, %v1463_v54 }
 0x344   : > { %1561 = vst.msk [vmem:[%s6928_s21 + $0xb0] sm:$0xff] %vm558_vm0, %v1529_v60  ;;  %v1499_v29 = vmul.f32 %v5795_v21, %v1438_v46  ;;  %v1473_v24 = vpop.permute.xlu0 %1472 }
 0x345   : > { %1568 = vst.msk [vmem:[%s6928_s21 + $0xe8] sm:$0xff] %vm558_vm0, %v1536_v57  ;;  %v1506_v62 = vmul.f32 %v5796_v39, %v1473_v24 }
 0x346   : > { %v1531_v2 = vadd.f32 %v1499_v29, %v1438_v46 }
 0x347   : > { %v1448_v59 = vpop.permute.xlu1 %1447  ;;  %v1538_v6 = vadd.f32 %v1506_v62, %v1473_v24 }
 0x348   : > { %1563 = vst.msk [vmem:[%s6928_s21 + $0xc0] sm:$0xff] %vm558_vm0, %v1531_v2  ;;  %v1501_v23 = vmul.f32 %v5797_v48, %v1448_v59 }
 0x349   : > { %1570 = vst.msk [vmem:[%s6928_s21 + $0xf8] sm:$0xff] %vm558_vm0, %v1538_v6 }
 0x34a   : > { %v1533_v44 = vadd.f32 %v1501_v23, %v1448_v59 }
 0x34b   : > { %v1458_v30 = vpop.permute.xlu1 %1457 }
 0x34c   : > { %1565 = vst.msk [vmem:[%s6928_s21 + $0xd0] sm:$0xff] %vm558_vm0, %v1533_v44  ;;  %v1503_v9 = vmul.f32 %v5798_v25, %v1458_v30 }
 0x34e   : > { %v1535_v53 = vadd.f32 %v1503_v9, %v1458_v30 }
 0x34f   : > { %v1468_v1 = vpop.permute.xlu1 %1467 }
 0x350   : > { %1567 = vst.msk [vmem:[%s6928_s21 + $0xe0] sm:$0xff] %vm558_vm0, %v1535_v53  ;;  %v1505_v42 = vmul.f32 %v5799_v28, %v1468_v1 }
 0x352   : > { %v1537_v5 = vadd.f32 %v1505_v42, %v1468_v1 }
 0x354   : > { %1569 = vst.msk [vmem:[%s6928_s21 + $0xf0] sm:$0xff] %vm558_vm0, %v1537_v5 }
 0x39c   : > { %v5195_v43 = vpop.f32.mrf.mxu1 }
 0x39d   : > { %v4704_v22 = vmul.f32 -1.442695, %v5195_v43 }
 0x39e   : > { %v3553_v41 = vpop.f32.mrf.mxu1 }
 0x39f   : > { %5512 = vpow2.f32 %v4704_v22  ;;  %v4703_v27 = vmul.f32 -1.442695, %v3553_v41 }
 0x3a0   : > { %v5198_v16 = vpop.f32.mrf.mxu1 }
 0x3a1   : > { %5514 = vpow2.f32 %v4703_v27  ;;  %v4706_v26 = vmul.f32 -1.442695, %v5198_v16 }
 0x3a2   : > { %v3563_v10 = vpop.f32.mrf.mxu1 }
 0x3a3   : > { %5516 = vpow2.f32 %v4706_v26  ;;  %v4705_v47 = vmul.f32 -1.442695, %v3563_v10 }
 0x3a4   : > { %v5201_v34 = vpop.f32.mrf.mxu1 }
 0x3a5   : > { %5518 = vpow2.f32 %v4705_v47  ;;  %v4708_v37 = vmul.f32 -1.442695, %v5201_v34 }
 0x3a6   : > { %v3573_v0 = vpop.f32.mrf.mxu1 }
 0x3a7   : > { %5520 = vpow2.f32 %v4708_v37  ;;  %v4707_v15 = vmul.f32 -1.442695, %v3573_v0 }
 0x3a8   : > { %v5204_v49 = vpop.f32.mrf.mxu1 }
 0x3a9   : > { %5522 = vpow2.f32 %v4707_v15  ;;  %v4710_v50 = vmul.f32 -1.442695, %v5204_v49 }
 0x3aa   : > { %v3583_v32 = vpop.f32.mrf.mxu1 }
 0x3ab   : > { %5524 = vpow2.f32 %v4710_v50  ;;  %v4709_v20 = vmul.f32 -1.442695, %v3583_v32 }
 0x3ac   : > { %v5513_v52 = vpop.eup %5512  ;;  %v5207_v11 = vpop.f32.mrf.mxu1 }
 0x3ad   : > { %v3809_v8 = vadd.f32 1.0, %v5513_v52  ;;  %5526 = vpow2.f32 %v4709_v20  ;;  %v4712_v13 = vmul.f32 -1.442695, %v5207_v11 }
 0x3ae   : > { %v5515_v56 = vpop.eup %5514  ;;  %v3593_v19 = vpop.f32.mrf.mxu1 }
 0x3af   : > { %5528 = vrcp.f32 %v3809_v8  ;;  %v3808_v14 = vadd.f32 1.0, %v5515_v56  ;;  %v4711_v31 = vmul.f32 -1.442695, %v3593_v19 }
 0x3b0   : > { %v5517_v4 = vpop.eup %5516  ;;  %5530 = vpow2.f32 %v4712_v13  ;;  %v5210_v38 = vpop.f32.mrf.mxu1 }
 0x3b1   : > { %5532 = vrcp.f32 %v3808_v14  ;;  %v3811_v45 = vadd.f32 1.0, %v5517_v4  ;;  %v4714_v18 = vmul.f32 -1.442695, %v5210_v38 }
 0x3b2   : > { %v5519_v55 = vpop.eup %5518  ;;  %5534 = vpow2.f32 %v4711_v31  ;;  %v3603_v51 = vpop.f32.mrf.mxu1 }
 0x3b3   : > { %5536 = vrcp.f32 %v3811_v45  ;;  %v3810_v58 = vadd.f32 1.0, %v5519_v55  ;;  %v4713_v17 = vmul.f32 -1.442695, %v3603_v51 }
 0x3b4   : > { %v5521_v63 = vpop.eup %5520  ;;  %5538 = vpow2.f32 %v4714_v18  ;;  %v5213_v33 = vpop.f32.mrf.mxu1 }
 0x3b5   : > { %5540 = vrcp.f32 %v3810_v58  ;;  %v3813_v3 = vadd.f32 1.0, %v5521_v63  ;;  %v4716_v36 = vmul.f32 -1.442695, %v5213_v33 }
 0x3b6   : > { %v5523_v40 = vpop.eup %5522  ;;  %5542 = vpow2.f32 %v4713_v17  ;;  %v3613_v12 = vpop.f32.mrf.mxu1 }
 0x3b7   : > { %5544 = vrcp.f32 %v3813_v3  ;;  %v3812_v7 = vadd.f32 1.0, %v5523_v40  ;;  %v4715_v54 = vmul.f32 -1.442695, %v3613_v12 }
 0x3b8   : > { %v5525_v61 = vpop.eup %5524  ;;  %5546 = vpow2.f32 %v4716_v36  ;;  %v5216_v35 = vpop.f32.mrf.mxu1 }
 0x3b9   : > { %5548 = vrcp.f32 %v3812_v7  ;;  %v3815_v60 = vadd.f32 1.0, %v5525_v61  ;;  %v4718_v46 = vmul.f32 -1.442695, %v5216_v35  ;;  %v7143_v57 = vpop.f32.mrf.mxu0 }
 0x3ba   : > { %v5527_v21 = vpop.eup %5526  ;;  %5550 = vpow2.f32 %v4715_v54  ;;  %v3623_v29 = vpop.f32.mrf.mxu1 }
 0x3bb   : > { %5552 = vrcp.f32 %v3815_v60  ;;  %v3814_v24 = vadd.f32 1.0, %v5527_v21  ;;  %v4717_v39 = vmul.f32 -1.442695, %v3623_v29  ;;  %v7145_v62 = vpop.f32.mrf.mxu0 }
 0x3bc   : > { %v5529_v2 = vpop.eup %5528  ;;  %5554 = vpow2.f32 %v4718_v46  ;;  %v5219_v59 = vpop.f32.mrf.mxu1 }
 0x3bd   : > { %v5531_v6 = vpop.eup %5530  ;;  %5556 = vrcp.f32 %v3814_v24  ;;  %v4720_v48 = vmul.f32 -1.442695, %v5219_v59  ;;  %3911 = vperm.xlu0 %5255, %v5529_v2   ;;  %v7147_v23 = vpop.f32.mrf.mxu0 }
 0x3be   : > { %v5533_v44 = vpop.eup %5532  ;;  %v3817_v30 = vadd.f32 1.0, %v5531_v6  ;;  %5558 = vpow2.f32 %v4717_v39  ;;  %v3633_v25 = vpop.f32.mrf.mxu1 }
 0x3bf   : > { %v5535_v9 = vpop.eup %5534  ;;  %5560 = vpow2.f32 %v4720_v48  ;;  %v4719_v53 = vmul.f32 -1.442695, %v3633_v25  ;;  %3906 = vperm.xlu1 %5254, %v5533_v44   ;;  %v7149_v1 = vpop.f32.mrf.mxu0 }
 0x3c0   : > { %v5537_v28 = vpop.eup %5536  ;;  %5562 = vrcp.f32 %v3817_v30  ;;  %v3816_v42 = vadd.f32 1.0, %v5535_v9  ;;  %v5222_v5 = vpop.f32.mrf.mxu1 }
 0x3c1   : > { %v5539_v43 = vpop.eup %5538  ;;  %5564 = vpow2.f32 %v4719_v53  ;;  %v4722_v22 = vmul.f32 -1.442695, %v5222_v5  ;;  %3921 = vperm.xlu0 %5255, %v5537_v28   ;;  %v7151_v41 = vpop.f32.mrf.mxu0 }
 0x3c2   : > { %v5541_v27 = vpop.eup %5540  ;;  %5566 = vrcp.f32 %v3816_v42  ;;  %v3819_v16 = vadd.f32 1.0, %v5539_v43  ;;  %v3643_v26 = vpop.f32.mrf.mxu1 }
 0x3c3   : > { %v5543_v10 = vpop.eup %5542  ;;  %5568 = vpow2.f32 %v4722_v22  ;;  %v4721_v47 = vmul.f32 -1.442695, %v3643_v26  ;;  %3916 = vperm.xlu1 %5254, %v5541_v27   ;;  %v7153_v34 = vpop.f32.mrf.mxu0 }
 0x3c4   : > { %v5545_v37 = vpop.eup %5544  ;;  %5570 = vrcp.f32 %v3819_v16  ;;  %v3818_v0 = vadd.f32 1.0, %v5543_v10  ;;  %v5225_v15 = vpop.f32.mrf.mxu1 }
 0x3c5   : > { %v5547_v49 = vpop.eup %5546  ;;  %5572 = vpow2.f32 %v4721_v47  ;;  %v4724_v50 = vmul.f32 -1.442695, %v5225_v15  ;;  %3931 = vperm.xlu0 %5255, %v5545_v37   ;;  %v7155_v32 = vpop.f32.mrf.mxu0 }
 0x3c6   : > { %v5549_v20 = vpop.eup %5548  ;;  %5574 = vrcp.f32 %v3818_v0  ;;  %v3821_v52 = vadd.f32 1.0, %v5547_v49  ;;  %v3653_v11 = vpop.f32.mrf.mxu1 }
 0x3c7   : > { %v5551_v8 = vpop.eup %5550  ;;  %5576 = vpow2.f32 %v4724_v50  ;;  %v4723_v13 = vmul.f32 -1.442695, %v3653_v11  ;;  %3926 = vperm.xlu1 %5254, %v5549_v20   ;;  %v7157_v56 = vpop.f32.mrf.mxu0 }
 0x3c8   : > { %v5553_v19 = vpop.eup %5552  ;;  %5578 = vrcp.f32 %v3821_v52  ;;  %v3820_v14 = vadd.f32 1.0, %v5551_v8  ;;  %v5228_v31 = vpop.f32.mrf.mxu1 }
 0x3c9   : > { %v5555_v4 = vpop.eup %5554  ;;  %5580 = vpow2.f32 %v4723_v13  ;;  %v4726_v38 = vmul.f32 -1.442695, %v5228_v31  ;;  %3941 = vperm.xlu0 %5255, %v5553_v19   ;;  %v7159_v45 = vpop.f32.mrf.mxu0 }
 0x3ca   : > { %v5557_v18 = vpop.eup %5556  ;;  %5582 = vrcp.f32 %v3820_v14  ;;  %v3823_v55 = vadd.f32 1.0, %v5555_v4  ;;  %v3663_v51 = vpop.f32.mrf.mxu1  ;;  %v4604_v4 = vmul.f32 -1.442695, %v7143_v57 }
 0x3cb   : > { %v5559_v58 = vpop.eup %5558  ;;  %5584 = vpow2.f32 %v4726_v38  ;;  %v4725_v17 = vmul.f32 -1.442695, %v3663_v51  ;;  %3936 = vperm.xlu1 %5254, %v5557_v18   ;;  %v7161_v63 = vpop.f32.mrf.mxu0  ;;  %v4603_v51 = vmul.f32 -1.442695, %v7145_v62 }
 0x3cc   : > { %v5561_v33 = vpop.eup %5560  ;;  %5586 = vrcp.f32 %v3823_v55  ;;  %v3822_v3 = vadd.f32 1.0, %v5559_v58  ;;  %v5231_v36 = vpop.f32.mrf.mxu1 }
 0x3cd   : > { %v5563_v40 = vpop.eup %5562  ;;  %v3825_v12 = vadd.f32 1.0, %v5561_v33  ;;  %5588 = vpow2.f32 %v4725_v17  ;;  %v4728_v7 = vmul.f32 -1.442695, %v5231_v36  ;;  %v7163_v54 = vpop.f32.mrf.mxu0 }
 0x3ce   : > { %v5565_v61 = vpop.eup %5564  ;;  %5590 = vrcp.f32 %v3822_v3  ;;  %3951 = vperm.xlu0 %5255, %v5563_v40   ;;  %v3673_v35 = vpop.f32.mrf.mxu1  ;;  %v4606_v3 = vmul.f32 -1.442695, %v7147_v23 }
 0x3cf   : > { %v5567_v60 = vpop.eup %5566  ;;  %5592 = vrcp.f32 %v3825_v12  ;;  %v3824_v46 = vadd.f32 1.0, %v5565_v61  ;;  %v4727_v21 = vmul.f32 -1.442695, %v3673_v35  ;;  %v7165_v29 = vpop.f32.mrf.mxu0 }
 0x3d0   : > { %v5569_v24 = vpop.eup %5568  ;;  %5594 = vpow2.f32 %v4728_v7  ;;  %3946 = vperm.xlu1 %5254, %v5567_v60   ;;  %v5234_v39 = vpop.f32.mrf.mxu1  ;;  %v4605_v7 = vmul.f32 -1.442695, %v7149_v1  ;;  %v4608_v60 = vmul.f32 -1.442695, %v7151_v41 }
 0x3d1   : > { %v5571_v2 = vpop.eup %5570  ;;  %5596 = vrcp.f32 %v3824_v46  ;;  %v3827_v59 = vadd.f32 1.0, %v5569_v24  ;;  %v4730_v6 = vmul.f32 -1.442695, %v5234_v39  ;;  %v7167_v48 = vpop.f32.mrf.mxu0  ;;  %v4607_v39 = vmul.f32 -1.442695, %v7153_v34 }
 0x3d2   : > { %v5573_v44 = vpop.eup %5572  ;;  %5598 = vpow2.f32 %v4727_v21  ;;  %3961 = vperm.xlu0 %5255, %v5571_v2   ;;  %v3683_v30 = vpop.f32.mrf.mxu1 }
 0x3d3   : > { %v5575_v25 = vpop.eup %5574  ;;  %5600 = vrcp.f32 %v3827_v59  ;;  %v3826_v9 = vadd.f32 1.0, %v5573_v44  ;;  %v4729_v53 = vmul.f32 -1.442695, %v3683_v30  ;;  %v7169_v28 = vpop.f32.mrf.mxu0 }
 0x3d4   : > { %v5577_v42 = vpop.eup %5576  ;;  %5602 = vpow2.f32 %v4730_v6  ;;  %3956 = vperm.xlu1 %5254, %v5575_v25   ;;  %v5237_v5 = vpop.f32.mrf.mxu1  ;;  %v4610_v6 = vmul.f32 -1.442695, %v7155_v32 }
 0x3d5   : > { %v5579_v43 = vpop.eup %5578  ;;  %5604 = vrcp.f32 %v3826_v9  ;;  %v3829_v22 = vadd.f32 1.0, %v5577_v42  ;;  %v4732_v27 = vmul.f32 -1.442695, %v5237_v5  ;;  %v7171_v16 = vpop.f32.mrf.mxu0  ;;  %v4609_v9 = vmul.f32 -1.442695, %v7157_v56 }
 0x3d6   : > { %v5581_v26 = vpop.eup %5580  ;;  %5606 = vpow2.f32 %v4729_v53  ;;  %3971 = vperm.xlu0 %5255, %v5579_v43   ;;  %v3693_v10 = vpop.f32.mrf.mxu1  ;;  %v4611_v56 = vmul.f32 -1.442695, %v7161_v63 }
 0x3d7   : > { %v5583_v47 = vpop.eup %5582  ;;  %5608 = vrcp.f32 %v3829_v22  ;;  %v3828_v37 = vadd.f32 1.0, %v5581_v26  ;;  %v4731_v0 = vmul.f32 -1.442695, %v3693_v10  ;;  %v7173_v15 = vpop.f32.mrf.mxu0  ;;  %v4612_v22 = vmul.f32 -1.442695, %v7159_v45 }
 0x3d8   : > { %v5585_v49 = vpop.eup %5584  ;;  %5610 = vpow2.f32 %v4732_v27  ;;  %3966 = vperm.xlu1 %5254, %v5583_v47   ;;  %v5240_v50 = vpop.f32.mrf.mxu1 }
 0x3d9   : > { %v5587_v20 = vpop.eup %5586  ;;  %5612 = vrcp.f32 %v3828_v37  ;;  %v3831_v52 = vadd.f32 1.0, %v5585_v49  ;;  %v4734_v11 = vmul.f32 -1.442695, %v5240_v50  ;;  %v7176_v38 = vpop.f32.mrf.mxu0  ;;  %v4614_v50 = vmul.f32 -1.442695, %v7163_v54 }
 0x3da   : > { %v5589_v8 = vpop.eup %5588  ;;  %5614 = vpow2.f32 %v4731_v0  ;;  %3981 = vperm.xlu0 %5255, %v5587_v20   ;;  %v3703_v13 = vpop.f32.mrf.mxu1 }
 0x3db   : > { %v5591_v19 = vpop.eup %5590  ;;  %5616 = vrcp.f32 %v3831_v52  ;;  %v3830_v14 = vadd.f32 1.0, %v5589_v8  ;;  %v4733_v31 = vmul.f32 -1.442695, %v3703_v13  ;;  %v7180_v36 = vpop.f32.mrf.mxu0 }
 0x3dc   : > { %v5593_v18 = vpop.eup %5592  ;;  %5618 = vpow2.f32 %v4734_v11  ;;  %3976 = vperm.xlu1 %5254, %v5591_v19   ;;  %v4613_v11 = vmul.f32 -1.442695, %v7165_v29 }
 0x3dd   : > { %v5595_v55 = vpop.eup %5594  ;;  %5620 = vrcp.f32 %v3830_v14  ;;  %v7184_v46 = vpop.f32.mrf.mxu0  ;;  %v4616_v14 = vmul.f32 -1.442695, %v7167_v48 }
 0x3de   : > { %v5597_v58 = vpop.eup %5596  ;;  %v3833_v17 = vadd.f32 1.0, %v5595_v55  ;;  %5622 = vpow2.f32 %v4733_v31  ;;  %3991 = vperm.xlu0 %5255, %v5593_v18   ;;  %v4615_v18 = vmul.f32 -1.442695, %v7169_v28  ;;  %v4617_v28 = vmul.f32 -1.442695, %v7173_v15 }
 0x3df   : > { %v5599_v33 = vpop.eup %5598  ;;  %5624 = vpow2.f32 %v4604_v4  ;;  %v7188_v44 = vpop.f32.mrf.mxu0 }
 0x3e0   : > { %v5601_v57 = vpop.eup %5600  ;;  %5626 = vrcp.f32 %v3833_v17  ;;  %v3832_v40 = vadd.f32 1.0, %v5599_v33  ;;  %3986 = vperm.xlu1 %5254, %v5597_v58   ;;  %v4618_v17 = vmul.f32 -1.442695, %v7171_v16 }
 0x3e1   : > { %v5603_v12 = vpop.eup %5602  ;;  %5628 = vpow2.f32 %v4603_v51  ;;  %v7191_v5 = vpop.f32.mrf.mxu0 }
 0x3e2   : > { %v5605_v61 = vpop.eup %5604  ;;  %5630 = vrcp.f32 %v3832_v40  ;;  %v3835_v62 = vadd.f32 1.0, %v5603_v12  ;;  %4001 = vperm.xlu0 %5255, %v5601_v57   ;;  %v4620_v12 = vmul.f32 -1.442695, %v7176_v38 }
 0x3e3   : > { %v5607_v35 = vpop.eup %5606  ;;  %5632 = vpow2.f32 %v4606_v3  ;;  %v7195_v0 = vpop.f32.mrf.mxu0 }
 0x3e4   : > { %v5609_v23 = vpop.eup %5608  ;;  %5634 = vrcp.f32 %v3835_v62  ;;  %v3834_v21 = vadd.f32 1.0, %v5607_v35  ;;  %3996 = vperm.xlu1 %5254, %v5605_v61   ;;  %v5800_v62 = vld [vmem:[%s6452_s26 + $0x8] sm:$0xff] }
 0x3e5   : > { %v5611_v24 = vpop.eup %5610  ;;  %5636 = vpow2.f32 %v4605_v7  ;;  %v7199_v13 = vpop.f32.mrf.mxu0 }
 0x3e6   : > { %v5613_v2 = vpop.eup %5612  ;;  %5638 = vrcp.f32 %v3834_v21  ;;  %v3837_v1 = vadd.f32 1.0, %v5611_v24  ;;  %4011 = vperm.xlu0 %5255, %v5609_v23   ;;  %v5801_v24 = vld [vmem:[%s6452_s26] sm:$0xff] }
 0x3e7   : > { %v5615_v59 = vpop.eup %5614  ;;  %5640 = vpow2.f32 %v4608_v60  ;;  %v7203_v51 = vpop.f32.mrf.mxu0  ;;  %v4619_v60 = vmul.f32 -1.442695, %v7180_v36 }
 0x3e8   : > { %v5617_v41 = vpop.eup %5616  ;;  %5642 = vrcp.f32 %v3837_v1  ;;  %v3836_v30 = vadd.f32 1.0, %v5615_v59  ;;  %4006 = vperm.xlu1 %5254, %v5613_v2   ;;  %v4622_v2 = vmul.f32 -1.442695, %v7184_v46 }
 0x3e9   : > { %v5619_v25 = vpop.eup %5618  ;;  %5644 = vpow2.f32 %v4607_v39  ;;  %v7208_v7 = vpop.f32.mrf.mxu0 }
 0x3ea   : > { %v5621_v53 = vpop.eup %5620  ;;  %5646 = vrcp.f32 %v3836_v30  ;;  %v3839_v34 = vadd.f32 1.0, %v5619_v25  ;;  %4021 = vperm.xlu0 %5255, %v5617_v41   ;;  %v5802_v30 = vld [vmem:[%s6452_s26 + $0x18] sm:$0xff] }
 0x3eb   : > { %v5623_v42 = vpop.eup %5622  ;;  %5648 = vpow2.f32 %v4610_v6  ;;  %v7220_v1 = vpop.f32.mrf.mxu0 }
 0x3ec   : > { %v5625_v43 = vpop.eup %5624  ;;  %5650 = vrcp.f32 %v3839_v34  ;;  %v3838_v32 = vadd.f32 1.0, %v5623_v42  ;;  %4016 = vperm.xlu1 %5254, %v5621_v53  }
 0x3ed   : > { %v5627_v27 = vpop.eup %5626  ;;  %v2957_v26 = vadd.f32 1.0, %v5625_v43  ;;  %5652 = vpow2.f32 %v4609_v9  ;;  %v4621_v9 = vmul.f32 -1.442695, %v7188_v44  ;;  %v5803_v43 = vld [vmem:[%s6452_s26 + $0x10] sm:$0xff] }
 0x3ee   : > { %v5629_v10 = vpop.eup %5628  ;;  %5654 = vrcp.f32 %v3838_v32  ;;  %4031 = vperm.xlu0 %5255, %v5627_v27   ;;  %v7230_v27 = vpop.f32.mrf.mxu0 }
 0x3ef   : > { %v5631_v47 = vpop.eup %5630  ;;  %5656 = vrcp.f32 %v2957_v26  ;;  %v2956_v37 = vadd.f32 1.0, %v5629_v10 }
 0x3f0   : > { %v5633_v49 = vpop.eup %5632  ;;  %4026 = vperm.xlu1 %5254, %v5631_v47   ;;  %5658 = vpow2.f32 %v4612_v22  ;;  %v4624_v22 = vmul.f32 -1.442695, %v7191_v5  ;;  %v5804_v47 = vld [vmem:[%s6452_s26 + $0x28] sm:$0xff] }
 0x3f1   : > { %v5635_v20 = vpop.eup %5634  ;;  %5660 = vrcp.f32 %v2956_v37  ;;  %v2959_v45 = vadd.f32 1.0, %v5633_v49  ;;  %v4623_v49 = vmul.f32 -1.442695, %v7195_v0 }
 0x3f2   : > { %v5637_v52 = vpop.eup %5636  ;;  %4041 = vperm.xlu0 %5255, %v5635_v20   ;;  %5662 = vpow2.f32 %v4611_v56 }
 0x3f3   : > { %v5639_v8 = vpop.eup %5638  ;;  %5664 = vrcp.f32 %v2959_v45  ;;  %v2958_v63 = vadd.f32 1.0, %v5637_v52  ;;  %v5805_v52 = vld [vmem:[%s6452_s26 + $0x20] sm:$0xff] }
 0x3f4   : > { %v5641_v19 = vpop.eup %5640  ;;  %4036 = vperm.xlu1 %5254, %v5639_v8   ;;  %5666 = vpow2.f32 %v4614_v50  ;;  %v4626_v8 = vmul.f32 -1.442695, %v7199_v13 }
 0x3f5   : > { %v5643_v31 = vpop.eup %5642  ;;  %5668 = vrcp.f32 %v2958_v63  ;;  %v2961_v54 = vadd.f32 1.0, %v5641_v19  ;;  %v2831_v63 = vpop.f32.mrf.mxu0 }
 0x3f6   : > { %v5645_v4 = vpop.eup %5644  ;;  %4051 = vperm.xlu0 %5255, %v5643_v31   ;;  %5670 = vpow2.f32 %v4613_v11 }
 0x3f7   : > { %v5647_v55 = vpop.eup %5646  ;;  %5672 = vrcp.f32 %v2961_v54  ;;  %v2960_v29 = vadd.f32 1.0, %v5645_v4  ;;  %v5806_v54 = vld [vmem:[%s6452_s26 + $0x38] sm:$0xff] }
 0x3f8   : > { %v5649_v58 = vpop.eup %5648  ;;  %4046 = vperm.xlu1 %5254, %v5647_v55   ;;  %5674 = vpow2.f32 %v4616_v14 }
 0x3f9   : > { %v5651_v33 = vpop.eup %5650  ;;  %5676 = vrcp.f32 %v2960_v29  ;;  %v2963_v48 = vadd.f32 1.0, %v5649_v58 }
 0x3fa   : > { %v5653_v3 = vpop.eup %5652  ;;  %4061 = vperm.xlu0 %5255, %v5651_v33   ;;  %5678 = vpow2.f32 %v4615_v18  ;;  %v4625_v18 = vmul.f32 -1.442695, %v7203_v51 }
 0x3fb   : > { %v5655_v57 = vpop.eup %5654  ;;  %5680 = vrcp.f32 %v2963_v48  ;;  %v2962_v40 = vadd.f32 1.0, %v5653_v3  ;;  %v5185_v48 = vpop.f32.mrf.mxu0 }
 0x3fc   : > { %v5657_v61 = vpop.eup %5656  ;;  %4056 = vperm.xlu1 %5254, %v5655_v57   ;;  %5682 = vpow2.f32 %v4618_v17  ;;  %v5807_v17 = vld [vmem:[%s6452_s26 + $0x30] sm:$0xff]  ;;  %v4628_v57 = vmul.f32 -1.442695, %v7208_v7 }
 0x3fd   : > { %v5659_v16 = vpop.eup %5658  ;;  %v3053_v35 = vmul.f32 %v5800_v62, %v5657_v61  ;;  %5684 = vrcp.f32 %v2962_v40 }
 0x3fe   : > { %v5661_v23 = vpop.eup %5660  ;;  %v2965_v15 = vadd.f32 1.0, %v5659_v16  ;;  %5686 = vpow2.f32 %v4617_v28  ;;  %v5808_v16 = vld [vmem:[%s6452_s26 + $0x48] sm:$0xff] }
 0x3ff   : > { %v5663_v38 = vpop.eup %5662  ;;  %v3085_v21 = vadd.f32 %v5657_v61, %v3053_v35  ;;  %v3052_v39 = vmul.f32 %v5801_v24, %v5661_v23  ;;  %5688 = vpow2.f32 %v4620_v12  ;;  %v4627_v35 = vmul.f32 -1.442695, %v7220_v1 }
 0x400   : > { %v5665_v36 = vpop.eup %5664  ;;  %5690 = vrcp.f32 %v2965_v15  ;;  %v2964_v59 = vadd.f32 1.0, %v5663_v38 }
 0x401   : > { %v5667_v6 = vpop.eup %5666  ;;  %3117 = vst.msk [vmem:[%s7216_s15 + $0x8] sm:$0xff] %vm558_vm0, %v3085_v21  ;;  %v3084_v41 = vadd.f32 %v5661_v23, %v3052_v39  ;;  %v3055_v25 = vmul.f32 %v5802_v30, %v5665_v36  ;;  %5692 = vpow2.f32 %v4619_v60  ;;  %v2841_v23 = vpop.f32.mrf.mxu0  ;;  %v5809_v21 = vld [vmem:[%s6452_s26 + $0x40] sm:$0xff]  ;;  %v4630_v39 = vmul.f32 -1.442695, %v7230_v27 }
 0x402   : > { %v5669_v53 = vpop.eup %5668  ;;  %5694 = vrcp.f32 %v2964_v59  ;;  %v2967_v46 = vadd.f32 1.0, %v5667_v6  ;;  %v5810_v6 = vld [vmem:[%s6452_s26 + $0x58] sm:$0xff]  ;;  %v4629_v30 = vmul.f32 -1.442695, %v2831_v63 }
 0x403   : > { %v5671_v34 = vpop.eup %5670  ;;  %3116 = vst.msk [vmem:[%s7216_s15] sm:$0xff] %vm558_vm0, %v3084_v41  ;;  %v3087_v42 = vadd.f32 %v5665_v36, %v3055_v25  ;;  %v3054_v32 = vmul.f32 %v5803_v43, %v5669_v53  ;;  %5696 = vpow2.f32 %v4622_v2 }
 0x404   : > { %v5673_v26 = vpop.eup %5672  ;;  %5698 = vrcp.f32 %v2967_v46  ;;  %v2966_v44 = vadd.f32 1.0, %v5671_v34 }
 0x405   : > { %v5675_v10 = vpop.eup %5674  ;;  %3119 = vst.msk [vmem:[%s7216_s15 + $0x18] sm:$0xff] %vm558_vm0, %v3087_v42  ;;  %v3086_v56 = vadd.f32 %v5669_v53, %v3054_v32  ;;  %v3057_v37 = vmul.f32 %v5804_v47, %v5673_v26  ;;  %5700 = vpow2.f32 %v4621_v9  ;;  %v5188_v53 = vpop.f32.mrf.mxu0  ;;  %v5811_v42 = vld [vmem:[%s6452_s26 + $0x50] sm:$0xff]  ;;  %v4632_v32 = vmul.f32 -1.442695, %v5185_v48 }
 0x406   : > { %v5677_v50 = vpop.eup %5676  ;;  %5702 = vrcp.f32 %v2966_v44  ;;  %v2969_v5 = vadd.f32 1.0, %v5675_v10  ;;  %v5812_v10 = vld [vmem:[%s6452_s26 + $0x68] sm:$0xff]  ;;  %v4631_v47 = vmul.f32 -1.442695, %v2841_v23 }
 0x407   : > { %v5679_v20 = vpop.eup %5678  ;;  %3118 = vst.msk [vmem:[%s7216_s15 + $0x10] sm:$0xff] %vm558_vm0, %v3086_v56  ;;  %v3089_v45 = vadd.f32 %v5673_v26, %v3057_v37  ;;  %v3056_v11 = vmul.f32 %v5805_v52, %v5677_v50  ;;  %5704 = vpow2.f32 %v4624_v22 }
 0x408   : > { %v5681_v19 = vpop.eup %5680  ;;  %5706 = vrcp.f32 %v2969_v5  ;;  %v2968_v0 = vadd.f32 1.0, %v5679_v20 }
 0x409   : > { %v5683_v14 = vpop.eup %5682  ;;  %3121 = vst.msk [vmem:[%s7216_s15 + $0x28] sm:$0xff] %vm558_vm0, %v3089_v45  ;;  %v3088_v31 = vadd.f32 %v5677_v50, %v3056_v11  ;;  %v3059_v4 = vmul.f32 %v5806_v54, %v5681_v19  ;;  %5708 = vpow2.f32 %v4623_v49  ;;  %v2851_v50 = vpop.f32.mrf.mxu0  ;;  %v5813_v45 = vld [vmem:[%s6452_s26 + $0x60] sm:$0xff]  ;;  %v4634_v11 = vmul.f32 -1.442695, %v5188_v53 }
 0x40a   : > { %v5685_v55 = vpop.eup %5684  ;;  %5710 = vrcp.f32 %v2968_v0  ;;  %v2971_v29 = vadd.f32 1.0, %v5683_v14  ;;  %v5814_v14 = vld [vmem:[%s6452_s26 + $0x78] sm:$0xff]  ;;  %v4633_v54 = vmul.f32 -1.442695, %v2851_v50 }
 0x40b   : > { %v5687_v13 = vpop.eup %5686  ;;  %3120 = vst.msk [vmem:[%s7216_s15 + $0x20] sm:$0xff] %vm558_vm0, %v3088_v31  ;;  %v3091_v58 = vadd.f32 %v5681_v19, %v3059_v4  ;;  %v3058_v33 = vmul.f32 %v5807_v17, %v5685_v55  ;;  %5712 = vpow2.f32 %v4626_v8 }
 0x40c   : > { %v5689_v3 = vpop.eup %5688  ;;  %5714 = vrcp.f32 %v2971_v29  ;;  %v2970_v28 = vadd.f32 1.0, %v5687_v13  ;;  %v5815_v13 = vld [vmem:[%s6452_s26 + $0x70] sm:$0xff] }
 0x40d   : > { %v5691_v51 = vpop.eup %5690  ;;  %3123 = vst.msk [vmem:[%s7216_s15 + $0x38] sm:$0xff] %vm558_vm0, %v3091_v58  ;;  %v3090_v40 = vadd.f32 %v5685_v55, %v3058_v33  ;;  %v2973_v12 = vadd.f32 1.0, %v5689_v3  ;;  %5716 = vpow2.f32 %v4625_v18  ;;  %v5816_v33 = vld [vmem:[%s6452_s26 + $0x88] sm:$0xff] }
 0x40e   : > { %v5693_v61 = vpop.eup %5692  ;;  %v3061_v62 = vmul.f32 %v5808_v16, %v5691_v51  ;;  %5718 = vrcp.f32 %v2970_v28 }
 0x40f   : > { %v5695_v60 = vpop.eup %5694  ;;  %3122 = vst.msk [vmem:[%s7216_s15 + $0x30] sm:$0xff] %vm558_vm0, %v3090_v40  ;;  %5720 = vrcp.f32 %v2973_v12  ;;  %v2972_v7 = vadd.f32 1.0, %v5693_v61  ;;  %v5817_v12 = vld [vmem:[%s6452_s26 + $0x80] sm:$0xff] }
 0x410   : > { %v5697_v15 = vpop.eup %5696  ;;  %v3093_v38 = vadd.f32 %v5691_v51, %v3061_v62  ;;  %v3060_v24 = vmul.f32 %v5809_v21, %v5695_v60  ;;  %5722 = vpow2.f32 %v4628_v57 }
 0x411   : > { %v5699_v2 = vpop.eup %5698  ;;  %5724 = vrcp.f32 %v2972_v7  ;;  %v2975_v1 = vadd.f32 1.0, %v5697_v15  ;;  %v5818_v7 = vld [vmem:[%s6452_s26 + $0x98] sm:$0xff] }
 0x412   : > { %v5701_v36 = vpop.eup %5700  ;;  %3125 = vst.msk [vmem:[%s7216_s15 + $0x48] sm:$0xff] %vm558_vm0, %v3093_v38  ;;  %v3092_v59 = vadd.f32 %v5695_v60, %v3060_v24  ;;  %v3063_v41 = vmul.f32 %v5810_v6, %v5699_v2  ;;  %5726 = vpow2.f32 %v4627_v35 }
 0x413   : > { %v5703_v25 = vpop.eup %5702  ;;  %5728 = vrcp.f32 %v2975_v1  ;;  %v2974_v9 = vadd.f32 1.0, %v5701_v36 }
 0x414   : > { %v5705_v46 = vpop.eup %5704  ;;  %3124 = vst.msk [vmem:[%s7216_s15 + $0x40] sm:$0xff] %vm558_vm0, %v3092_v59  ;;  %v3095_v34 = vadd.f32 %v5699_v2, %v3063_v41  ;;  %v3062_v43 = vmul.f32 %v5811_v42, %v5703_v25  ;;  %5730 = vpow2.f32 %v4630_v39  ;;  %v5819_v39 = vld [vmem:[%s6452_s26 + $0x90] sm:$0xff]  ;;  %v5820_v41 = vld [vmem:[%s6452_s26 + $0xa8] sm:$0xff] }
 0x415   : > { %v5707_v22 = vpop.eup %5706  ;;  %5732 = vrcp.f32 %v2974_v9  ;;  %v2977_v27 = vadd.f32 1.0, %v5705_v46 }
 0x416   : > { %v5709_v26 = vpop.eup %5708  ;;  %3127 = vst.msk [vmem:[%s7216_s15 + $0x58] sm:$0xff] %vm558_vm0, %v3095_v34  ;;  %v3094_v44 = vadd.f32 %v5703_v25, %v3062_v43  ;;  %v3065_v56 = vmul.f32 %v5812_v10, %v5707_v22  ;;  %5734 = vpow2.f32 %v4629_v30  ;;  %v5821_v34 = vld [vmem:[%s6452_s26 + $0xa0] sm:$0xff] }
 0x417   : > { %v5711_v37 = vpop.eup %5710  ;;  %5736 = vrcp.f32 %v2977_v27  ;;  %v2976_v49 = vadd.f32 1.0, %v5709_v26  ;;  %v5822_v26 = vld [vmem:[%s6452_s26 + $0xb8] sm:$0xff] }
 0x418   : > { %v5713_v5 = vpop.eup %5712  ;;  %3126 = vst.msk [vmem:[%s7216_s15 + $0x50] sm:$0xff] %vm558_vm0, %v3094_v44  ;;  %v3097_v20 = vadd.f32 %v5707_v22, %v3065_v56  ;;  %v3064_v52 = vmul.f32 %v5813_v45, %v5711_v37  ;;  %5738 = vpow2.f32 %v4632_v32 }
 0x419   : > { %v5715_v8 = vpop.eup %5714  ;;  %5740 = vrcp.f32 %v2976_v49  ;;  %v2979_v63 = vadd.f32 1.0, %v5713_v5  ;;  %v5823_v49 = vld [vmem:[%s6452_s26 + $0xb0] sm:$0xff] }
 0x41a   : > { %v5717_v19 = vpop.eup %5716  ;;  %3129 = vst.msk [vmem:[%s7216_s15 + $0x68] sm:$0xff] %vm558_vm0, %v3097_v20  ;;  %v3096_v0 = vadd.f32 %v5711_v37, %v3064_v52  ;;  %v3067_v31 = vmul.f32 %v5814_v14, %v5715_v8  ;;  %5742 = vpow2.f32 %v4631_v47  ;;  %v5824_v52 = vld [vmem:[%s6452_s26 + $0xc8] sm:$0xff] }
 0x41b   : > { %v5719_v4 = vpop.eup %5718  ;;  %5744 = vrcp.f32 %v2979_v63  ;;  %v2978_v18 = vadd.f32 1.0, %v5717_v19  ;;  %v5825_v19 = vld [vmem:[%s6452_s26 + $0xc0] sm:$0xff] }
 0x41c   : > { %v5721_v55 = vpop.eup %5720  ;;  %3128 = vst.msk [vmem:[%s7216_s15 + $0x60] sm:$0xff] %vm558_vm0, %v3096_v0  ;;  %v3099_v29 = vadd.f32 %v5715_v8, %v3067_v31  ;;  %v3066_v58 = vmul.f32 %v5815_v13, %v5719_v4  ;;  %5746 = vpow2.f32 %v4634_v11 }
 0x41d   : > { %v5723_v17 = vpop.eup %5722  ;;  %v3069_v48 = vmul.f32 %v5816_v33, %v5721_v55  ;;  %5748 = vrcp.f32 %v2978_v18  ;;  %v5828_v33 = vld [vmem:[%s6452_s26 + $0xe8] sm:$0xff] }
 0x41e   : > { %v5725_v3 = vpop.eup %5724  ;;  %3131 = vst.msk [vmem:[%s7216_s15 + $0x78] sm:$0xff] %vm558_vm0, %v3099_v29  ;;  %v3098_v28 = vadd.f32 %v5719_v4, %v3066_v58  ;;  %v2981_v57 = vadd.f32 1.0, %v5723_v17  ;;  %5750 = vpow2.f32 %v4633_v54  ;;  %v5826_v54 = vld [vmem:[%s6452_s26 + $0xd8] sm:$0xff]  ;;  %v5827_v29 = vld [vmem:[%s6452_s26 + $0xd0] sm:$0xff] }
 0x41f   : > { %v5727_v51 = vpop.eup %5726  ;;  %v3101_v40 = vadd.f32 %v5721_v55, %v3069_v48  ;;  %v3068_v61 = vmul.f32 %v5817_v12, %v5725_v3 }
 0x420   : > { %v5729_v16 = vpop.eup %5728  ;;  %3130 = vst.msk [vmem:[%s7216_s15 + $0x70] sm:$0xff] %vm558_vm0, %v3098_v28  ;;  %5752 = vrcp.f32 %v2981_v57  ;;  %v2980_v62 = vadd.f32 1.0, %v5727_v51  ;;  %v5829_v51 = vld [vmem:[%s6452_s26 + $0xe0] sm:$0xff] }
 0x421   : > { %v5731_v35 = vpop.eup %5730  ;;  %3133 = vst.msk [vmem:[%s7216_s15 + $0x88] sm:$0xff] %vm558_vm0, %v3101_v40  ;;  %v3100_v60 = vadd.f32 %v5725_v3, %v3068_v61  ;;  %v3071_v23 = vmul.f32 %v5818_v7, %v5729_v16  ;;  %v5830_v61 = vld [vmem:[%s6005_s17 + $0x8] sm:$0xff] }
 0x422   : > { %v5733_v15 = vpop.eup %5732  ;;  %5754 = vrcp.f32 %v2980_v62  ;;  %v2983_v38 = vadd.f32 1.0, %v5731_v35 }
 0x423   : > { %v5735_v21 = vpop.eup %5734  ;;  %3132 = vst.msk [vmem:[%s7216_s15 + $0x80] sm:$0xff] %vm558_vm0, %v3100_v60  ;;  %v3103_v24 = vadd.f32 %v5729_v16, %v3071_v23  ;;  %v3070_v2 = vmul.f32 %v5819_v39, %v5733_v15  ;;  %v5831_v60 = vld [vmem:[%s6452_s26 + $0xf8] sm:$0xff] }
 0x424   : > { %v5737_v1 = vpop.eup %5736  ;;  %5756 = vrcp.f32 %v2983_v38  ;;  %v2982_v36 = vadd.f32 1.0, %v5735_v21  ;;  %v5832_v38 = vld [vmem:[%s6005_s17] sm:$0xff] }
 0x425   : > { %v5739_v59 = vpop.eup %5738  ;;  %3135 = vst.msk [vmem:[%s7216_s15 + $0x98] sm:$0xff] %vm558_vm0, %v3103_v24  ;;  %v3102_v6 = vadd.f32 %v5733_v15, %v3070_v2  ;;  %v3073_v30 = vmul.f32 %v5820_v41, %v5737_v1  ;;  %v5833_v2 = vld [vmem:[%s6452_s26 + $0xf0] sm:$0xff] }
 0x426   : > { %v5741_v25 = vpop.eup %5740  ;;  %5758 = vrcp.f32 %v2982_v36  ;;  %v2985_v9 = vadd.f32 1.0, %v5739_v59  ;;  %v5834_v59 = vld [vmem:[%s6005_s17 + $0x18] sm:$0xff] }
 0x427   : > { %v5743_v53 = vpop.eup %5742  ;;  %3134 = vst.msk [vmem:[%s7216_s15 + $0x90] sm:$0xff] %vm558_vm0, %v3102_v6  ;;  %v3105_v46 = vadd.f32 %v5737_v1, %v3073_v30  ;;  %v3072_v42 = vmul.f32 %v5821_v34, %v5741_v25 }
 0x428   : > { %v5745_v43 = vpop.eup %5744  ;;  %5760 = vrcp.f32 %v2985_v9  ;;  %v2984_v32 = vadd.f32 1.0, %v5743_v53  ;;  %v5835_v9 = vld [vmem:[%s6005_s17 + $0x10] sm:$0xff] }
 0x429   : > { %v5747_v22 = vpop.eup %5746  ;;  %3137 = vst.msk [vmem:[%s7216_s15 + $0xa8] sm:$0xff] %vm558_vm0, %v3105_v46  ;;  %v3104_v27 = vadd.f32 %v5741_v25, %v3072_v42  ;;  %v3075_v44 = vmul.f32 %v5822_v26, %v5745_v43  ;;  %v5836_v42 = vld [vmem:[%s6005_s17 + $0x28] sm:$0xff] }
 0x42a   : > { %v5749_v10 = vpop.eup %5748  ;;  %5762 = vrcp.f32 %v2984_v32  ;;  %v2987_v56 = vadd.f32 1.0, %v5747_v22 }
 0x42b   : > { %v5751_v47 = vpop.eup %5750  ;;  %3136 = vst.msk [vmem:[%s7216_s15 + $0xa0] sm:$0xff] %vm558_vm0, %v3104_v27  ;;  %v3107_v37 = vadd.f32 %v5745_v43, %v3075_v44  ;;  %v3074_v50 = vmul.f32 %v5823_v49, %v5749_v10  ;;  %v5837_v27 = vld [vmem:[%s6005_s17 + $0x20] sm:$0xff] }
 0x42c   : > { %5764 = vrcp.f32 %v2987_v56  ;;  %v2986_v5 = vadd.f32 1.0, %v5751_v47  ;;  %v5838_v56 = vld [vmem:[%s6005_s17 + $0x38] sm:$0xff] }
 0x42d   : > { %v5753_v20 = vpop.eup %5752  ;;  %3139 = vst.msk [vmem:[%s7216_s15 + $0xb8] sm:$0xff] %vm558_vm0, %v3107_v37  ;;  %v3106_v45 = vadd.f32 %v5749_v10, %v3074_v50  ;;  %v5839_v50 = vld [vmem:[%s6005_s17 + $0x30] sm:$0xff] }
 0x42e   : > { %v3077_v11 = vmul.f32 %v5824_v52, %v5753_v20  ;;  %5766 = vrcp.f32 %v2986_v5  ;;  %v5840_v52 = vld [vmem:[%s6005_s17 + $0x48] sm:$0xff] }
 0x42f   : > { %v5755_v8 = vpop.eup %5754  ;;  %3138 = vst.msk [vmem:[%s7216_s15 + $0xb0] sm:$0xff] %vm558_vm0, %v3106_v45 }
 0x430   : > { %v3109_v63 = vadd.f32 %v5753_v20, %v3077_v11  ;;  %v3076_v0 = vmul.f32 %v5825_v19, %v5755_v8  ;;  %v5841_v19 = vld [vmem:[%s6005_s17 + $0x40] sm:$0xff] }
 0x431   : > { %v5757_v14 = vpop.eup %5756 }
 0x432   : > { %3141 = vst.msk [vmem:[%s7216_s15 + $0xc8] sm:$0xff] %vm558_vm0, %v3109_v63  ;;  %v3108_v31 = vadd.f32 %v5755_v8, %v3076_v0  ;;  %v3079_v4 = vmul.f32 %v5826_v54, %v5757_v14  ;;  %v5842_v54 = vld [vmem:[%s6005_s17 + $0x58] sm:$0xff] }
 0x433   : > { %v5759_v18 = vpop.eup %5758 }
 0x434   : > { %3140 = vst.msk [vmem:[%s7216_s15 + $0xc0] sm:$0xff] %vm558_vm0, %v3108_v31  ;;  %v3111_v55 = vadd.f32 %v5757_v14, %v3079_v4  ;;  %v3078_v13 = vmul.f32 %v5827_v29, %v5759_v18  ;;  %v5843_v29 = vld [vmem:[%s6005_s17 + $0x50] sm:$0xff] }
 0x435   : > { %v5761_v58 = vpop.eup %5760 }
 0x436   : > { %3143 = vst.msk [vmem:[%s7216_s15 + $0xd8] sm:$0xff] %vm558_vm0, %v3111_v55  ;;  %v3110_v17 = vadd.f32 %v5759_v18, %v3078_v13  ;;  %v3081_v48 = vmul.f32 %v5828_v33, %v5761_v58  ;;  %v5844_v33 = vld [vmem:[%s6005_s17 + $0x68] sm:$0xff] }
 0x437   : > { %v5763_v3 = vpop.eup %5762 }
 0x438   : > { %v3912_v28 = vpop.permute.xlu0 %3911  ;;  %3142 = vst.msk [vmem:[%s7216_s15 + $0xd0] sm:$0xff] %vm558_vm0, %v3110_v17  ;;  %v3113_v57 = vadd.f32 %v5761_v58, %v3081_v48  ;;  %v3080_v40 = vmul.f32 %v5829_v51, %v5763_v3 }
 0x439   : > { %v5765_v12 = vpop.eup %5764  ;;  %v4065_v16 = vmul.f32 %v5830_v61, %v3912_v28  ;;  %v5846_v61 = vld [vmem:[%s6005_s17 + $0x78] sm:$0xff] }
 0x43a   : > { %v3907_v62 = vpop.permute.xlu1 %3906  ;;  %3145 = vst.msk [vmem:[%s7216_s15 + $0xe8] sm:$0xff] %vm558_vm0, %v3113_v57  ;;  %v3112_v35 = vadd.f32 %v5763_v3, %v3080_v40  ;;  %v3083_v7 = vmul.f32 %v5831_v60, %v5765_v12  ;;  %v5845_v57 = vld [vmem:[%s6005_s17 + $0x60] sm:$0xff]  ;;  %v5847_v60 = vld [vmem:[%s6005_s17 + $0x70] sm:$0xff] }
 0x43b   : > { %v5767_v23 = vpop.eup %5766  ;;  %v4097_v15 = vadd.f32 %v4065_v16, %v3912_v28  ;;  %v4064_v21 = vmul.f32 %v5832_v38, %v3907_v62  ;;  %v5848_v38 = vld [vmem:[%s6005_s17 + $0x88] sm:$0xff] }
 0x43c   : > { %v3922_v24 = vpop.permute.xlu0 %3921  ;;  %3144 = vst.msk [vmem:[%s7216_s15 + $0xe0] sm:$0xff] %vm558_vm0, %v3112_v35  ;;  %v3115_v39 = vadd.f32 %v5765_v12, %v3083_v7  ;;  %v3082_v1 = vmul.f32 %v5833_v2, %v5767_v23  ;;  %v5849_v2 = vld [vmem:[%s6005_s17 + $0x80] sm:$0xff] }
 0x43d   : > { %4129 = vst.msk [vmem:[%s7321_s19 + $0x8] sm:$0xff] %vm558_vm0, %v4097_v15  ;;  %v4096_v36 = vadd.f32 %v4064_v21, %v3907_v62  ;;  %v4067_v6 = vmul.f32 %v5834_v59, %v3922_v24 }
 0x43e   : > { %v3917_v41 = vpop.permute.xlu1 %3916  ;;  %3147 = vst.msk [vmem:[%s7216_s15 + $0xf8] sm:$0xff] %vm558_vm0, %v3115_v39  ;;  %v3114_v30 = vadd.f32 %v5767_v23, %v3082_v1 }
 0x43f   : > { %4128 = vst.msk [vmem:[%s7321_s19] sm:$0xff] %vm558_vm0, %v4096_v36  ;;  %v4099_v25 = vadd.f32 %v4067_v6, %v3922_v24  ;;  %v4066_v53 = vmul.f32 %v5835_v9, %v3917_v41  ;;  %v5850_v6 = vld [vmem:[%s6005_s17 + $0x98] sm:$0xff]  ;;  %v5851_v9 = vld [vmem:[%s6005_s17 + $0x90] sm:$0xff] }
 0x440   : > { %v3932_v46 = vpop.permute.xlu0 %3931  ;;  %3146 = vst.msk [vmem:[%s7216_s15 + $0xf0] sm:$0xff] %vm558_vm0, %v3114_v30 }
 0x441   : > { %4131 = vst.msk [vmem:[%s7321_s19 + $0x18] sm:$0xff] %vm558_vm0, %v4099_v25  ;;  %v4098_v34 = vadd.f32 %v4066_v53, %v3917_v41  ;;  %v4069_v43 = vmul.f32 %v5836_v42, %v3932_v46  ;;  %v5852_v42 = vld [vmem:[%s6005_s17 + $0xa8] sm:$0xff] }
 0x442   : > { %v3927_v32 = vpop.permute.xlu1 %3926 }
 0x443   : > { %4130 = vst.msk [vmem:[%s7321_s19 + $0x10] sm:$0xff] %vm558_vm0, %v4098_v34  ;;  %v4101_v22 = vadd.f32 %v4069_v43, %v3932_v46  ;;  %v4068_v26 = vmul.f32 %v5837_v27, %v3927_v32  ;;  %v5853_v27 = vld [vmem:[%s6005_s17 + $0xa0] sm:$0xff] }
 0x444   : > { %v3942_v44 = vpop.permute.xlu0 %3941 }
 0x445   : > { %4133 = vst.msk [vmem:[%s7321_s19 + $0x28] sm:$0xff] %vm558_vm0, %v4101_v22  ;;  %v4100_v10 = vadd.f32 %v4068_v26, %v3927_v32  ;;  %v4071_v47 = vmul.f32 %v5838_v56, %v3942_v44  ;;  %v5854_v56 = vld [vmem:[%s6005_s17 + $0xb8] sm:$0xff] }
 0x446   : > { %v3937_v37 = vpop.permute.xlu1 %3936 }
 0x447   : > { %4132 = vst.msk [vmem:[%s7321_s19 + $0x20] sm:$0xff] %vm558_vm0, %v4100_v10  ;;  %v4103_v49 = vadd.f32 %v4071_v47, %v3942_v44  ;;  %v4070_v5 = vmul.f32 %v5839_v50, %v3937_v37  ;;  %v5855_v50 = vld [vmem:[%s6005_s17 + $0xb0] sm:$0xff] }
 0x449   : > { %4135 = vst.msk [vmem:[%s7321_s19 + $0x38] sm:$0xff] %vm558_vm0, %v4103_v49  ;;  %v4102_v20 = vadd.f32 %v4070_v5, %v3937_v37  ;;  %v3952_v45 = vpop.permute.xlu0 %3951 }
 0x44a   : > { %v4073_v11 = vmul.f32 %v5840_v52, %v3952_v45  ;;  %v5856_v52 = vld [vmem:[%s6005_s17 + $0xc8] sm:$0xff] }
 0x44b   : > { %4134 = vst.msk [vmem:[%s7321_s19 + $0x30] sm:$0xff] %vm558_vm0, %v4102_v20  ;;  %v3947_v8 = vpop.permute.xlu1 %3946 }
 0x44c   : > { %v4105_v63 = vadd.f32 %v4073_v11, %v3952_v45  ;;  %v4072_v0 = vmul.f32 %v5841_v19, %v3947_v8  ;;  %v5857_v19 = vld [vmem:[%s6005_s17 + $0xc0] sm:$0xff] }
 0x44d   : > { %v3962_v14 = vpop.permute.xlu0 %3961 }
 0x44e   : > { %4137 = vst.msk [vmem:[%s7321_s19 + $0x48] sm:$0xff] %vm558_vm0, %v4105_v63  ;;  %v4104_v31 = vadd.f32 %v4072_v0, %v3947_v8  ;;  %v4075_v4 = vmul.f32 %v5842_v54, %v3962_v14  ;;  %v5858_v54 = vld [vmem:[%s6005_s17 + $0xd8] sm:$0xff] }
 0x44f   : > { %v3957_v18 = vpop.permute.xlu1 %3956 }
 0x450   : > { %4136 = vst.msk [vmem:[%s7321_s19 + $0x40] sm:$0xff] %vm558_vm0, %v4104_v31  ;;  %v4107_v55 = vadd.f32 %v4075_v4, %v3962_v14  ;;  %v4074_v13 = vmul.f32 %v5843_v29, %v3957_v18  ;;  %v5859_v29 = vld [vmem:[%s6005_s17 + $0xd0] sm:$0xff] }
 0x451   : > { %v3972_v58 = vpop.permute.xlu0 %3971 }
 0x452   : > { %4139 = vst.msk [vmem:[%s7321_s19 + $0x58] sm:$0xff] %vm558_vm0, %v4107_v55  ;;  %v4106_v17 = vadd.f32 %v4074_v13, %v3957_v18  ;;  %v4077_v48 = vmul.f32 %v5844_v33, %v3972_v58  ;;  %v5860_v33 = vld [vmem:[%s6005_s17 + $0xe8] sm:$0xff] }
 0x453   : > { %v3967_v3 = vpop.permute.xlu1 %3966 }
 0x454   : > { %4138 = vst.msk [vmem:[%s7321_s19 + $0x50] sm:$0xff] %vm558_vm0, %v4106_v17  ;;  %v4109_v28 = vadd.f32 %v4077_v48, %v3972_v58  ;;  %v4076_v51 = vmul.f32 %v5845_v57, %v3967_v3  ;;  %v5861_v57 = vld [vmem:[%s6005_s17 + $0xe0] sm:$0xff] }
 0x455   : > { %v3982_v40 = vpop.permute.xlu0 %3981 }
 0x456   : > { %4141 = vst.msk [vmem:[%s7321_s19 + $0x68] sm:$0xff] %vm558_vm0, %v4109_v28  ;;  %v4108_v12 = vadd.f32 %v4076_v51, %v3967_v3  ;;  %v4079_v16 = vmul.f32 %v5846_v61, %v3982_v40  ;;  %v5862_v61 = vld [vmem:[%s6005_s17 + $0xf8] sm:$0xff] }
 0x457   : > { %v3977_v62 = vpop.permute.xlu1 %3976 }
 0x458   : > { %4140 = vst.msk [vmem:[%s7321_s19 + $0x60] sm:$0xff] %vm558_vm0, %v4108_v12  ;;  %v4111_v35 = vadd.f32 %v4079_v16, %v3982_v40  ;;  %v4078_v7 = vmul.f32 %v5847_v60, %v3977_v62  ;;  %v5863_v60 = vld [vmem:[%s6005_s17 + $0xf0] sm:$0xff] }
 0x459   : > { %v3992_v23 = vpop.permute.xlu0 %3991 }
 0x45a   : > { %4143 = vst.msk [vmem:[%s7321_s19 + $0x78] sm:$0xff] %vm558_vm0, %v4111_v35  ;;  %v4110_v15 = vadd.f32 %v4078_v7, %v3977_v62  ;;  %v4081_v21 = vmul.f32 %v5848_v38, %v3992_v23 }
 0x45b   : > { %v3987_v24 = vpop.permute.xlu1 %3986 }
 0x45c   : > { %4142 = vst.msk [vmem:[%s7321_s19 + $0x70] sm:$0xff] %vm558_vm0, %v4110_v15  ;;  %v4113_v39 = vadd.f32 %v4081_v21, %v3992_v23  ;;  %v4080_v1 = vmul.f32 %v5849_v2, %v3987_v24 }
 0x45d   : > { %v4002_v36 = vpop.permute.xlu0 %4001 }
 0x45e   : > { %4145 = vst.msk [vmem:[%s7321_s19 + $0x88] sm:$0xff] %vm558_vm0, %v4113_v39  ;;  %v4112_v59 = vadd.f32 %v4080_v1, %v3987_v24  ;;  %v4083_v41 = vmul.f32 %v5850_v6, %v4002_v36 }
 0x45f   : > { %v3997_v30 = vpop.permute.xlu1 %3996 }
 0x460   : > { %4144 = vst.msk [vmem:[%s7321_s19 + $0x80] sm:$0xff] %vm558_vm0, %v4112_v59  ;;  %v4115_v25 = vadd.f32 %v4083_v41, %v4002_v36  ;;  %v4082_v53 = vmul.f32 %v5851_v9, %v3997_v30 }
 0x461   : > { %v4012_v46 = vpop.permute.xlu0 %4011 }
 0x462   : > { %4147 = vst.msk [vmem:[%s7321_s19 + $0x98] sm:$0xff] %vm558_vm0, %v4115_v25  ;;  %v4114_v34 = vadd.f32 %v4082_v53, %v3997_v30  ;;  %v4085_v43 = vmul.f32 %v5852_v42, %v4012_v46 }
 0x463   : > { %v4007_v32 = vpop.permute.xlu1 %4006 }
 0x464   : > { %4146 = vst.msk [vmem:[%s7321_s19 + $0x90] sm:$0xff] %vm558_vm0, %v4114_v34  ;;  %v4117_v22 = vadd.f32 %v4085_v43, %v4012_v46  ;;  %v4084_v26 = vmul.f32 %v5853_v27, %v4007_v32 }
 0x465   : > { %v4022_v44 = vpop.permute.xlu0 %4021 }
 0x466   : > { %4149 = vst.msk [vmem:[%s7321_s19 + $0xa8] sm:$0xff] %vm558_vm0, %v4117_v22  ;;  %v4116_v10 = vadd.f32 %v4084_v26, %v4007_v32  ;;  %v4087_v47 = vmul.f32 %v5854_v56, %v4022_v44 }
 0x467   : > { %v4017_v37 = vpop.permute.xlu1 %4016 }
 0x468   : > { %4148 = vst.msk [vmem:[%s7321_s19 + $0xa0] sm:$0xff] %vm558_vm0, %v4116_v10  ;;  %v4119_v49 = vadd.f32 %v4087_v47, %v4022_v44  ;;  %v4086_v5 = vmul.f32 %v5855_v50, %v4017_v37 }
 0x469   : > { %v4032_v20 = vpop.permute.xlu0 %4031 }
 0x46a   : > { %4151 = vst.msk [vmem:[%s7321_s19 + $0xb8] sm:$0xff] %vm558_vm0, %v4119_v49  ;;  %v4118_v45 = vadd.f32 %v4086_v5, %v4017_v37  ;;  %v4089_v11 = vmul.f32 %v5856_v52, %v4032_v20 }
 0x46b   : > { %v4027_v8 = vpop.permute.xlu1 %4026 }
 0x46c   : > { %4150 = vst.msk [vmem:[%s7321_s19 + $0xb0] sm:$0xff] %vm558_vm0, %v4118_v45  ;;  %v4121_v63 = vadd.f32 %v4089_v11, %v4032_v20  ;;  %v4088_v0 = vmul.f32 %v5857_v19, %v4027_v8 }
 0x46d   : > { %v4042_v14 = vpop.permute.xlu0 %4041 }
 0x46e   : > { %4153 = vst.msk [vmem:[%s7321_s19 + $0xc8] sm:$0xff] %vm558_vm0, %v4121_v63  ;;  %v4120_v31 = vadd.f32 %v4088_v0, %v4027_v8  ;;  %v4091_v4 = vmul.f32 %v5858_v54, %v4042_v14 }
 0x46f   : > { %v4037_v18 = vpop.permute.xlu1 %4036 }
 0x470   : > { %4152 = vst.msk [vmem:[%s7321_s19 + $0xc0] sm:$0xff] %vm558_vm0, %v4120_v31  ;;  %v4123_v55 = vadd.f32 %v4091_v4, %v4042_v14  ;;  %v4090_v13 = vmul.f32 %v5859_v29, %v4037_v18 }
 0x471   : > { %v4052_v58 = vpop.permute.xlu0 %4051 }
 0x472   : > { %4155 = vst.msk [vmem:[%s7321_s19 + $0xd8] sm:$0xff] %vm558_vm0, %v4123_v55  ;;  %v4122_v17 = vadd.f32 %v4090_v13, %v4037_v18  ;;  %v4093_v48 = vmul.f32 %v5860_v33, %v4052_v58 }
 0x473   : > { %v4047_v3 = vpop.permute.xlu1 %4046 }
 0x474   : > { %4154 = vst.msk [vmem:[%s7321_s19 + $0xd0] sm:$0xff] %vm558_vm0, %v4122_v17  ;;  %v4125_v28 = vadd.f32 %v4093_v48, %v4052_v58  ;;  %v4092_v51 = vmul.f32 %v5861_v57, %v4047_v3 }
 0x475   : > { %v4062_v40 = vpop.permute.xlu0 %4061 }
 0x476   : > { %4157 = vst.msk [vmem:[%s7321_s19 + $0xe8] sm:$0xff] %vm558_vm0, %v4125_v28  ;;  %v4124_v12 = vadd.f32 %v4092_v51, %v4047_v3  ;;  %v4095_v16 = vmul.f32 %v5862_v61, %v4062_v40 }
 0x477   : > { %v4057_v62 = vpop.permute.xlu1 %4056 }
 0x478   : > { %4156 = vst.msk [vmem:[%s7321_s19 + $0xe0] sm:$0xff] %vm558_vm0, %v4124_v12  ;;  %v4127_v35 = vadd.f32 %v4095_v16, %v4062_v40  ;;  %v4094_v7 = vmul.f32 %v5863_v60, %v4057_v62 }
 0x47a   : > { %4159 = vst.msk [vmem:[%s7321_s19 + $0xf8] sm:$0xff] %vm558_vm0, %v4127_v35  ;;  %v4126_v23 = vadd.f32 %v4094_v7, %v4057_v62 }
 0x47c   : > { %4158 = vst.msk [vmem:[%s7321_s19 + $0xf0] sm:$0xff] %vm558_vm0, %v4126_v23 }
 0x47d PF: > { %s20_s30 = sadd.s32 1, %s5870_s30  }
 0x47e   : > { %p17_p4 = scmp.ge.s32.totalorder %s20_s30, 4  }
 0x480   :  { %19 = sbr.rel (!%p17_p4) target bundleno = 1 (0x1), region = 125 }

</bundles_post_ra>
